<compile_context>
chip_gen: v7x
topology: tpu7x:2x2x1
jax: 0.10.0
libtpu: 0.0.40
codegen_flags: <defaults>
</compile_context>

<pallas_src>
import math

import jax
import jax.numpy as jnp
from jax import lax
from jax.experimental import pallas as pl
from jax.experimental.pallas import tpu as pltpu

MATMUL_DTYPE = jnp.bfloat16   # MXU operand dtype (accumulation stays f32)
_LANE = 128                   # lane (last-dim) alignment
_SUBLANE = 16                 # sublane alignment (bf16-packed second-minor dim)


def _round_up(x, m):
    return (x + m - 1) // m * m


def _pack_gate_matrix(w, d_pad, H, Hp):
    """(4H, D) PyTorch weight -> (d_pad, 4*Hp) transposed, gate blocks at stride Hp.

    Zero padding keeps the padded H columns / padded input rows inert, so the
    recurrence is exact on the real region."""
    D = w.shape[1]
    out = jnp.zeros((d_pad, 4 * Hp), jnp.float32)
    for g in range(4):
        out = out.at[:D, g * Hp:g * Hp + H].set(
            jnp.asarray(w[g * H:(g + 1) * H, :], jnp.float32).T)
    return out


def _pack_bias(b_ih, b_hh, H, Hp):
    b = jnp.asarray(b_ih, jnp.float32) + jnp.asarray(b_hh, jnp.float32)
    out = jnp.zeros((1, 4 * Hp), jnp.float32)
    for g in range(4):
        out = out.at[0, g * Hp:g * Hp + H].set(b[g * H:(g + 1) * H])
    return out


# ----------------------------- fused kernel ----------------------------------
def _lstm_fc_kernel(x_ref, wih0_ref, wihr_ref, whh_ref, bias_ref, fcw_ref,
                    fcb_ref, out_ref, gates_ref, seq_a, seq_b):
    """Whole model in one invocation.

    x_ref:    (T, Bp, D0p)  bf16   padded, time-major input
    wih0_ref: (D0p, 4Hp)    bf16   layer-0 W_ih^T (gate-blocked)
    wihr_ref: (max(L-1,1), Hp, 4Hp) bf16   W_ih^T of layers 1..L-1
    whh_ref:  (L, Hp, 4Hp)  bf16   W_hh^T per layer
    bias_ref: (L, 1, 4Hp)   f32    b_ih + b_hh per layer
    fcw_ref:  (Hp, 128)     bf16   FC weight (real column 0)
    fcb_ref:  (1, 128)      f32    FC bias   (real column 0)
    out_ref:  (Bp, 128)     f32    FC output (real value at [:, 0])
    gates_ref: (T, Bp, 4Hp) f32    per-layer precomputed input projection
    seq_a/seq_b: (T, Bp, Hp) bf16  inter-layer hidden-sequence ping-pong slabs
    """
    T, Bp, _ = x_ref.shape
    L, Hp, _ = whh_ref.shape
    slabs = (seq_a, seq_b)

    h_last = None
    for layer in range(L):
        # ---- input projection for the whole sequence: one large MXU matmul ----
        if layer == 0:
            x_flat = x_ref[...].reshape(T * Bp, x_ref.shape[-1])
            wih = wih0_ref[...]
        else:
            x_flat = slabs[(layer - 1) % 2][...].reshape(T * Bp, Hp)
            wih = wihr_ref[layer - 1]
        gx = jnp.dot(x_flat, wih, preferred_element_type=jnp.float32)
        gx = gx + bias_ref[layer]                       # (T*Bp, 4Hp) f32
        gates_ref[...] = gx.reshape(T, Bp, 4 * Hp)

        whh = whh_ref[layer]                            # (Hp, 4Hp) bf16, resident
        write_seq = (layer + 1) < L                     # last layer only needs h_T
        out_slab = slabs[layer % 2]

        # ---- serial recurrence: only h @ W_hh + elementwise on the chain ----
        def step(t, carry, whh=whh, out_slab=out_slab, write_seq=write_seq):
            h, c = carry                                # f32 (Bp, Hp)
            gates = gates_ref[t] + jnp.dot(
                h.astype(MATMUL_DTYPE), whh, preferred_element_type=jnp.float32)
            # gate blocks are 128-lane aligned (stride Hp): no cross-lane moves
            i_g = jax.nn.sigmoid(gates[:, 0 * Hp:1 * Hp])
            f_g = jax.nn.sigmoid(gates[:, 1 * Hp:2 * Hp])
            g_g = jnp.tanh(gates[:, 2 * Hp:3 * Hp])
            o_g = jax.nn.sigmoid(gates[:, 3 * Hp:4 * Hp])
            c_new = f_g * c + i_g * g_g
            h_new = o_g * jnp.tanh(c_new)
            if write_seq:
                out_slab[t] = h_new.astype(MATMUL_DTYPE)
            return h_new, c_new

        zeros = jnp.zeros((Bp, Hp), jnp.float32)        # h0 = c0 = 0
        h_last, _ = lax.fori_loop(0, T, step, (zeros, zeros),
                                  unroll=(T <= 32))

    # ---- fused final Linear on the last hidden state of the last layer ----
    out_ref[...] = (
        jnp.dot(h_last.astype(MATMUL_DTYPE), fcw_ref[...],
                preferred_element_type=jnp.float32)
        + fcb_ref[...]
    )


# ------------------------------ wrapper ---------------------------------------
def lstm_model_forward(params, x, hidden_size):
    """x: (B, T, input_size) batch_first, as in the PyTorch module. Returns (B, 1)."""
    B, T, D_in = x.shape
    H = hidden_size
    layers = params["layers"]
    L = len(layers)

    Hp = _round_up(H, _LANE)          # lane-dense hidden dim
    Bp = _round_up(B, _SUBLANE)       # sublane-dense batch dim
    D0p = _round_up(D_in, _LANE)

    # Pack weights: transposed, zero-padded, gate-blocked at Hp, bf16 for the MXU.
    wih0 = _pack_gate_matrix(layers[0]["w_ih"], D0p, H, Hp).astype(MATMUL_DTYPE)
    if L > 1:
        wihr = jnp.stack([_pack_gate_matrix(layers[l]["w_ih"], Hp, H, Hp)
                          for l in range(1, L)]).astype(MATMUL_DTYPE)
    else:
        wihr = jnp.zeros((1, Hp, 4 * Hp), MATMUL_DTYPE)   # unused dummy
    whh = jnp.stack([_pack_gate_matrix(lp["w_hh"], Hp, H, Hp)
                     for lp in layers]).astype(MATMUL_DTYPE)
    bias = jnp.stack([_pack_bias(lp["b_ih"], lp["b_hh"], H, Hp) for lp in layers])

    fcw = (jnp.zeros((Hp, _LANE), jnp.float32)
           .at[:H, 0].set(jnp.asarray(params["fc_w"], jnp.float32)[0])
           .astype(MATMUL_DTYPE))
    fcb = jnp.zeros((1, _LANE), jnp.float32).at[0, 0].set(
        jnp.asarray(params["fc_b"], jnp.float32)[0])

    # Pad + transpose to time-major in a single host-side copy (padding would
    # materialize a copy anyway, so the transpose is free here).
    x_pad = jnp.zeros((T, Bp, D0p), MATMUL_DTYPE)
    x_pad = x_pad.at[:, :B, :D_in].set(
        jnp.transpose(x, (1, 0, 2)).astype(MATMUL_DTYPE))

    # NOTE on scaling H: weights are bf16 and live in a single-invocation kernel,
    # so W_hh^T is 8*H*Hp bytes; re-budget VMEM (vmem_limit_bytes) before scaling
    # H toward ~1024 on v7x (64 MiB physical VMEM).
    out_pad = pl.pallas_call(
        _lstm_fc_kernel,
        out_shape=jax.ShapeDtypeStruct((Bp, _LANE), jnp.float32),
        grid=(1,),
        in_specs=[
            pl.BlockSpec((T, Bp, D0p), lambda i: (0, 0, 0)),
            pl.BlockSpec((D0p, 4 * Hp), lambda i: (0, 0)),
            pl.BlockSpec((max(L - 1, 1), Hp, 4 * Hp), lambda i: (0, 0, 0)),
            pl.BlockSpec((L, Hp, 4 * Hp), lambda i: (0, 0, 0)),
            pl.BlockSpec((L, 1, 4 * Hp), lambda i: (0, 0, 0)),
            pl.BlockSpec((Hp, _LANE), lambda i: (0, 0)),
            pl.BlockSpec((1, _LANE), lambda i: (0, 0)),
        ],
        out_specs=pl.BlockSpec((Bp, _LANE), lambda i: (0, 0)),
        scratch_shapes=[
            pltpu.VMEM((T, Bp, 4 * Hp), jnp.float32),    # per-layer x-projection slab
            pltpu.VMEM((T, Bp, Hp), MATMUL_DTYPE),       # hidden-seq ping
            pltpu.VMEM((T, Bp, Hp), MATMUL_DTYPE),       # hidden-seq pong
        ],
        compiler_params=pltpu.CompilerParams(
            dimension_semantics=("arbitrary",)),
    )(x_pad, wih0, wihr, whh, bias, fcw, fcb)

    return out_pad[:B, :1]


# ------------------------------ param init ------------------------------------
def init_params(key, input_size, hidden_size, num_layers):
    """Deterministic init matching PyTorch shapes: U(-1/sqrt(H), 1/sqrt(H))."""
    H = hidden_size
    bound = 1.0 / math.sqrt(H)
    params = {"layers": []}
    for layer in range(num_layers):
        d_in = input_size if layer == 0 else H
        key, k1, k2, k3, k4 = jax.random.split(key, 5)
        params["layers"].append({
            "w_ih": jax.random.uniform(k1, (4 * H, d_in), jnp.float32, -bound, bound),
            "w_hh": jax.random.uniform(k2, (4 * H, H), jnp.float32, -bound, bound),
            "b_ih": jax.random.uniform(k3, (4 * H,), jnp.float32, -bound, bound),
            "b_hh": jax.random.uniform(k4, (4 * H,), jnp.float32, -bound, bound),
        })
    key, k5, k6 = jax.random.split(key, 3)
    params["fc_w"] = jax.random.uniform(k5, (1, H), jnp.float32, -bound, bound)
    params["fc_b"] = jax.random.uniform(k6, (1,), jnp.float32, -bound, bound)
    return params


if __name__ == "__main__":
    # Small shapes consistent with the module: batch=2, seq=8, input=4, hidden=32, 2 layers.
    B, T, INPUT_SIZE, HIDDEN, NUM_LAYERS = 2, 8, 4, 32, 2

    key = jax.random.PRNGKey(0)
    key, xk = jax.random.split(key)
    x = jax.random.normal(xk, (B, T, INPUT_SIZE), dtype=jnp.float32)

    params = init_params(key, INPUT_SIZE, HIDDEN, NUM_LAYERS)

    out = lstm_model_forward(params, x, HIDDEN)
    out = jax.block_until_ready(out)
    assert out.shape == (B, 1), out.shape
    print("KERNEL_OK")
</pallas_src>

<mosaic_0001>
module attributes {stable_mosaic.version = 11 : i64} {
  func.func @_lstm_fc_kernel(%arg0: i32, %arg1: memref<8x16x128xbf16, #tpu.memory_space<vmem>>, %arg2: memref<128x512xbf16, #tpu.memory_space<vmem>>, %arg3: memref<1x128x512xbf16, #tpu.memory_space<vmem>>, %arg4: memref<2x128x512xbf16, #tpu.memory_space<vmem>>, %arg5: memref<2x1x512xf32, #tpu.memory_space<vmem>>, %arg6: memref<128x128xbf16, #tpu.memory_space<vmem>>, %arg7: memref<1x128xf32, #tpu.memory_space<vmem>>, %arg8: memref<16x128xf32, #tpu.memory_space<vmem>>, %arg9: memref<8x16x512xf32, #tpu.memory_space<vmem>>, %arg10: memref<8x16x128xbf16, #tpu.memory_space<vmem>>, %arg11: memref<8x16x128xbf16, #tpu.memory_space<vmem>>) attributes {dimension_semantics = [#tpu.dimension_semantics<arbitrary>], iteration_bounds = array<i64: 1>, scalar_prefetch = 0 : i64, scratch_operands = 3 : i64, tpu.core_type = #tpu.core_type<tc>, window_params = [{pipeline_mode = #tpu.pipeline_mode<synchronous>, transform_indices = @transform_0, window_bounds = array<i64: 8, 16, 128>}, {pipeline_mode = #tpu.pipeline_mode<synchronous>, transform_indices = @transform_1, window_bounds = array<i64: 128, 512>}, {pipeline_mode = #tpu.pipeline_mode<synchronous>, transform_indices = @transform_2, window_bounds = array<i64: 1, 128, 512>}, {pipeline_mode = #tpu.pipeline_mode<synchronous>, transform_indices = @transform_3, window_bounds = array<i64: 2, 128, 512>}, {pipeline_mode = #tpu.pipeline_mode<synchronous>, transform_indices = @transform_4, window_bounds = array<i64: 2, 1, 512>}, {pipeline_mode = #tpu.pipeline_mode<synchronous>, transform_indices = @transform_5, window_bounds = array<i64: 128, 128>}, {pipeline_mode = #tpu.pipeline_mode<synchronous>, transform_indices = @transform_6, window_bounds = array<i64: 1, 128>}, {pipeline_mode = #tpu.pipeline_mode<synchronous>, transform_indices = @transform_7, window_bounds = array<i64: 16, 128>}]} {
    %c0 = arith.constant 0 : index
    %c0_0 = arith.constant 0 : index
    %c0_1 = arith.constant 0 : index
    %0 = vector.load %arg1[%c0, %c0_0, %c0_1] : memref<8x16x128xbf16, #tpu.memory_space<vmem>>, vector<8x16x128xbf16>
    %1 = vector.shape_cast %0 : vector<8x16x128xbf16> to vector<128x128xbf16>
    %c0_2 = arith.constant 0 : index
    %c0_3 = arith.constant 0 : index
    %2 = vector.load %arg2[%c0_2, %c0_3] : memref<128x512xbf16, #tpu.memory_space<vmem>>, vector<128x512xbf16>
    %cst = arith.constant dense<0.000000e+00> : vector<128x512xf32>
    %3 = tpu.matmul %1, %2, %cst {dimension_numbers = #tpu.dot_dimension_numbers<[1], [0], [0], [1], [0, 0, 1, 1], [], []>} : vector<128x128xbf16>, vector<128x512xbf16>, vector<128x512xf32> -> vector<128x512xf32>
    %c0_4 = arith.constant 0 : index
    %c0_5 = arith.constant 0 : index
    %c0_6 = arith.constant 0 : index
    %4 = vector.load %arg5[%c0_4, %c0_5, %c0_6] : memref<2x1x512xf32, #tpu.memory_space<vmem>>, vector<1x1x512xf32>
    %5 = vector.shape_cast %4 : vector<1x1x512xf32> to vector<1x512xf32>
    %6 = vector.broadcast %5 : vector<1x512xf32> to vector<128x512xf32>
    %7 = arith.addf %3, %6 : vector<128x512xf32>
    %8 = vector.shape_cast %7 : vector<128x512xf32> to vector<8x16x512xf32>
    %c0_7 = arith.constant 0 : index
    %c0_8 = arith.constant 0 : index
    %c0_9 = arith.constant 0 : index
    %9 = vector.load %arg9[%c0_7, %c0_8, %c0_9] : memref<8x16x512xf32, #tpu.memory_space<vmem>>, vector<8x16x512xf32>
    tpu.vector_store %arg9[%c0_7, %c0_8, %c0_9], %8 {strides = array<i32>} : memref<8x16x512xf32, #tpu.memory_space<vmem>>, vector<8x16x512xf32>,
    %c0_10 = arith.constant 0 : index
    %c0_11 = arith.constant 0 : index
    %c0_12 = arith.constant 0 : index
    %10 = vector.load %arg4[%c0_10, %c0_11, %c0_12] : memref<2x128x512xbf16, #tpu.memory_space<vmem>>, vector<1x128x512xbf16>
    %11 = vector.shape_cast %10 : vector<1x128x512xbf16> to vector<128x512xbf16>
    %cst_13 = arith.constant 0.000000e+00 : f32
    %12 = vector.broadcast %cst_13 : f32 to vector<16x128xf32>
    %c0_i32 = arith.constant 0 : i32
    %13 = arith.index_cast %c0_i32 : i32 to index
    %c0_14 = arith.constant 0 : index
    %c0_15 = arith.constant 0 : index
    %14 = vector.load %arg9[%13, %c0_14, %c0_15] : memref<8x16x512xf32, #tpu.memory_space<vmem>>, vector<1x16x512xf32>
    %15 = vector.shape_cast %14 : vector<1x16x512xf32> to vector<16x512xf32>
    %16 = arith.truncf %12 : vector<16x128xf32> to vector<16x128xbf16>
    %cst_16 = arith.constant dense<0.000000e+00> : vector<16x512xf32>
    %17 = tpu.matmul %16, %11, %cst_16 {dimension_numbers = #tpu.dot_dimension_numbers<[1], [0], [0], [1], [0, 0, 1, 1], [], []>} : vector<16x128xbf16>, vector<128x512xbf16>, vector<16x512xf32> -> vector<16x512xf32>
    %18 = arith.addf %15, %17 : vector<16x512xf32>
    %19 = vector.extract_strided_slice %18 {offsets = [0, 0], sizes = [16, 128], strides = [1, 1]} : vector<16x512xf32> to vector<16x128xf32>
    %20 = arith.negf %19 : vector<16x128xf32>
    %21 = math.exp %20 : vector<16x128xf32>
    %cst_17 = arith.constant 1.000000e+00 : f32
    %22 = vector.broadcast %cst_17 : f32 to vector<16x128xf32>
    %23 = arith.addf %22, %21 : vector<16x128xf32>
    %24 = arith.divf %22, %23 : vector<16x128xf32>
    %25 = vector.extract_strided_slice %18 {offsets = [0, 128], sizes = [16, 128], strides = [1, 1]} : vector<16x512xf32> to vector<16x128xf32>
    %26 = arith.negf %25 : vector<16x128xf32>
    %27 = math.exp %26 : vector<16x128xf32>
    %cst_18 = arith.constant 1.000000e+00 : f32
    %28 = vector.broadcast %cst_18 : f32 to vector<16x128xf32>
    %29 = arith.addf %28, %27 : vector<16x128xf32>
    %30 = arith.divf %28, %29 : vector<16x128xf32>
    %31 = vector.extract_strided_slice %18 {offsets = [0, 256], sizes = [16, 128], strides = [1, 1]} : vector<16x512xf32> to vector<16x128xf32>
    %32 = math.tanh %31 : vector<16x128xf32>
    %33 = vector.extract_strided_slice %18 {offsets = [0, 384], sizes = [16, 128], strides = [1, 1]} : vector<16x512xf32> to vector<16x128xf32>
    %34 = arith.negf %33 : vector<16x128xf32>
    %35 = math.exp %34 : vector<16x128xf32>
    %cst_19 = arith.constant 1.000000e+00 : f32
    %36 = vector.broadcast %cst_19 : f32 to vector<16x128xf32>
    %37 = arith.addf %36, %35 : vector<16x128xf32>
    %38 = arith.divf %36, %37 : vector<16x128xf32>
    %39 = arith.mulf %30, %12 : vector<16x128xf32>
    %40 = arith.mulf %24, %32 : vector<16x128xf32>
    %41 = arith.addf %39, %40 : vector<16x128xf32>
    %42 = math.tanh %41 : vector<16x128xf32>
    %43 = arith.mulf %38, %42 : vector<16x128xf32>
    %44 = arith.truncf %43 : vector<16x128xf32> to vector<16x128xbf16>
    %45 = arith.index_cast %c0_i32 : i32 to index
    %c0_20 = arith.constant 0 : index
    %c0_21 = arith.constant 0 : index
    %46 = vector.load %arg10[%45, %c0_20, %c0_21] : memref<8x16x128xbf16, #tpu.memory_space<vmem>>, vector<1x16x128xbf16>
    %47 = vector.shape_cast %46 : vector<1x16x128xbf16> to vector<16x128xbf16>
    %48 = vector.shape_cast %44 : vector<16x128xbf16> to vector<1x16x128xbf16>
    tpu.vector_store %arg10[%45, %c0_20, %c0_21], %48 {strides = array<i32>} : memref<8x16x128xbf16, #tpu.memory_space<vmem>>, vector<1x16x128xbf16>,
    %c1_i32 = arith.constant 1 : i32
    %49 = arith.index_cast %c1_i32 : i32 to index
    %c0_22 = arith.constant 0 : index
    %c0_23 = arith.constant 0 : index
    %50 = vector.load %arg9[%49, %c0_22, %c0_23] : memref<8x16x512xf32, #tpu.memory_space<vmem>>, vector<1x16x512xf32>
    %51 = vector.shape_cast %50 : vector<1x16x512xf32> to vector<16x512xf32>
    %52 = arith.truncf %43 : vector<16x128xf32> to vector<16x128xbf16>
    %cst_24 = arith.constant dense<0.000000e+00> : vector<16x512xf32>
    %53 = tpu.matmul %52, %11, %cst_24 {dimension_numbers = #tpu.dot_dimension_numbers<[1], [0], [0], [1], [0, 0, 1, 1], [], []>} : vector<16x128xbf16>, vector<128x512xbf16>, vector<16x512xf32> -> vector<16x512xf32>
    %54 = arith.addf %51, %53 : vector<16x512xf32>
    %55 = vector.extract_strided_slice %54 {offsets = [0, 0], sizes = [16, 128], strides = [1, 1]} : vector<16x512xf32> to vector<16x128xf32>
    %56 = arith.negf %55 : vector<16x128xf32>
    %57 = math.exp %56 : vector<16x128xf32>
    %cst_25 = arith.constant 1.000000e+00 : f32
    %58 = vector.broadcast %cst_25 : f32 to vector<16x128xf32>
    %59 = arith.addf %58, %57 : vector<16x128xf32>
    %60 = arith.divf %58, %59 : vector<16x128xf32>
    %61 = vector.extract_strided_slice %54 {offsets = [0, 128], sizes = [16, 128], strides = [1, 1]} : vector<16x512xf32> to vector<16x128xf32>
    %62 = arith.negf %61 : vector<16x128xf32>
    %63 = math.exp %62 : vector<16x128xf32>
    %cst_26 = arith.constant 1.000000e+00 : f32
    %64 = vector.broadcast %cst_26 : f32 to vector<16x128xf32>
    %65 = arith.addf %64, %63 : vector<16x128xf32>
    %66 = arith.divf %64, %65 : vector<16x128xf32>
    %67 = vector.extract_strided_slice %54 {offsets = [0, 256], sizes = [16, 128], strides = [1, 1]} : vector<16x512xf32> to vector<16x128xf32>
    %68 = math.tanh %67 : vector<16x128xf32>
    %69 = vector.extract_strided_slice %54 {offsets = [0, 384], sizes = [16, 128], strides = [1, 1]} : vector<16x512xf32> to vector<16x128xf32>
    %70 = arith.negf %69 : vector<16x128xf32>
    %71 = math.exp %70 : vector<16x128xf32>
    %cst_27 = arith.constant 1.000000e+00 : f32
    %72 = vector.broadcast %cst_27 : f32 to vector<16x128xf32>
    %73 = arith.addf %72, %71 : vector<16x128xf32>
    %74 = arith.divf %72, %73 : vector<16x128xf32>
    %75 = arith.mulf %66, %41 : vector<16x128xf32>
    %76 = arith.mulf %60, %68 : vector<16x128xf32>
    %77 = arith.addf %75, %76 : vector<16x128xf32>
    %78 = math.tanh %77 : vector<16x128xf32>
    %79 = arith.mulf %74, %78 : vector<16x128xf32>
    %80 = arith.truncf %79 : vector<16x128xf32> to vector<16x128xbf16>
    %81 = arith.index_cast %c1_i32 : i32 to index
    %c0_28 = arith.constant 0 : index
    %c0_29 = arith.constant 0 : index
    %82 = vector.load %arg10[%81, %c0_28, %c0_29] : memref<8x16x128xbf16, #tpu.memory_space<vmem>>, vector<1x16x128xbf16>
    %83 = vector.shape_cast %82 : vector<1x16x128xbf16> to vector<16x128xbf16>
    %84 = vector.shape_cast %80 : vector<16x128xbf16> to vector<1x16x128xbf16>
    tpu.vector_store %arg10[%81, %c0_28, %c0_29], %84 {strides = array<i32>} : memref<8x16x128xbf16, #tpu.memory_space<vmem>>, vector<1x16x128xbf16>,
    %c2_i32 = arith.constant 2 : i32
    %85 = arith.index_cast %c2_i32 : i32 to index
    %c0_30 = arith.constant 0 : index
    %c0_31 = arith.constant 0 : index
    %86 = vector.load %arg9[%85, %c0_30, %c0_31] : memref<8x16x512xf32, #tpu.memory_space<vmem>>, vector<1x16x512xf32>
    %87 = vector.shape_cast %86 : vector<1x16x512xf32> to vector<16x512xf32>
    %88 = arith.truncf %79 : vector<16x128xf32> to vector<16x128xbf16>
    %cst_32 = arith.constant dense<0.000000e+00> : vector<16x512xf32>
    %89 = tpu.matmul %88, %11, %cst_32 {dimension_numbers = #tpu.dot_dimension_numbers<[1], [0], [0], [1], [0, 0, 1, 1], [], []>} : vector<16x128xbf16>, vector<128x512xbf16>, vector<16x512xf32> -> vector<16x512xf32>
    %90 = arith.addf %87, %89 : vector<16x512xf32>
    %91 = vector.extract_strided_slice %90 {offsets = [0, 0], sizes = [16, 128], strides = [1, 1]} : vector<16x512xf32> to vector<16x128xf32>
    %92 = arith.negf %91 : vector<16x128xf32>
    %93 = math.exp %92 : vector<16x128xf32>
    %cst_33 = arith.constant 1.000000e+00 : f32
    %94 = vector.broadcast %cst_33 : f32 to vector<16x128xf32>
    %95 = arith.addf %94, %93 : vector<16x128xf32>
    %96 = arith.divf %94, %95 : vector<16x128xf32>
    %97 = vector.extract_strided_slice %90 {offsets = [0, 128], sizes = [16, 128], strides = [1, 1]} : vector<16x512xf32> to vector<16x128xf32>
    %98 = arith.negf %97 : vector<16x128xf32>
    %99 = math.exp %98 : vector<16x128xf32>
    %cst_34 = arith.constant 1.000000e+00 : f32
    %100 = vector.broadcast %cst_34 : f32 to vector<16x128xf32>
    %101 = arith.addf %100, %99 : vector<16x128xf32>
    %102 = arith.divf %100, %101 : vector<16x128xf32>
    %103 = vector.extract_strided_slice %90 {offsets = [0, 256], sizes = [16, 128], strides = [1, 1]} : vector<16x512xf32> to vector<16x128xf32>
    %104 = math.tanh %103 : vector<16x128xf32>
    %105 = vector.extract_strided_slice %90 {offsets = [0, 384], sizes = [16, 128], strides = [1, 1]} : vector<16x512xf32> to vector<16x128xf32>
    %106 = arith.negf %105 : vector<16x128xf32>
    %107 = math.exp %106 : vector<16x128xf32>
    %cst_35 = arith.constant 1.000000e+00 : f32
    %108 = vector.broadcast %cst_35 : f32 to vector<16x128xf32>
    %109 = arith.addf %108, %107 : vector<16x128xf32>
    %110 = arith.divf %108, %109 : vector<16x128xf32>
    %111 = arith.mulf %102, %77 : vector<16x128xf32>
    %112 = arith.mulf %96, %104 : vector<16x128xf32>
    %113 = arith.addf %111, %112 : vector<16x128xf32>
    %114 = math.tanh %113 : vector<16x128xf32>
    %115 = arith.mulf %110, %114 : vector<16x128xf32>
    %116 = arith.truncf %115 : vector<16x128xf32> to vector<16x128xbf16>
    %117 = arith.index_cast %c2_i32 : i32 to index
    %c0_36 = arith.constant 0 : index
    %c0_37 = arith.constant 0 : index
    %118 = vector.load %arg10[%117, %c0_36, %c0_37] : memref<8x16x128xbf16, #tpu.memory_space<vmem>>, vector<1x16x128xbf16>
    %119 = vector.shape_cast %118 : vector<1x16x128xbf16> to vector<16x128xbf16>
    %120 = vector.shape_cast %116 : vector<16x128xbf16> to vector<1x16x128xbf16>
    tpu.vector_store %arg10[%117, %c0_36, %c0_37], %120 {strides = array<i32>} : memref<8x16x128xbf16, #tpu.memory_space<vmem>>, vector<1x16x128xbf16>,
    %c3_i32 = arith.constant 3 : i32
    %121 = arith.index_cast %c3_i32 : i32 to index
    %c0_38 = arith.constant 0 : index
    %c0_39 = arith.constant 0 : index
    %122 = vector.load %arg9[%121, %c0_38, %c0_39] : memref<8x16x512xf32, #tpu.memory_space<vmem>>, vector<1x16x512xf32>
    %123 = vector.shape_cast %122 : vector<1x16x512xf32> to vector<16x512xf32>
    %124 = arith.truncf %115 : vector<16x128xf32> to vector<16x128xbf16>
    %cst_40 = arith.constant dense<0.000000e+00> : vector<16x512xf32>
    %125 = tpu.matmul %124, %11, %cst_40 {dimension_numbers = #tpu.dot_dimension_numbers<[1], [0], [0], [1], [0, 0, 1, 1], [], []>} : vector<16x128xbf16>, vector<128x512xbf16>, vector<16x512xf32> -> vector<16x512xf32>
    %126 = arith.addf %123, %125 : vector<16x512xf32>
    %127 = vector.extract_strided_slice %126 {offsets = [0, 0], sizes = [16, 128], strides = [1, 1]} : vector<16x512xf32> to vector<16x128xf32>
    %128 = arith.negf %127 : vector<16x128xf32>
    %129 = math.exp %128 : vector<16x128xf32>
    %cst_41 = arith.constant 1.000000e+00 : f32
    %130 = vector.broadcast %cst_41 : f32 to vector<16x128xf32>
    %131 = arith.addf %130, %129 : vector<16x128xf32>
    %132 = arith.divf %130, %131 : vector<16x128xf32>
    %133 = vector.extract_strided_slice %126 {offsets = [0, 128], sizes = [16, 128], strides = [1, 1]} : vector<16x512xf32> to vector<16x128xf32>
    %134 = arith.negf %133 : vector<16x128xf32>
    %135 = math.exp %134 : vector<16x128xf32>
    %cst_42 = arith.constant 1.000000e+00 : f32
    %136 = vector.broadcast %cst_42 : f32 to vector<16x128xf32>
    %137 = arith.addf %136, %135 : vector<16x128xf32>
    %138 = arith.divf %136, %137 : vector<16x128xf32>
    %139 = vector.extract_strided_slice %126 {offsets = [0, 256], sizes = [16, 128], strides = [1, 1]} : vector<16x512xf32> to vector<16x128xf32>
    %140 = math.tanh %139 : vector<16x128xf32>
    %141 = vector.extract_strided_slice %126 {offsets = [0, 384], sizes = [16, 128], strides = [1, 1]} : vector<16x512xf32> to vector<16x128xf32>
    %142 = arith.negf %141 : vector<16x128xf32>
    %143 = math.exp %142 : vector<16x128xf32>
    %cst_43 = arith.constant 1.000000e+00 : f32
    %144 = vector.broadcast %cst_43 : f32 to vector<16x128xf32>
    %145 = arith.addf %144, %143 : vector<16x128xf32>
    %146 = arith.divf %144, %145 : vector<16x128xf32>
    %147 = arith.mulf %138, %113 : vector<16x128xf32>
    %148 = arith.mulf %132, %140 : vector<16x128xf32>
    %149 = arith.addf %147, %148 : vector<16x128xf32>
    %150 = math.tanh %149 : vector<16x128xf32>
    %151 = arith.mulf %146, %150 : vector<16x128xf32>
    %152 = arith.truncf %151 : vector<16x128xf32> to vector<16x128xbf16>
    %153 = arith.index_cast %c3_i32 : i32 to index
    %c0_44 = arith.constant 0 : index
    %c0_45 = arith.constant 0 : index
    %154 = vector.load %arg10[%153, %c0_44, %c0_45] : memref<8x16x128xbf16, #tpu.memory_space<vmem>>, vector<1x16x128xbf16>
    %155 = vector.shape_cast %154 : vector<1x16x128xbf16> to vector<16x128xbf16>
    %156 = vector.shape_cast %152 : vector<16x128xbf16> to vector<1x16x128xbf16>
    tpu.vector_store %arg10[%153, %c0_44, %c0_45], %156 {strides = array<i32>} : memref<8x16x128xbf16, #tpu.memory_space<vmem>>, vector<1x16x128xbf16>,
    %c4_i32 = arith.constant 4 : i32
    %157 = arith.index_cast %c4_i32 : i32 to index
    %c0_46 = arith.constant 0 : index
    %c0_47 = arith.constant 0 : index
    %158 = vector.load %arg9[%157, %c0_46, %c0_47] : memref<8x16x512xf32, #tpu.memory_space<vmem>>, vector<1x16x512xf32>
    %159 = vector.shape_cast %158 : vector<1x16x512xf32> to vector<16x512xf32>
    %160 = arith.truncf %151 : vector<16x128xf32> to vector<16x128xbf16>
    %cst_48 = arith.constant dense<0.000000e+00> : vector<16x512xf32>
    %161 = tpu.matmul %160, %11, %cst_48 {dimension_numbers = #tpu.dot_dimension_numbers<[1], [0], [0], [1], [0, 0, 1, 1], [], []>} : vector<16x128xbf16>, vector<128x512xbf16>, vector<16x512xf32> -> vector<16x512xf32>
    %162 = arith.addf %159, %161 : vector<16x512xf32>
    %163 = vector.extract_strided_slice %162 {offsets = [0, 0], sizes = [16, 128], strides = [1, 1]} : vector<16x512xf32> to vector<16x128xf32>
    %164 = arith.negf %163 : vector<16x128xf32>
    %165 = math.exp %164 : vector<16x128xf32>
    %cst_49 = arith.constant 1.000000e+00 : f32
    %166 = vector.broadcast %cst_49 : f32 to vector<16x128xf32>
    %167 = arith.addf %166, %165 : vector<16x128xf32>
    %168 = arith.divf %166, %167 : vector<16x128xf32>
    %169 = vector.extract_strided_slice %162 {offsets = [0, 128], sizes = [16, 128], strides = [1, 1]} : vector<16x512xf32> to vector<16x128xf32>
    %170 = arith.negf %169 : vector<16x128xf32>
    %171 = math.exp %170 : vector<16x128xf32>
    %cst_50 = arith.constant 1.000000e+00 : f32
    %172 = vector.broadcast %cst_50 : f32 to vector<16x128xf32>
    %173 = arith.addf %172, %171 : vector<16x128xf32>
    %174 = arith.divf %172, %173 : vector<16x128xf32>
    %175 = vector.extract_strided_slice %162 {offsets = [0, 256], sizes = [16, 128], strides = [1, 1]} : vector<16x512xf32> to vector<16x128xf32>
    %176 = math.tanh %175 : vector<16x128xf32>
    %177 = vector.extract_strided_slice %162 {offsets = [0, 384], sizes = [16, 128], strides = [1, 1]} : vector<16x512xf32> to vector<16x128xf32>
    %178 = arith.negf %177 : vector<16x128xf32>
    %179 = math.exp %178 : vector<16x128xf32>
    %cst_51 = arith.constant 1.000000e+00 : f32
    %180 = vector.broadcast %cst_51 : f32 to vector<16x128xf32>
    %181 = arith.addf %180, %179 : vector<16x128xf32>
    %182 = arith.divf %180, %181 : vector<16x128xf32>
    %183 = arith.mulf %174, %149 : vector<16x128xf32>
    %184 = arith.mulf %168, %176 : vector<16x128xf32>
    %185 = arith.addf %183, %184 : vector<16x128xf32>
    %186 = math.tanh %185 : vector<16x128xf32>
    %187 = arith.mulf %182, %186 : vector<16x128xf32>
    %188 = arith.truncf %187 : vector<16x128xf32> to vector<16x128xbf16>
    %189 = arith.index_cast %c4_i32 : i32 to index
    %c0_52 = arith.constant 0 : index
    %c0_53 = arith.constant 0 : index
    %190 = vector.load %arg10[%189, %c0_52, %c0_53] : memref<8x16x128xbf16, #tpu.memory_space<vmem>>, vector<1x16x128xbf16>
    %191 = vector.shape_cast %190 : vector<1x16x128xbf16> to vector<16x128xbf16>
    %192 = vector.shape_cast %188 : vector<16x128xbf16> to vector<1x16x128xbf16>
    tpu.vector_store %arg10[%189, %c0_52, %c0_53], %192 {strides = array<i32>} : memref<8x16x128xbf16, #tpu.memory_space<vmem>>, vector<1x16x128xbf16>,
    %c5_i32 = arith.constant 5 : i32
    %193 = arith.index_cast %c5_i32 : i32 to index
    %c0_54 = arith.constant 0 : index
    %c0_55 = arith.constant 0 : index
    %194 = vector.load %arg9[%193, %c0_54, %c0_55] : memref<8x16x512xf32, #tpu.memory_space<vmem>>, vector<1x16x512xf32>
    %195 = vector.shape_cast %194 : vector<1x16x512xf32> to vector<16x512xf32>
    %196 = arith.truncf %187 : vector<16x128xf32> to vector<16x128xbf16>
    %cst_56 = arith.constant dense<0.000000e+00> : vector<16x512xf32>
    %197 = tpu.matmul %196, %11, %cst_56 {dimension_numbers = #tpu.dot_dimension_numbers<[1], [0], [0], [1], [0, 0, 1, 1], [], []>} : vector<16x128xbf16>, vector<128x512xbf16>, vector<16x512xf32> -> vector<16x512xf32>
    %198 = arith.addf %195, %197 : vector<16x512xf32>
    %199 = vector.extract_strided_slice %198 {offsets = [0, 0], sizes = [16, 128], strides = [1, 1]} : vector<16x512xf32> to vector<16x128xf32>
    %200 = arith.negf %199 : vector<16x128xf32>
    %201 = math.exp %200 : vector<16x128xf32>
    %cst_57 = arith.constant 1.000000e+00 : f32
    %202 = vector.broadcast %cst_57 : f32 to vector<16x128xf32>
    %203 = arith.addf %202, %201 : vector<16x128xf32>
    %204 = arith.divf %202, %203 : vector<16x128xf32>
    %205 = vector.extract_strided_slice %198 {offsets = [0, 128], sizes = [16, 128], strides = [1, 1]} : vector<16x512xf32> to vector<16x128xf32>
    %206 = arith.negf %205 : vector<16x128xf32>
    %207 = math.exp %206 : vector<16x128xf32>
    %cst_58 = arith.constant 1.000000e+00 : f32
    %208 = vector.broadcast %cst_58 : f32 to vector<16x128xf32>
    %209 = arith.addf %208, %207 : vector<16x128xf32>
    %210 = arith.divf %208, %209 : vector<16x128xf32>
    %211 = vector.extract_strided_slice %198 {offsets = [0, 256], sizes = [16, 128], strides = [1, 1]} : vector<16x512xf32> to vector<16x128xf32>
    %212 = math.tanh %211 : vector<16x128xf32>
    %213 = vector.extract_strided_slice %198 {offsets = [0, 384], sizes = [16, 128], strides = [1, 1]} : vector<16x512xf32> to vector<16x128xf32>
    %214 = arith.negf %213 : vector<16x128xf32>
    %215 = math.exp %214 : vector<16x128xf32>
    %cst_59 = arith.constant 1.000000e+00 : f32
    %216 = vector.broadcast %cst_59 : f32 to vector<16x128xf32>
    %217 = arith.addf %216, %215 : vector<16x128xf32>
    %218 = arith.divf %216, %217 : vector<16x128xf32>
    %219 = arith.mulf %210, %185 : vector<16x128xf32>
    %220 = arith.mulf %204, %212 : vector<16x128xf32>
    %221 = arith.addf %219, %220 : vector<16x128xf32>
    %222 = math.tanh %221 : vector<16x128xf32>
    %223 = arith.mulf %218, %222 : vector<16x128xf32>
    %224 = arith.truncf %223 : vector<16x128xf32> to vector<16x128xbf16>
    %225 = arith.index_cast %c5_i32 : i32 to index
    %c0_60 = arith.constant 0 : index
    %c0_61 = arith.constant 0 : index
    %226 = vector.load %arg10[%225, %c0_60, %c0_61] : memref<8x16x128xbf16, #tpu.memory_space<vmem>>, vector<1x16x128xbf16>
    %227 = vector.shape_cast %226 : vector<1x16x128xbf16> to vector<16x128xbf16>
    %228 = vector.shape_cast %224 : vector<16x128xbf16> to vector<1x16x128xbf16>
    tpu.vector_store %arg10[%225, %c0_60, %c0_61], %228 {strides = array<i32>} : memref<8x16x128xbf16, #tpu.memory_space<vmem>>, vector<1x16x128xbf16>,
    %c6_i32 = arith.constant 6 : i32
    %229 = arith.index_cast %c6_i32 : i32 to index
    %c0_62 = arith.constant 0 : index
    %c0_63 = arith.constant 0 : index
    %230 = vector.load %arg9[%229, %c0_62, %c0_63] : memref<8x16x512xf32, #tpu.memory_space<vmem>>, vector<1x16x512xf32>
    %231 = vector.shape_cast %230 : vector<1x16x512xf32> to vector<16x512xf32>
    %232 = arith.truncf %223 : vector<16x128xf32> to vector<16x128xbf16>
    %cst_64 = arith.constant dense<0.000000e+00> : vector<16x512xf32>
    %233 = tpu.matmul %232, %11, %cst_64 {dimension_numbers = #tpu.dot_dimension_numbers<[1], [0], [0], [1], [0, 0, 1, 1], [], []>} : vector<16x128xbf16>, vector<128x512xbf16>, vector<16x512xf32> -> vector<16x512xf32>
    %234 = arith.addf %231, %233 : vector<16x512xf32>
    %235 = vector.extract_strided_slice %234 {offsets = [0, 0], sizes = [16, 128], strides = [1, 1]} : vector<16x512xf32> to vector<16x128xf32>
    %236 = arith.negf %235 : vector<16x128xf32>
    %237 = math.exp %236 : vector<16x128xf32>
    %cst_65 = arith.constant 1.000000e+00 : f32
    %238 = vector.broadcast %cst_65 : f32 to vector<16x128xf32>
    %239 = arith.addf %238, %237 : vector<16x128xf32>
    %240 = arith.divf %238, %239 : vector<16x128xf32>
    %241 = vector.extract_strided_slice %234 {offsets = [0, 128], sizes = [16, 128], strides = [1, 1]} : vector<16x512xf32> to vector<16x128xf32>
    %242 = arith.negf %241 : vector<16x128xf32>
    %243 = math.exp %242 : vector<16x128xf32>
    %cst_66 = arith.constant 1.000000e+00 : f32
    %244 = vector.broadcast %cst_66 : f32 to vector<16x128xf32>
    %245 = arith.addf %244, %243 : vector<16x128xf32>
    %246 = arith.divf %244, %245 : vector<16x128xf32>
    %247 = vector.extract_strided_slice %234 {offsets = [0, 256], sizes = [16, 128], strides = [1, 1]} : vector<16x512xf32> to vector<16x128xf32>
    %248 = math.tanh %247 : vector<16x128xf32>
    %249 = vector.extract_strided_slice %234 {offsets = [0, 384], sizes = [16, 128], strides = [1, 1]} : vector<16x512xf32> to vector<16x128xf32>
    %250 = arith.negf %249 : vector<16x128xf32>
    %251 = math.exp %250 : vector<16x128xf32>
    %cst_67 = arith.constant 1.000000e+00 : f32
    %252 = vector.broadcast %cst_67 : f32 to vector<16x128xf32>
    %253 = arith.addf %252, %251 : vector<16x128xf32>
    %254 = arith.divf %252, %253 : vector<16x128xf32>
    %255 = arith.mulf %246, %221 : vector<16x128xf32>
    %256 = arith.mulf %240, %248 : vector<16x128xf32>
    %257 = arith.addf %255, %256 : vector<16x128xf32>
    %258 = math.tanh %257 : vector<16x128xf32>
    %259 = arith.mulf %254, %258 : vector<16x128xf32>
    %260 = arith.truncf %259 : vector<16x128xf32> to vector<16x128xbf16>
    %261 = arith.index_cast %c6_i32 : i32 to index
    %c0_68 = arith.constant 0 : index
    %c0_69 = arith.constant 0 : index
    %262 = vector.load %arg10[%261, %c0_68, %c0_69] : memref<8x16x128xbf16, #tpu.memory_space<vmem>>, vector<1x16x128xbf16>
    %263 = vector.shape_cast %262 : vector<1x16x128xbf16> to vector<16x128xbf16>
    %264 = vector.shape_cast %260 : vector<16x128xbf16> to vector<1x16x128xbf16>
    tpu.vector_store %arg10[%261, %c0_68, %c0_69], %264 {strides = array<i32>} : memref<8x16x128xbf16, #tpu.memory_space<vmem>>, vector<1x16x128xbf16>,
    %c7_i32 = arith.constant 7 : i32
    %265 = arith.index_cast %c7_i32 : i32 to index
    %c0_70 = arith.constant 0 : index
    %c0_71 = arith.constant 0 : index
    %266 = vector.load %arg9[%265, %c0_70, %c0_71] : memref<8x16x512xf32, #tpu.memory_space<vmem>>, vector<1x16x512xf32>
    %267 = vector.shape_cast %266 : vector<1x16x512xf32> to vector<16x512xf32>
    %268 = arith.truncf %259 : vector<16x128xf32> to vector<16x128xbf16>
    %cst_72 = arith.constant dense<0.000000e+00> : vector<16x512xf32>
    %269 = tpu.matmul %268, %11, %cst_72 {dimension_numbers = #tpu.dot_dimension_numbers<[1], [0], [0], [1], [0, 0, 1, 1], [], []>} : vector<16x128xbf16>, vector<128x512xbf16>, vector<16x512xf32> -> vector<16x512xf32>
    %270 = arith.addf %267, %269 : vector<16x512xf32>
    %271 = vector.extract_strided_slice %270 {offsets = [0, 0], sizes = [16, 128], strides = [1, 1]} : vector<16x512xf32> to vector<16x128xf32>
    %272 = arith.negf %271 : vector<16x128xf32>
    %273 = math.exp %272 : vector<16x128xf32>
    %cst_73 = arith.constant 1.000000e+00 : f32
    %274 = vector.broadcast %cst_73 : f32 to vector<16x128xf32>
    %275 = arith.addf %274, %273 : vector<16x128xf32>
    %276 = arith.divf %274, %275 : vector<16x128xf32>
    %277 = vector.extract_strided_slice %270 {offsets = [0, 128], sizes = [16, 128], strides = [1, 1]} : vector<16x512xf32> to vector<16x128xf32>
    %278 = arith.negf %277 : vector<16x128xf32>
    %279 = math.exp %278 : vector<16x128xf32>
    %cst_74 = arith.constant 1.000000e+00 : f32
    %280 = vector.broadcast %cst_74 : f32 to vector<16x128xf32>
    %281 = arith.addf %280, %279 : vector<16x128xf32>
    %282 = arith.divf %280, %281 : vector<16x128xf32>
    %283 = vector.extract_strided_slice %270 {offsets = [0, 256], sizes = [16, 128], strides = [1, 1]} : vector<16x512xf32> to vector<16x128xf32>
    %284 = math.tanh %283 : vector<16x128xf32>
    %285 = vector.extract_strided_slice %270 {offsets = [0, 384], sizes = [16, 128], strides = [1, 1]} : vector<16x512xf32> to vector<16x128xf32>
    %286 = arith.negf %285 : vector<16x128xf32>
    %287 = math.exp %286 : vector<16x128xf32>
    %cst_75 = arith.constant 1.000000e+00 : f32
    %288 = vector.broadcast %cst_75 : f32 to vector<16x128xf32>
    %289 = arith.addf %288, %287 : vector<16x128xf32>
    %290 = arith.divf %288, %289 : vector<16x128xf32>
    %291 = arith.mulf %282, %257 : vector<16x128xf32>
    %292 = arith.mulf %276, %284 : vector<16x128xf32>
    %293 = arith.addf %291, %292 : vector<16x128xf32>
    %294 = math.tanh %293 : vector<16x128xf32>
    %295 = arith.mulf %290, %294 : vector<16x128xf32>
    %296 = arith.truncf %295 : vector<16x128xf32> to vector<16x128xbf16>
    %297 = arith.index_cast %c7_i32 : i32 to index
    %c0_76 = arith.constant 0 : index
    %c0_77 = arith.constant 0 : index
    %298 = vector.load %arg10[%297, %c0_76, %c0_77] : memref<8x16x128xbf16, #tpu.memory_space<vmem>>, vector<1x16x128xbf16>
    %299 = vector.shape_cast %298 : vector<1x16x128xbf16> to vector<16x128xbf16>
    %300 = vector.shape_cast %296 : vector<16x128xbf16> to vector<1x16x128xbf16>
    tpu.vector_store %arg10[%297, %c0_76, %c0_77], %300 {strides = array<i32>} : memref<8x16x128xbf16, #tpu.memory_space<vmem>>, vector<1x16x128xbf16>,
    %c8_i32 = arith.constant 8 : i32
    %c0_78 = arith.constant 0 : index
    %c0_79 = arith.constant 0 : index
    %c0_80 = arith.constant 0 : index
    %301 = vector.load %arg10[%c0_78, %c0_79, %c0_80] : memref<8x16x128xbf16, #tpu.memory_space<vmem>>, vector<8x16x128xbf16>
    %302 = vector.shape_cast %301 : vector<8x16x128xbf16> to vector<128x128xbf16>
    %c0_81 = arith.constant 0 : index
    %c0_82 = arith.constant 0 : index
    %c0_83 = arith.constant 0 : index
    %303 = vector.load %arg3[%c0_81, %c0_82, %c0_83] : memref<1x128x512xbf16, #tpu.memory_space<vmem>>, vector<1x128x512xbf16>
    %304 = vector.shape_cast %303 : vector<1x128x512xbf16> to vector<128x512xbf16>
    %cst_84 = arith.constant dense<0.000000e+00> : vector<128x512xf32>
    %305 = tpu.matmul %302, %304, %cst_84 {dimension_numbers = #tpu.dot_dimension_numbers<[1], [0], [0], [1], [0, 0, 1, 1], [], []>} : vector<128x128xbf16>, vector<128x512xbf16>, vector<128x512xf32> -> vector<128x512xf32>
    %c1 = arith.constant 1 : index
    %c0_85 = arith.constant 0 : index
    %c0_86 = arith.constant 0 : index
    %306 = vector.load %arg5[%c1, %c0_85, %c0_86] : memref<2x1x512xf32, #tpu.memory_space<vmem>>, vector<1x1x512xf32>
    %307 = vector.shape_cast %306 : vector<1x1x512xf32> to vector<1x512xf32>
    %308 = vector.broadcast %307 : vector<1x512xf32> to vector<128x512xf32>
    %309 = arith.addf %305, %308 : vector<128x512xf32>
    %310 = vector.shape_cast %309 : vector<128x512xf32> to vector<8x16x512xf32>
    %c0_87 = arith.constant 0 : index
    %c0_88 = arith.constant 0 : index
    %c0_89 = arith.constant 0 : index
    %311 = vector.load %arg9[%c0_87, %c0_88, %c0_89] : memref<8x16x512xf32, #tpu.memory_space<vmem>>, vector<8x16x512xf32>
    tpu.vector_store %arg9[%c0_87, %c0_88, %c0_89], %310 {strides = array<i32>} : memref<8x16x512xf32, #tpu.memory_space<vmem>>, vector<8x16x512xf32>,
    %c1_90 = arith.constant 1 : index
    %c0_91 = arith.constant 0 : index
    %c0_92 = arith.constant 0 : index
    %312 = vector.load %arg4[%c1_90, %c0_91, %c0_92] : memref<2x128x512xbf16, #tpu.memory_space<vmem>>, vector<1x128x512xbf16>
    %313 = vector.shape_cast %312 : vector<1x128x512xbf16> to vector<128x512xbf16>
    %cst_93 = arith.constant 0.000000e+00 : f32
    %314 = vector.broadcast %cst_93 : f32 to vector<16x128xf32>
    %c0_i32_94 = arith.constant 0 : i32
    %315 = arith.index_cast %c0_i32_94 : i32 to index
    %c0_95 = arith.constant 0 : index
    %c0_96 = arith.constant 0 : index
    %316 = vector.load %arg9[%315, %c0_95, %c0_96] : memref<8x16x512xf32, #tpu.memory_space<vmem>>, vector<1x16x512xf32>
    %317 = vector.shape_cast %316 : vector<1x16x512xf32> to vector<16x512xf32>
    %318 = arith.truncf %314 : vector<16x128xf32> to vector<16x128xbf16>
    %cst_97 = arith.constant dense<0.000000e+00> : vector<16x512xf32>
    %319 = tpu.matmul %318, %313, %cst_97 {dimension_numbers = #tpu.dot_dimension_numbers<[1], [0], [0], [1], [0, 0, 1, 1], [], []>} : vector<16x128xbf16>, vector<128x512xbf16>, vector<16x512xf32> -> vector<16x512xf32>
    %320 = arith.addf %317, %319 : vector<16x512xf32>
    %321 = vector.extract_strided_slice %320 {offsets = [0, 0], sizes = [16, 128], strides = [1, 1]} : vector<16x512xf32> to vector<16x128xf32>
    %322 = arith.negf %321 : vector<16x128xf32>
    %323 = math.exp %322 : vector<16x128xf32>
    %cst_98 = arith.constant 1.000000e+00 : f32
    %324 = vector.broadcast %cst_98 : f32 to vector<16x128xf32>
    %325 = arith.addf %324, %323 : vector<16x128xf32>
    %326 = arith.divf %324, %325 : vector<16x128xf32>
    %327 = vector.extract_strided_slice %320 {offsets = [0, 128], sizes = [16, 128], strides = [1, 1]} : vector<16x512xf32> to vector<16x128xf32>
    %328 = arith.negf %327 : vector<16x128xf32>
    %329 = math.exp %328 : vector<16x128xf32>
    %cst_99 = arith.constant 1.000000e+00 : f32
    %330 = vector.broadcast %cst_99 : f32 to vector<16x128xf32>
    %331 = arith.addf %330, %329 : vector<16x128xf32>
    %332 = arith.divf %330, %331 : vector<16x128xf32>
    %333 = vector.extract_strided_slice %320 {offsets = [0, 256], sizes = [16, 128], strides = [1, 1]} : vector<16x512xf32> to vector<16x128xf32>
    %334 = math.tanh %333 : vector<16x128xf32>
    %335 = vector.extract_strided_slice %320 {offsets = [0, 384], sizes = [16, 128], strides = [1, 1]} : vector<16x512xf32> to vector<16x128xf32>
    %336 = arith.negf %335 : vector<16x128xf32>
    %337 = math.exp %336 : vector<16x128xf32>
    %cst_100 = arith.constant 1.000000e+00 : f32
    %338 = vector.broadcast %cst_100 : f32 to vector<16x128xf32>
    %339 = arith.addf %338, %337 : vector<16x128xf32>
    %340 = arith.divf %338, %339 : vector<16x128xf32>
    %341 = arith.mulf %332, %314 : vector<16x128xf32>
    %342 = arith.mulf %326, %334 : vector<16x128xf32>
    %343 = arith.addf %341, %342 : vector<16x128xf32>
    %344 = math.tanh %343 : vector<16x128xf32>
    %345 = arith.mulf %340, %344 : vector<16x128xf32>
    %c1_i32_101 = arith.constant 1 : i32
    %346 = arith.index_cast %c1_i32_101 : i32 to index
    %c0_102 = arith.constant 0 : index
    %c0_103 = arith.constant 0 : index
    %347 = vector.load %arg9[%346, %c0_102, %c0_103] : memref<8x16x512xf32, #tpu.memory_space<vmem>>, vector<1x16x512xf32>
    %348 = vector.shape_cast %347 : vector<1x16x512xf32> to vector<16x512xf32>
    %349 = arith.truncf %345 : vector<16x128xf32> to vector<16x128xbf16>
    %cst_104 = arith.constant dense<0.000000e+00> : vector<16x512xf32>
    %350 = tpu.matmul %349, %313, %cst_104 {dimension_numbers = #tpu.dot_dimension_numbers<[1], [0], [0], [1], [0, 0, 1, 1], [], []>} : vector<16x128xbf16>, vector<128x512xbf16>, vector<16x512xf32> -> vector<16x512xf32>
    %351 = arith.addf %348, %350 : vector<16x512xf32>
    %352 = vector.extract_strided_slice %351 {offsets = [0, 0], sizes = [16, 128], strides = [1, 1]} : vector<16x512xf32> to vector<16x128xf32>
    %353 = arith.negf %352 : vector<16x128xf32>
    %354 = math.exp %353 : vector<16x128xf32>
    %cst_105 = arith.constant 1.000000e+00 : f32
    %355 = vector.broadcast %cst_105 : f32 to vector<16x128xf32>
    %356 = arith.addf %355, %354 : vector<16x128xf32>
    %357 = arith.divf %355, %356 : vector<16x128xf32>
    %358 = vector.extract_strided_slice %351 {offsets = [0, 128], sizes = [16, 128], strides = [1, 1]} : vector<16x512xf32> to vector<16x128xf32>
    %359 = arith.negf %358 : vector<16x128xf32>
    %360 = math.exp %359 : vector<16x128xf32>
    %cst_106 = arith.constant 1.000000e+00 : f32
    %361 = vector.broadcast %cst_106 : f32 to vector<16x128xf32>
    %362 = arith.addf %361, %360 : vector<16x128xf32>
    %363 = arith.divf %361, %362 : vector<16x128xf32>
    %364 = vector.extract_strided_slice %351 {offsets = [0, 256], sizes = [16, 128], strides = [1, 1]} : vector<16x512xf32> to vector<16x128xf32>
    %365 = math.tanh %364 : vector<16x128xf32>
    %366 = vector.extract_strided_slice %351 {offsets = [0, 384], sizes = [16, 128], strides = [1, 1]} : vector<16x512xf32> to vector<16x128xf32>
    %367 = arith.negf %366 : vector<16x128xf32>
    %368 = math.exp %367 : vector<16x128xf32>
    %cst_107 = arith.constant 1.000000e+00 : f32
    %369 = vector.broadcast %cst_107 : f32 to vector<16x128xf32>
    %370 = arith.addf %369, %368 : vector<16x128xf32>
    %371 = arith.divf %369, %370 : vector<16x128xf32>
    %372 = arith.mulf %363, %343 : vector<16x128xf32>
    %373 = arith.mulf %357, %365 : vector<16x128xf32>
    %374 = arith.addf %372, %373 : vector<16x128xf32>
    %375 = math.tanh %374 : vector<16x128xf32>
    %376 = arith.mulf %371, %375 : vector<16x128xf32>
    %c2_i32_108 = arith.constant 2 : i32
    %377 = arith.index_cast %c2_i32_108 : i32 to index
    %c0_109 = arith.constant 0 : index
    %c0_110 = arith.constant 0 : index
    %378 = vector.load %arg9[%377, %c0_109, %c0_110] : memref<8x16x512xf32, #tpu.memory_space<vmem>>, vector<1x16x512xf32>
    %379 = vector.shape_cast %378 : vector<1x16x512xf32> to vector<16x512xf32>
    %380 = arith.truncf %376 : vector<16x128xf32> to vector<16x128xbf16>
    %cst_111 = arith.constant dense<0.000000e+00> : vector<16x512xf32>
    %381 = tpu.matmul %380, %313, %cst_111 {dimension_numbers = #tpu.dot_dimension_numbers<[1], [0], [0], [1], [0, 0, 1, 1], [], []>} : vector<16x128xbf16>, vector<128x512xbf16>, vector<16x512xf32> -> vector<16x512xf32>
    %382 = arith.addf %379, %381 : vector<16x512xf32>
    %383 = vector.extract_strided_slice %382 {offsets = [0, 0], sizes = [16, 128], strides = [1, 1]} : vector<16x512xf32> to vector<16x128xf32>
    %384 = arith.negf %383 : vector<16x128xf32>
    %385 = math.exp %384 : vector<16x128xf32>
    %cst_112 = arith.constant 1.000000e+00 : f32
    %386 = vector.broadcast %cst_112 : f32 to vector<16x128xf32>
    %387 = arith.addf %386, %385 : vector<16x128xf32>
    %388 = arith.divf %386, %387 : vector<16x128xf32>
    %389 = vector.extract_strided_slice %382 {offsets = [0, 128], sizes = [16, 128], strides = [1, 1]} : vector<16x512xf32> to vector<16x128xf32>
    %390 = arith.negf %389 : vector<16x128xf32>
    %391 = math.exp %390 : vector<16x128xf32>
    %cst_113 = arith.constant 1.000000e+00 : f32
    %392 = vector.broadcast %cst_113 : f32 to vector<16x128xf32>
    %393 = arith.addf %392, %391 : vector<16x128xf32>
    %394 = arith.divf %392, %393 : vector<16x128xf32>
    %395 = vector.extract_strided_slice %382 {offsets = [0, 256], sizes = [16, 128], strides = [1, 1]} : vector<16x512xf32> to vector<16x128xf32>
    %396 = math.tanh %395 : vector<16x128xf32>
    %397 = vector.extract_strided_slice %382 {offsets = [0, 384], sizes = [16, 128], strides = [1, 1]} : vector<16x512xf32> to vector<16x128xf32>
    %398 = arith.negf %397 : vector<16x128xf32>
    %399 = math.exp %398 : vector<16x128xf32>
    %cst_114 = arith.constant 1.000000e+00 : f32
    %400 = vector.broadcast %cst_114 : f32 to vector<16x128xf32>
    %401 = arith.addf %400, %399 : vector<16x128xf32>
    %402 = arith.divf %400, %401 : vector<16x128xf32>
    %403 = arith.mulf %394, %374 : vector<16x128xf32>
    %404 = arith.mulf %388, %396 : vector<16x128xf32>
    %405 = arith.addf %403, %404 : vector<16x128xf32>
    %406 = math.tanh %405 : vector<16x128xf32>
    %407 = arith.mulf %402, %406 : vector<16x128xf32>
    %c3_i32_115 = arith.constant 3 : i32
    %408 = arith.index_cast %c3_i32_115 : i32 to index
    %c0_116 = arith.constant 0 : index
    %c0_117 = arith.constant 0 : index
    %409 = vector.load %arg9[%408, %c0_116, %c0_117] : memref<8x16x512xf32, #tpu.memory_space<vmem>>, vector<1x16x512xf32>
    %410 = vector.shape_cast %409 : vector<1x16x512xf32> to vector<16x512xf32>
    %411 = arith.truncf %407 : vector<16x128xf32> to vector<16x128xbf16>
    %cst_118 = arith.constant dense<0.000000e+00> : vector<16x512xf32>
    %412 = tpu.matmul %411, %313, %cst_118 {dimension_numbers = #tpu.dot_dimension_numbers<[1], [0], [0], [1], [0, 0, 1, 1], [], []>} : vector<16x128xbf16>, vector<128x512xbf16>, vector<16x512xf32> -> vector<16x512xf32>
    %413 = arith.addf %410, %412 : vector<16x512xf32>
    %414 = vector.extract_strided_slice %413 {offsets = [0, 0], sizes = [16, 128], strides = [1, 1]} : vector<16x512xf32> to vector<16x128xf32>
    %415 = arith.negf %414 : vector<16x128xf32>
    %416 = math.exp %415 : vector<16x128xf32>
    %cst_119 = arith.constant 1.000000e+00 : f32
    %417 = vector.broadcast %cst_119 : f32 to vector<16x128xf32>
    %418 = arith.addf %417, %416 : vector<16x128xf32>
    %419 = arith.divf %417, %418 : vector<16x128xf32>
    %420 = vector.extract_strided_slice %413 {offsets = [0, 128], sizes = [16, 128], strides = [1, 1]} : vector<16x512xf32> to vector<16x128xf32>
    %421 = arith.negf %420 : vector<16x128xf32>
    %422 = math.exp %421 : vector<16x128xf32>
    %cst_120 = arith.constant 1.000000e+00 : f32
    %423 = vector.broadcast %cst_120 : f32 to vector<16x128xf32>
    %424 = arith.addf %423, %422 : vector<16x128xf32>
    %425 = arith.divf %423, %424 : vector<16x128xf32>
    %426 = vector.extract_strided_slice %413 {offsets = [0, 256], sizes = [16, 128], strides = [1, 1]} : vector<16x512xf32> to vector<16x128xf32>
    %427 = math.tanh %426 : vector<16x128xf32>
    %428 = vector.extract_strided_slice %413 {offsets = [0, 384], sizes = [16, 128], strides = [1, 1]} : vector<16x512xf32> to vector<16x128xf32>
    %429 = arith.negf %428 : vector<16x128xf32>
    %430 = math.exp %429 : vector<16x128xf32>
    %cst_121 = arith.constant 1.000000e+00 : f32
    %431 = vector.broadcast %cst_121 : f32 to vector<16x128xf32>
    %432 = arith.addf %431, %430 : vector<16x128xf32>
    %433 = arith.divf %431, %432 : vector<16x128xf32>
    %434 = arith.mulf %425, %405 : vector<16x128xf32>
    %435 = arith.mulf %419, %427 : vector<16x128xf32>
    %436 = arith.addf %434, %435 : vector<16x128xf32>
    %437 = math.tanh %436 : vector<16x128xf32>
    %438 = arith.mulf %433, %437 : vector<16x128xf32>
    %c4_i32_122 = arith.constant 4 : i32
    %439 = arith.index_cast %c4_i32_122 : i32 to index
    %c0_123 = arith.constant 0 : index
    %c0_124 = arith.constant 0 : index
    %440 = vector.load %arg9[%439, %c0_123, %c0_124] : memref<8x16x512xf32, #tpu.memory_space<vmem>>, vector<1x16x512xf32>
    %441 = vector.shape_cast %440 : vector<1x16x512xf32> to vector<16x512xf32>
    %442 = arith.truncf %438 : vector<16x128xf32> to vector<16x128xbf16>
    %cst_125 = arith.constant dense<0.000000e+00> : vector<16x512xf32>
    %443 = tpu.matmul %442, %313, %cst_125 {dimension_numbers = #tpu.dot_dimension_numbers<[1], [0], [0], [1], [0, 0, 1, 1], [], []>} : vector<16x128xbf16>, vector<128x512xbf16>, vector<16x512xf32> -> vector<16x512xf32>
    %444 = arith.addf %441, %443 : vector<16x512xf32>
    %445 = vector.extract_strided_slice %444 {offsets = [0, 0], sizes = [16, 128], strides = [1, 1]} : vector<16x512xf32> to vector<16x128xf32>
    %446 = arith.negf %445 : vector<16x128xf32>
    %447 = math.exp %446 : vector<16x128xf32>
    %cst_126 = arith.constant 1.000000e+00 : f32
    %448 = vector.broadcast %cst_126 : f32 to vector<16x128xf32>
    %449 = arith.addf %448, %447 : vector<16x128xf32>
    %450 = arith.divf %448, %449 : vector<16x128xf32>
    %451 = vector.extract_strided_slice %444 {offsets = [0, 128], sizes = [16, 128], strides = [1, 1]} : vector<16x512xf32> to vector<16x128xf32>
    %452 = arith.negf %451 : vector<16x128xf32>
    %453 = math.exp %452 : vector<16x128xf32>
    %cst_127 = arith.constant 1.000000e+00 : f32
    %454 = vector.broadcast %cst_127 : f32 to vector<16x128xf32>
    %455 = arith.addf %454, %453 : vector<16x128xf32>
    %456 = arith.divf %454, %455 : vector<16x128xf32>
    %457 = vector.extract_strided_slice %444 {offsets = [0, 256], sizes = [16, 128], strides = [1, 1]} : vector<16x512xf32> to vector<16x128xf32>
    %458 = math.tanh %457 : vector<16x128xf32>
    %459 = vector.extract_strided_slice %444 {offsets = [0, 384], sizes = [16, 128], strides = [1, 1]} : vector<16x512xf32> to vector<16x128xf32>
    %460 = arith.negf %459 : vector<16x128xf32>
    %461 = math.exp %460 : vector<16x128xf32>
    %cst_128 = arith.constant 1.000000e+00 : f32
    %462 = vector.broadcast %cst_128 : f32 to vector<16x128xf32>
    %463 = arith.addf %462, %461 : vector<16x128xf32>
    %464 = arith.divf %462, %463 : vector<16x128xf32>
    %465 = arith.mulf %456, %436 : vector<16x128xf32>
    %466 = arith.mulf %450, %458 : vector<16x128xf32>
    %467 = arith.addf %465, %466 : vector<16x128xf32>
    %468 = math.tanh %467 : vector<16x128xf32>
    %469 = arith.mulf %464, %468 : vector<16x128xf32>
    %c5_i32_129 = arith.constant 5 : i32
    %470 = arith.index_cast %c5_i32_129 : i32 to index
    %c0_130 = arith.constant 0 : index
    %c0_131 = arith.constant 0 : index
    %471 = vector.load %arg9[%470, %c0_130, %c0_131] : memref<8x16x512xf32, #tpu.memory_space<vmem>>, vector<1x16x512xf32>
    %472 = vector.shape_cast %471 : vector<1x16x512xf32> to vector<16x512xf32>
    %473 = arith.truncf %469 : vector<16x128xf32> to vector<16x128xbf16>
    %cst_132 = arith.constant dense<0.000000e+00> : vector<16x512xf32>
    %474 = tpu.matmul %473, %313, %cst_132 {dimension_numbers = #tpu.dot_dimension_numbers<[1], [0], [0], [1], [0, 0, 1, 1], [], []>} : vector<16x128xbf16>, vector<128x512xbf16>, vector<16x512xf32> -> vector<16x512xf32>
    %475 = arith.addf %472, %474 : vector<16x512xf32>
    %476 = vector.extract_strided_slice %475 {offsets = [0, 0], sizes = [16, 128], strides = [1, 1]} : vector<16x512xf32> to vector<16x128xf32>
    %477 = arith.negf %476 : vector<16x128xf32>
    %478 = math.exp %477 : vector<16x128xf32>
    %cst_133 = arith.constant 1.000000e+00 : f32
    %479 = vector.broadcast %cst_133 : f32 to vector<16x128xf32>
    %480 = arith.addf %479, %478 : vector<16x128xf32>
    %481 = arith.divf %479, %480 : vector<16x128xf32>
    %482 = vector.extract_strided_slice %475 {offsets = [0, 128], sizes = [16, 128], strides = [1, 1]} : vector<16x512xf32> to vector<16x128xf32>
    %483 = arith.negf %482 : vector<16x128xf32>
    %484 = math.exp %483 : vector<16x128xf32>
    %cst_134 = arith.constant 1.000000e+00 : f32
    %485 = vector.broadcast %cst_134 : f32 to vector<16x128xf32>
    %486 = arith.addf %485, %484 : vector<16x128xf32>
    %487 = arith.divf %485, %486 : vector<16x128xf32>
    %488 = vector.extract_strided_slice %475 {offsets = [0, 256], sizes = [16, 128], strides = [1, 1]} : vector<16x512xf32> to vector<16x128xf32>
    %489 = math.tanh %488 : vector<16x128xf32>
    %490 = vector.extract_strided_slice %475 {offsets = [0, 384], sizes = [16, 128], strides = [1, 1]} : vector<16x512xf32> to vector<16x128xf32>
    %491 = arith.negf %490 : vector<16x128xf32>
    %492 = math.exp %491 : vector<16x128xf32>
    %cst_135 = arith.constant 1.000000e+00 : f32
    %493 = vector.broadcast %cst_135 : f32 to vector<16x128xf32>
    %494 = arith.addf %493, %492 : vector<16x128xf32>
    %495 = arith.divf %493, %494 : vector<16x128xf32>
    %496 = arith.mulf %487, %467 : vector<16x128xf32>
    %497 = arith.mulf %481, %489 : vector<16x128xf32>
    %498 = arith.addf %496, %497 : vector<16x128xf32>
    %499 = math.tanh %498 : vector<16x128xf32>
    %500 = arith.mulf %495, %499 : vector<16x128xf32>
    %c6_i32_136 = arith.constant 6 : i32
    %501 = arith.index_cast %c6_i32_136 : i32 to index
    %c0_137 = arith.constant 0 : index
    %c0_138 = arith.constant 0 : index
    %502 = vector.load %arg9[%501, %c0_137, %c0_138] : memref<8x16x512xf32, #tpu.memory_space<vmem>>, vector<1x16x512xf32>
    %503 = vector.shape_cast %502 : vector<1x16x512xf32> to vector<16x512xf32>
    %504 = arith.truncf %500 : vector<16x128xf32> to vector<16x128xbf16>
    %cst_139 = arith.constant dense<0.000000e+00> : vector<16x512xf32>
    %505 = tpu.matmul %504, %313, %cst_139 {dimension_numbers = #tpu.dot_dimension_numbers<[1], [0], [0], [1], [0, 0, 1, 1], [], []>} : vector<16x128xbf16>, vector<128x512xbf16>, vector<16x512xf32> -> vector<16x512xf32>
    %506 = arith.addf %503, %505 : vector<16x512xf32>
    %507 = vector.extract_strided_slice %506 {offsets = [0, 0], sizes = [16, 128], strides = [1, 1]} : vector<16x512xf32> to vector<16x128xf32>
    %508 = arith.negf %507 : vector<16x128xf32>
    %509 = math.exp %508 : vector<16x128xf32>
    %cst_140 = arith.constant 1.000000e+00 : f32
    %510 = vector.broadcast %cst_140 : f32 to vector<16x128xf32>
    %511 = arith.addf %510, %509 : vector<16x128xf32>
    %512 = arith.divf %510, %511 : vector<16x128xf32>
    %513 = vector.extract_strided_slice %506 {offsets = [0, 128], sizes = [16, 128], strides = [1, 1]} : vector<16x512xf32> to vector<16x128xf32>
    %514 = arith.negf %513 : vector<16x128xf32>
    %515 = math.exp %514 : vector<16x128xf32>
    %cst_141 = arith.constant 1.000000e+00 : f32
    %516 = vector.broadcast %cst_141 : f32 to vector<16x128xf32>
    %517 = arith.addf %516, %515 : vector<16x128xf32>
    %518 = arith.divf %516, %517 : vector<16x128xf32>
    %519 = vector.extract_strided_slice %506 {offsets = [0, 256], sizes = [16, 128], strides = [1, 1]} : vector<16x512xf32> to vector<16x128xf32>
    %520 = math.tanh %519 : vector<16x128xf32>
    %521 = vector.extract_strided_slice %506 {offsets = [0, 384], sizes = [16, 128], strides = [1, 1]} : vector<16x512xf32> to vector<16x128xf32>
    %522 = arith.negf %521 : vector<16x128xf32>
    %523 = math.exp %522 : vector<16x128xf32>
    %cst_142 = arith.constant 1.000000e+00 : f32
    %524 = vector.broadcast %cst_142 : f32 to vector<16x128xf32>
    %525 = arith.addf %524, %523 : vector<16x128xf32>
    %526 = arith.divf %524, %525 : vector<16x128xf32>
    %527 = arith.mulf %518, %498 : vector<16x128xf32>
    %528 = arith.mulf %512, %520 : vector<16x128xf32>
    %529 = arith.addf %527, %528 : vector<16x128xf32>
    %530 = math.tanh %529 : vector<16x128xf32>
    %531 = arith.mulf %526, %530 : vector<16x128xf32>
    %c7_i32_143 = arith.constant 7 : i32
    %532 = arith.index_cast %c7_i32_143 : i32 to index
    %c0_144 = arith.constant 0 : index
    %c0_145 = arith.constant 0 : index
    %533 = vector.load %arg9[%532, %c0_144, %c0_145] : memref<8x16x512xf32, #tpu.memory_space<vmem>>, vector<1x16x512xf32>
    %534 = vector.shape_cast %533 : vector<1x16x512xf32> to vector<16x512xf32>
    %535 = arith.truncf %531 : vector<16x128xf32> to vector<16x128xbf16>
    %cst_146 = arith.constant dense<0.000000e+00> : vector<16x512xf32>
    %536 = tpu.matmul %535, %313, %cst_146 {dimension_numbers = #tpu.dot_dimension_numbers<[1], [0], [0], [1], [0, 0, 1, 1], [], []>} : vector<16x128xbf16>, vector<128x512xbf16>, vector<16x512xf32> -> vector<16x512xf32>
    %537 = arith.addf %534, %536 : vector<16x512xf32>
    %538 = vector.extract_strided_slice %537 {offsets = [0, 0], sizes = [16, 128], strides = [1, 1]} : vector<16x512xf32> to vector<16x128xf32>
    %539 = arith.negf %538 : vector<16x128xf32>
    %540 = math.exp %539 : vector<16x128xf32>
    %cst_147 = arith.constant 1.000000e+00 : f32
    %541 = vector.broadcast %cst_147 : f32 to vector<16x128xf32>
    %542 = arith.addf %541, %540 : vector<16x128xf32>
    %543 = arith.divf %541, %542 : vector<16x128xf32>
    %544 = vector.extract_strided_slice %537 {offsets = [0, 128], sizes = [16, 128], strides = [1, 1]} : vector<16x512xf32> to vector<16x128xf32>
    %545 = arith.negf %544 : vector<16x128xf32>
    %546 = math.exp %545 : vector<16x128xf32>
    %cst_148 = arith.constant 1.000000e+00 : f32
    %547 = vector.broadcast %cst_148 : f32 to vector<16x128xf32>
    %548 = arith.addf %547, %546 : vector<16x128xf32>
    %549 = arith.divf %547, %548 : vector<16x128xf32>
    %550 = vector.extract_strided_slice %537 {offsets = [0, 256], sizes = [16, 128], strides = [1, 1]} : vector<16x512xf32> to vector<16x128xf32>
    %551 = math.tanh %550 : vector<16x128xf32>
    %552 = vector.extract_strided_slice %537 {offsets = [0, 384], sizes = [16, 128], strides = [1, 1]} : vector<16x512xf32> to vector<16x128xf32>
    %553 = arith.negf %552 : vector<16x128xf32>
    %554 = math.exp %553 : vector<16x128xf32>
    %cst_149 = arith.constant 1.000000e+00 : f32
    %555 = vector.broadcast %cst_149 : f32 to vector<16x128xf32>
    %556 = arith.addf %555, %554 : vector<16x128xf32>
    %557 = arith.divf %555, %556 : vector<16x128xf32>
    %558 = arith.mulf %549, %529 : vector<16x128xf32>
    %559 = arith.mulf %543, %551 : vector<16x128xf32>
    %560 = arith.addf %558, %559 : vector<16x128xf32>
    %561 = math.tanh %560 : vector<16x128xf32>
    %562 = arith.mulf %557, %561 : vector<16x128xf32>
    %c8_i32_150 = arith.constant 8 : i32
    %563 = arith.truncf %562 : vector<16x128xf32> to vector<16x128xbf16>
    %c0_151 = arith.constant 0 : index
    %c0_152 = arith.constant 0 : index
    %564 = vector.load %arg6[%c0_151, %c0_152] : memref<128x128xbf16, #tpu.memory_space<vmem>>, vector<128x128xbf16>
    %cst_153 = arith.constant dense<0.000000e+00> : vector<16x128xf32>
    %565 = tpu.matmul %563, %564, %cst_153 {dimension_numbers = #tpu.dot_dimension_numbers<[1], [0], [0], [1], [0, 0, 1, 1], [], []>} : vector<16x128xbf16>, vector<128x128xbf16>, vector<16x128xf32> -> vector<16x128xf32>
    %c0_154 = arith.constant 0 : index
    %c0_155 = arith.constant 0 : index
    %566 = vector.load %arg7[%c0_154, %c0_155] : memref<1x128xf32, #tpu.memory_space<vmem>>, vector<1x128xf32>
    %567 = vector.broadcast %566 : vector<1x128xf32> to vector<16x128xf32>
    %568 = arith.addf %565, %567 : vector<16x128xf32>
    %c0_156 = arith.constant 0 : index
    %c0_157 = arith.constant 0 : index
    %569 = vector.load %arg8[%c0_156, %c0_157] : memref<16x128xf32, #tpu.memory_space<vmem>>, vector<16x128xf32>
    tpu.vector_store %arg8[%c0_156, %c0_157], %568 {strides = array<i32>} : memref<16x128xf32, #tpu.memory_space<vmem>>, vector<16x128xf32>,
    return
  }
  func.func @transform_0(%arg0: i32) -> (i32, i32, i32) {
    %c0_i32 = arith.constant 0 : i32
    %c0_i32_0 = arith.constant 0 : i32
    %c0_i32_1 = arith.constant 0 : i32
    %c0_i32_2 = arith.constant 0 : i32
    return %c0_i32, %c0_i32_0, %c0_i32_1 : i32, i32, i32
  }
  func.func @transform_1(%arg0: i32) -> (i32, i32) {
    %c0_i32 = arith.constant 0 : i32
    %c0_i32_0 = arith.constant 0 : i32
    %c0_i32_1 = arith.constant 0 : i32
    return %c0_i32, %c0_i32_0 : i32, i32
  }
  func.func @transform_2(%arg0: i32) -> (i32, i32, i32) {
    %c0_i32 = arith.constant 0 : i32
    %c0_i32_0 = arith.constant 0 : i32
    %c0_i32_1 = arith.constant 0 : i32
    %c0_i32_2 = arith.constant 0 : i32
    return %c0_i32, %c0_i32_0, %c0_i32_1 : i32, i32, i32
  }
  func.func @transform_3(%arg0: i32) -> (i32, i32, i32) {
    %c0_i32 = arith.constant 0 : i32
    %c0_i32_0 = arith.constant 0 : i32
    %c0_i32_1 = arith.constant 0 : i32
    %c0_i32_2 = arith.constant 0 : i32
    return %c0_i32, %c0_i32_0, %c0_i32_1 : i32, i32, i32
  }
  func.func @transform_4(%arg0: i32) -> (i32, i32, i32) {
    %c0_i32 = arith.constant 0 : i32
    %c0_i32_0 = arith.constant 0 : i32
    %c0_i32_1 = arith.constant 0 : i32
    %c0_i32_2 = arith.constant 0 : i32
    return %c0_i32, %c0_i32_0, %c0_i32_1 : i32, i32, i32
  }
  func.func @transform_5(%arg0: i32) -> (i32, i32) {
    %c0_i32 = arith.constant 0 : i32
    %c0_i32_0 = arith.constant 0 : i32
    %c0_i32_1 = arith.constant 0 : i32
    return %c0_i32, %c0_i32_0 : i32, i32
  }
  func.func @transform_6(%arg0: i32) -> (i32, i32) {
    %c0_i32 = arith.constant 0 : i32
    %c0_i32_0 = arith.constant 0 : i32
    %c0_i32_1 = arith.constant 0 : i32
    return %c0_i32, %c0_i32_0 : i32, i32
  }
  func.func @transform_7(%arg0: i32) -> (i32, i32) {
    %c0_i32 = arith.constant 0 : i32
    %c0_i32_0 = arith.constant 0 : i32
    %c0_i32_1 = arith.constant 0 : i32
    return %c0_i32, %c0_i32_0 : i32, i32
  }
}

</mosaic_0001>

<bundles_post_ra>
// kernel: tpu_custom_call.1
= control target key start
LH: loop header
LB: loop body
LE: loop exit
PB: predicated region body
PF: predicated region fallthrough
CT: control target
= control target key end

     0   :  { %12 = vsyncpa [#allocation6], 0  ;;  %s6906_s0 = inlined_call_operand.hbm [shape: bf16[8,16,128], index: 0, kind: input, shape index: {}]   ;;  %s6907_s1 = inlined_call_operand.hbm [shape: bf16[128,512], index: 1, kind: input, shape index: {}]   ;;  %s6908_s2 = inlined_call_operand.hbm [shape: bf16[1,128,512], index: 2, kind: input, shape index: {}]   ;;  %s6909_s3 = inlined_call_operand.hbm [shape: bf16[2,128,512], index: 3, kind: input, shape index: {}]   ;;  %s6910_s4 = inlined_call_operand.vmem [shape: f32[2,1,512], index: 4, kind: input, shape index: {}]   ;;  %s6911_s5 = inlined_call_operand.hbm [shape: bf16[128,128], index: 5, kind: input, shape index: {}]   ;;  %s6912_s6 = inlined_call_operand.vmem [shape: f32[1,128], index: 6, kind: input, shape index: {}]   ;;  %s6913_s7 = inlined_call_operand.hbm [shape: f32[16,128], index: 7, kind: output, shape index: {}]  }
   0x1   :  { %13 = vsyncpa [#allocation9], 0 }
   0x2   :  { %14 = vsyncpa [#allocation12], 0 }
   0x3   :  { %15 = vsyncpa [#allocation7], 0  ;;  %s5599_s24 = smov [#allocation8]   ;;  %s5459_s28 = scalar_lea.hbm %s6907_s1, 4096 }
   0x4   :  { %s33_s25 = sshll.u32 %s5599_s24, 4  ;;  %p5460_p0 = scmp.ne.s32.totalorder %s6907_s1, %s5459_s28  ;;  %s34_s25 = int_to_ptr.vmem [resolvable:$true] %s33_s25 }
   0x5   :  { %p5463_p1 = scmp.lt.u32.totalorder %s5459_s28, %s6907_s1 }
   0x7   :  { %p5465_p2 = pnand %p5463_p1, %p5460_p0 }
   0x9   :  { %5468 = shalt.err (!%p5465_p2)
}
   0xa   :  { %s5469_s10 = scalar_lea.vmem %s34_s25, 4096  ;;  %p5474_p4 = scmp.lt.s32.totalorder %s34_s25, %s34_s25 }
   0xb   :  { %p5470_p3 = scmp.ne.s32.totalorder %s34_s25, %s5469_s10  ;;  %p5475_p5 = scmp.lt.s32.totalorder %s5469_s10, %s5469_s10 }
   0xd   :  { %p5476_p6 = por %p5475_p5, %p5474_p4 }
   0xf   :  { %p5477_p7 = pnand %p5476_p6, %p5470_p3 }
  0x11   :  { %5480 = shalt.err (!%p5477_p7)
}
  0x12   :  { %s5600_s11 = smov 256   ;;  %s5601_s12 = smov 16  }
  0x13   :  { %39 = dma.hbm_to_vmem [thread:$0]  %s6907_s1, 4096, %s34_s25, [#allocation9], %s5600_s11, %s5600_s11, %s5601_s12  }
  0x14   :  { %s5602_s15 = smov [#allocation11]   ;;  %s5603_s17 = smov [#allocation5]  }
  0x15   :  { %s57_s16 = sshll.u32 %s5602_s15, 4  ;;  %s21_s18 = sshll.u32 %s5603_s17, 4  ;;  %s58_s16 = int_to_ptr.vmem [resolvable:$true] %s57_s16  ;;  %s22_s18 = int_to_ptr.vmem [resolvable:$true] %s21_s18 }
  0x16   :  { %s5481_s21 = scalar_lea.hbm %s6909_s3, 8192 }
  0x17   :  { %p5482_p8 = scmp.ne.s32.totalorder %s6909_s3, %s5481_s21  ;;  %p5485_p9 = scmp.lt.u32.totalorder %s5481_s21, %s6909_s3 }
  0x19   :  { %p5487_p10 = pnand %p5485_p9, %p5482_p8 }
  0x1b   :  { %5490 = shalt.err (!%p5487_p10)
}
  0x1c   :  { %s5491_s1 = scalar_lea.vmem %s58_s16, 8192  ;;  %p5496_p12 = scmp.lt.s32.totalorder %s58_s16, %s58_s16 }
  0x1d   :  { %p5492_p11 = scmp.ne.s32.totalorder %s58_s16, %s5491_s1  ;;  %p5497_p13 = scmp.lt.s32.totalorder %s5491_s1, %s5491_s1 }
  0x1f   :  { %p5498_p0 = por %p5497_p13, %p5496_p12 }
  0x21   :  { %p5499_p1 = pnand %p5498_p0, %p5492_p11 }
  0x23   :  { %5502 = shalt.err (!%p5499_p1)
}
  0x24   :  { %63 = dma.hbm_to_vmem [thread:$0]  %s6909_s3, 8192, %s58_s16, [#allocation12], %s5600_s11, %s5600_s11, %s5601_s12  }
  0x25   :  { %s5503_s30 = scalar_lea.hbm %s6906_s0, 1024 }
  0x26   :  { %p5504_p2 = scmp.ne.s32.totalorder %s6906_s0, %s5503_s30  ;;  %p5507_p3 = scmp.lt.u32.totalorder %s5503_s30, %s6906_s0 }
  0x28   :  { %p5509_p4 = pnand %p5507_p3, %p5504_p2 }
  0x2a   :  { %5512 = shalt.err (!%p5509_p4)
}
  0x2b   :  { %s5513_s14 = scalar_lea.vmem %s22_s18, 1024  ;;  %p5518_p6 = scmp.lt.s32.totalorder %s22_s18, %s22_s18 }
  0x2c   :  { %p5514_p5 = scmp.ne.s32.totalorder %s22_s18, %s5513_s14  ;;  %p5519_p7 = scmp.lt.s32.totalorder %s5513_s14, %s5513_s14 }
  0x2e   :  { %p5520_p8 = por %p5519_p7, %p5518_p6 }
  0x30   :  { %p5521_p9 = pnand %p5520_p8, %p5514_p5 }
  0x32   :  { %5524 = shalt.err (!%p5521_p9)
}
  0x33   :  { %s5604_s3 = smov 64   ;;  %s5605_s15 = smov 4  }
  0x34   :  { %27 = dma.hbm_to_vmem [thread:$0]  %s6906_s0, 1024, %s22_s18, [#allocation6], %s5604_s3, %s5604_s3, %s5605_s15  }
  0x35   :  { %s5606_s19 = smov [#allocation10]   ;;  %s5607_s21 = smov [#allocation13]  }
  0x36   :  { %s45_s20 = sshll.u32 %s5606_s19, 4  ;;  %s71_s22 = sshll.u32 %s5607_s21, 4  ;;  %s46_s20 = int_to_ptr.vmem [resolvable:$true] %s45_s20  ;;  %s72_s22 = int_to_ptr.vmem [resolvable:$true] %s71_s22 }
  0x37   :  { %s5525_s26 = scalar_lea.hbm %s6908_s2, 4096 }
  0x38   :  { %p5526_p10 = scmp.ne.s32.totalorder %s6908_s2, %s5525_s26  ;;  %p5529_p11 = scmp.lt.u32.totalorder %s5525_s26, %s6908_s2 }
  0x3a   :  { %p5531_p12 = pnand %p5529_p11, %p5526_p10 }
  0x3c   :  { %5534 = shalt.err (!%p5531_p12)
}
  0x3d   :  { %s5535_s0 = scalar_lea.vmem %s46_s20, 4096  ;;  %p5540_p0 = scmp.lt.s32.totalorder %s46_s20, %s46_s20 }
  0x3e   :  { %p5536_p13 = scmp.ne.s32.totalorder %s46_s20, %s5535_s0  ;;  %p5541_p1 = scmp.lt.s32.totalorder %s5535_s0, %s5535_s0 }
  0x40   :  { %p5542_p2 = por %p5541_p1, %p5540_p0 }
  0x42   :  { %p5543_p3 = pnand %p5542_p2, %p5536_p13 }
  0x44   :  { %5546 = shalt.err (!%p5543_p3)
}
  0x45   :  { %51 = dma.hbm_to_vmem [thread:$0]  %s6908_s2, 4096, %s46_s20, [#allocation9], %s5600_s11, %s5600_s11, %s5601_s12  }
  0x46   :  { %s5547_s9 = scalar_lea.hbm %s6911_s5, 1024 }
  0x47   :  { %p5548_p4 = scmp.ne.s32.totalorder %s6911_s5, %s5547_s9  ;;  %p5551_p5 = scmp.lt.u32.totalorder %s5547_s9, %s6911_s5 }
  0x49   :  { %p5553_p6 = pnand %p5551_p5, %p5548_p4 }
  0x4b   :  { %5556 = shalt.err (!%p5553_p6)
}
  0x4c   :  { %s5557_s17 = scalar_lea.vmem %s72_s22, 1024  ;;  %p5562_p8 = scmp.lt.s32.totalorder %s72_s22, %s72_s22 }
  0x4d   :  { %p5558_p7 = scmp.ne.s32.totalorder %s72_s22, %s5557_s17  ;;  %p5563_p9 = scmp.lt.s32.totalorder %s5557_s17, %s5557_s17 }
  0x4f   :  { %p5564_p10 = por %p5563_p9, %p5562_p8 }
  0x51   :  { %p5565_p11 = pnand %p5564_p10, %p5558_p7 }
  0x53   :  { %5568 = shalt.err (!%p5565_p11)
}
  0x54   :  { %77 = dma.hbm_to_vmem [thread:$0]  %s6911_s5, 1024, %s72_s22, [#allocation12], %s5604_s3, %s5604_s3, %s5605_s15  }
  0x55   :  { %5591 = dma.done.wait [#allocation6], 1024  }
  0x56   :  { %5592 = vsyncadd [#allocation6], 4294966272 }
  0x57   :  { %5593 = dma.done.wait [#allocation9], 8192  }
  0x58   :  { %5594 = vsyncadd [#allocation9], 4294959104 }
  0x59   :  { %5595 = dma.done.wait [#allocation12], 9216  }
  0x5a   :  { %5596 = vsyncadd [#allocation12], 4294958080  ;;  %v5608_v0 = vmov 0   ;;  %v4675_v1 = vld [vmem:[#allocation8 + $0x4] ss:$16 sps:$4 sm:$0xff]   ;;  %v4727_v43 = vld [vmem:[#allocation5 + $0x8] sm:$0xff]  }
  0x5b   :  { %406 = vmatprep.mubr.bf16.mxu0 %v5608_v0  ;;  %519 = vmatprep.mubr.bf16.mxu1 %v5608_v0  ;;  %v4677_v2 = vld [vmem:[#allocation8 + $0xc] ss:$16 sps:$4 sm:$0xff]   ;;  %v4679_v3 = vld [vmem:[#allocation8] ss:$16 sps:$4 sm:$0xff]   ;;  %v4680_v4 = vld [vmem:[#allocation8 + $0x8] ss:$16 sps:$4 sm:$0xff]  }
  0x5c   :  { %374 = vmatprep.subr.bf16.mxu0 %v4675_v1  ;;  %487 = vmatprep.subr.bf16.mxu1 %v4677_v2  ;;  %v4681_v5 = vld [vmem:[#allocation8 + $0x24] ss:$16 sps:$4 sm:$0xff]   ;;  %v4683_v6 = vld [vmem:[#allocation8 + $0x2c] ss:$16 sps:$4 sm:$0xff]   ;;  %v4685_v7 = vld [vmem:[#allocation8 + $0x20] ss:$16 sps:$4 sm:$0xff]  }
  0x5d   :  { %375 = vmatpush1.bf16.msra.mxu0 %v4679_v3  ;;  %488 = vmatpush1.bf16.msra.mxu1 %v4680_v4  ;;  %v4686_v8 = vld [vmem:[#allocation8 + $0x28] ss:$16 sps:$4 sm:$0xff]   ;;  %v4687_v9 = vld [vmem:[#allocation8 + $0x44] ss:$16 sps:$4 sm:$0xff]   ;;  %v4689_v10 = vld [vmem:[#allocation8 + $0x4c] ss:$16 sps:$4 sm:$0xff]  }
  0x5e   :  { %376 = vmatprep.subr.bf16.mxu0 %v4681_v5  ;;  %489 = vmatprep.subr.bf16.mxu1 %v4683_v6  ;;  %v4691_v11 = vld [vmem:[#allocation8 + $0x40] ss:$16 sps:$4 sm:$0xff]   ;;  %v4692_v12 = vld [vmem:[#allocation8 + $0x48] ss:$16 sps:$4 sm:$0xff]   ;;  %v4693_v13 = vld [vmem:[#allocation8 + $0x64] ss:$16 sps:$4 sm:$0xff]  }
  0x5f   :  { %v4695_v14 = vld [vmem:[#allocation8 + $0x6c] ss:$16 sps:$4 sm:$0xff]   ;;  %v4697_v15 = vld [vmem:[#allocation8 + $0x60] ss:$16 sps:$4 sm:$0xff]   ;;  %v4698_v16 = vld [vmem:[#allocation8 + $0x68] ss:$16 sps:$4 sm:$0xff]  }
  0x60   :  { %v4699_v17 = vld [vmem:[#allocation8 + $0x84] ss:$16 sps:$4 sm:$0xff]   ;;  %v4701_v18 = vld [vmem:[#allocation8 + $0x8c] ss:$16 sps:$4 sm:$0xff]   ;;  %v4703_v19 = vld [vmem:[#allocation8 + $0x80] ss:$16 sps:$4 sm:$0xff]  }
  0x61   :  { %377 = vmatpush1.bf16.msra.mxu0 %v4685_v7  ;;  %490 = vmatpush1.bf16.msra.mxu1 %v4686_v8  ;;  %v4704_v20 = vld [vmem:[#allocation8 + $0x88] ss:$16 sps:$4 sm:$0xff]   ;;  %v4705_v21 = vld [vmem:[#allocation8 + $0xa4] ss:$16 sps:$4 sm:$0xff]   ;;  %v4707_v22 = vld [vmem:[#allocation8 + $0xac] ss:$16 sps:$4 sm:$0xff]  }
  0x62   :  { %378 = vmatprep.subr.bf16.mxu0 %v4687_v9  ;;  %491 = vmatprep.subr.bf16.mxu1 %v4689_v10  ;;  %v4709_v23 = vld [vmem:[#allocation8 + $0xa0] ss:$16 sps:$4 sm:$0xff]   ;;  %v4710_v24 = vld [vmem:[#allocation8 + $0xa8] ss:$16 sps:$4 sm:$0xff]   ;;  %v4711_v25 = vld [vmem:[#allocation8 + $0xc4] ss:$16 sps:$4 sm:$0xff]   ;;  %v146_v10 = vlaneseq }
  0x63   :  { %v4713_v26 = vld [vmem:[#allocation8 + $0xcc] ss:$16 sps:$4 sm:$0xff]   ;;  %v4715_v27 = vld [vmem:[#allocation8 + $0xc0] ss:$16 sps:$4 sm:$0xff]   ;;  %v4716_v28 = vld [vmem:[#allocation8 + $0xc8] ss:$16 sps:$4 sm:$0xff]  }
  0x64   :  { %v4717_v29 = vld [vmem:[#allocation8 + $0xe4] ss:$16 sps:$4 sm:$0xff]   ;;  %v4719_v30 = vld [vmem:[#allocation8 + $0xec] ss:$16 sps:$4 sm:$0xff]   ;;  %v4721_v31 = vld [vmem:[#allocation8 + $0xe0] ss:$16 sps:$4 sm:$0xff]  }
  0x65   :  { %379 = vmatpush1.bf16.msra.mxu0 %v4691_v11  ;;  %492 = vmatpush1.bf16.msra.mxu1 %v4692_v12  ;;  %v4722_v32 = vld [vmem:[#allocation8 + $0xe8] ss:$16 sps:$4 sm:$0xff]   ;;  %v5731_v33 = vld [vmem:[#allocation11 + $0x4] ss:$16 sps:$4 sm:$0xff]   ;;  %v5733_v34 = vld [vmem:[#allocation11 + $0xc] ss:$16 sps:$4 sm:$0xff]  }
  0x66   :  { %380 = vmatprep.subr.bf16.mxu0 %v4693_v13  ;;  %493 = vmatprep.subr.bf16.mxu1 %v4695_v14  ;;  %v4723_v35 = vld [vmem:[#allocation5] sm:$0xff]   ;;  %v5741_v38 = vld [vmem:[#allocation11 + $0x8] ss:$16 sps:$4 sm:$0xff]   ;;  %v5743_v39 = vld [vmem:[#allocation11 + $0x2c] ss:$16 sps:$4 sm:$0xff]   ;;  %v5881_v11 = vshrl.u32 %v146_v10, 7 }
  0x67   :  { %v5735_v36 = vld [vmem:[#allocation11] ss:$16 sps:$4 sm:$0xff]   ;;  %v5738_v37 = vld [vmem:[#allocation11 + $0x24] ss:$16 sps:$4 sm:$0xff]   ;;  %v5754_v42 = vld [vmem:[#allocation11 + $0x28] ss:$16 sps:$4 sm:$0xff]  }
  0x68   :  { %v5747_v40 = vld [vmem:[#allocation11 + $0x20] ss:$16 sps:$4 sm:$0xff]   ;;  %v5751_v41 = vld [vmem:[#allocation11 + $0x44] ss:$16 sps:$4 sm:$0xff]   ;;  %v5763_v46 = vld [vmem:[#allocation11 + $0x4c] ss:$16 sps:$4 sm:$0xff]  }
  0x69   :  { %381 = vmatpush1.bf16.msra.mxu0 %v4697_v15  ;;  %494 = vmatpush1.bf16.msra.mxu1 %v4698_v16  ;;  %v5758_v44 = vld [vmem:[#allocation11 + $0x40] ss:$16 sps:$4 sm:$0xff]   ;;  %v5760_v45 = vld [vmem:[#allocation11 + $0x64] ss:$16 sps:$4 sm:$0xff]   ;;  %v5766_v47 = vld [vmem:[#allocation11 + $0x48] ss:$16 sps:$4 sm:$0xff]  }
  0x6a   :  { %382 = vmatprep.subr.bf16.mxu0 %v4699_v17  ;;  %495 = vmatprep.subr.bf16.mxu1 %v4701_v18  ;;  %v5768_v48 = vld [vmem:[#allocation11 + $0x6c] ss:$16 sps:$4 sm:$0xff]   ;;  %v5773_v49 = vld [vmem:[#allocation11 + $0x60] ss:$16 sps:$4 sm:$0xff]   ;;  %v5776_v50 = vld [vmem:[#allocation11 + $0x84] ss:$16 sps:$4 sm:$0xff]  }
  0x6b   :  { %v5780_v51 = vld [vmem:[#allocation11 + $0x68] ss:$16 sps:$4 sm:$0xff]   ;;  %v4733_v52 = vld [vmem:[#allocation5 + $0x10] sm:$0xff]   ;;  %v5786_v54 = vld [vmem:[#allocation11 + $0x8c] ss:$16 sps:$4 sm:$0xff]   ;;  %v148_v12 = vsub.s32 0, %v5881_v11 }
  0x6c   :  { %v5783_v53 = vld [vmem:[#allocation11 + $0x80] ss:$16 sps:$4 sm:$0xff]   ;;  %v5789_v55 = vld [vmem:[#allocation11 + $0xa4] ss:$16 sps:$4 sm:$0xff]   ;;  %v5792_v56 = vld [vmem:[#allocation11 + $0x88] ss:$16 sps:$4 sm:$0xff]  }
  0x6d   :  { %383 = vmatpush1.bf16.msra.mxu0 %v4703_v19  ;;  %496 = vmatpush1.bf16.msra.mxu1 %v4704_v20  ;;  %v5794_v57 = vld [vmem:[#allocation11 + $0xac] ss:$16 sps:$4 sm:$0xff]   ;;  %v5796_v58 = vld [vmem:[#allocation11 + $0xa0] ss:$16 sps:$4 sm:$0xff]   ;;  %v5800_v59 = vld [vmem:[#allocation11 + $0xc4] ss:$16 sps:$4 sm:$0xff]  }
  0x6e   :  { %384 = vmatprep.subr.bf16.mxu0 %v4705_v21  ;;  %497 = vmatprep.subr.bf16.mxu1 %v4707_v22  ;;  %v5802_v60 = vld [vmem:[#allocation11 + $0xa8] ss:$16 sps:$4 sm:$0xff]   ;;  %v5808_v62 = vld [vmem:[#allocation11 + $0xc0] ss:$16 sps:$4 sm:$0xff]   ;;  %v5811_v63 = vld [vmem:[#allocation11 + $0xcc] ss:$16 sps:$4 sm:$0xff]  }
  0x6f   :  { %v4740_v61 = vld [vmem:[#allocation5 + $0x18] sm:$0xff]   ;;  %v5813_v1 = vld [vmem:[#allocation11 + $0xe4] ss:$16 sps:$4 sm:$0xff]   ;;  %v5822_v4 = vld [vmem:[#allocation11 + $0xe0] ss:$16 sps:$4 sm:$0xff]   ;;  %v6916_v14 = vsub.s32 1, %v5881_v11 }
  0x70   :  { %v5815_v2 = vld [vmem:[#allocation11 + $0xc8] ss:$16 sps:$4 sm:$0xff]   ;;  %v5818_v3 = vld [vmem:[#allocation11 + $0xec] ss:$16 sps:$4 sm:$0xff]   ;;  %v4747_v6 = vld [vmem:[#allocation5 + $0x20] sm:$0xff]   ;;  %v6915_v19 = vsub.s32 3, %v5881_v11 }
  0x71   :  { %385 = vmatpush1.bf16.msra.mxu0 %v4709_v23  ;;  %498 = vmatpush1.bf16.msra.mxu1 %v4710_v24  ;;  %v5826_v5 = vld [vmem:[#allocation11 + $0xe8] ss:$16 sps:$4 sm:$0xff]   ;;  %v4761_v8 = vld [vmem:[#allocation5 + $0x30] sm:$0xff]   ;;  %v144_v13 = vld [vmem:[%s6910_s4] sm:$0xf]  ;;  %vm5610_vm0 = vmmov 0  }
  0x72   :  { %386 = vmatprep.subr.bf16.mxu0 %v4711_v25  ;;  %499 = vmatprep.subr.bf16.mxu1 %v4713_v26  ;;  %v4754_v7 = vld [vmem:[#allocation5 + $0x28] sm:$0xff]   ;;  %v4769_v9 = vld [vmem:[#allocation5 + $0x38] sm:$0xff]   ;;  %v5890_v15 = vrot.slane %v144_v13, %v148_v12  ;;  %v5894_v16 = vrot.slane %v144_v13, %v6916_v14  ;;  %s5611_s20 = smov [#allocation14]  }
  0x73   :  { %s4119_s21 = sshll.u32 %s5611_s20, 4  ;;  %s4120_s21 = int_to_ptr.vmem [resolvable:$true] %s4119_s21 }
  0x74   :  { %s5569_s22 = scalar_lea.vmem %s4120_s21, 256  ;;  %p5574_p13 = scmp.lt.s32.totalorder %s4120_s21, %s4120_s21 }
  0x75   :  { %387 = vmatpush1.bf16.msra.mxu0 %v4715_v27  ;;  %500 = vmatpush1.bf16.msra.mxu1 %v4716_v28  ;;  %v6914_v27 = vsub.s32 2, %v5881_v11  ;;  %p5570_p12 = scmp.ne.s32.totalorder %s4120_s21, %s5569_s22  ;;  %p5575_p0 = scmp.lt.s32.totalorder %s5569_s22, %s5569_s22 }
  0x76   :  { %388 = vmatprep.subr.bf16.mxu0 %v4717_v29  ;;  %501 = vmatprep.subr.bf16.mxu1 %v4719_v30 }
  0x77   :  { %p5576_p1 = por %p5575_p0, %p5574_p13 }
  0x79   :  { %389 = vmatpush1.bf16.msra.mxu0 %v4721_v31  ;;  %502 = vmatpush1.bf16.msra.mxu1 %v4722_v32  ;;  %v5903_v32 = vrot.slane %v144_v13, %v6915_v19  ;;  %p5577_p2 = pnand %p5576_p1, %p5570_p12 }
  0x7a   :  { %864 = vmatprep.subr.bf16.mxu0 %v5731_v33  ;;  %907 = vmatprep.subr.bf16.mxu1 %v5733_v34 }
  0x7c   :  { %407 = vmatmul.mubr.bf16.vlgmr.msra.gmra.mrb[0].mxu0 %v4723_v35  ;;  %520 = vmatmul.mubr.bf16.vlgmr.msra.gmra.mrb[0].mxu1 %v4723_v35 }
  0x7d   :  { %865 = vmatpush1.bf16.msra.mxu0 %v5735_v36  ;;  %416 = vmatprep.mubr.bf16.mxu0 %v5608_v0 }
  0x7e   :  { %529 = vmatprep.mubr.bf16.mxu1 %v5608_v0  ;;  %866 = vmatprep.subr.bf16.mxu0 %v5738_v37 }
  0x7f   :  { %908 = vmatpush1.bf16.msra.mxu1 %v5741_v38 }
  0x80   :  { %909 = vmatprep.subr.bf16.mxu1 %v5743_v39 }
  0x81   :  { %867 = vmatpush1.bf16.msra.mxu0 %v5747_v40 }
  0x82   :  { %868 = vmatprep.subr.bf16.mxu0 %v5751_v41 }
  0x83   :  { %910 = vmatpush1.bf16.msra.mxu1 %v5754_v42 }
  0x84   :  { %417 = vmatmul.mubr.bf16.gmra.mrb[4].mxu0 %v4727_v43  ;;  %530 = vmatmul.mubr.bf16.gmra.mrb[4].mxu1 %v4727_v43 }
  0x85   :  { %426 = vmatprep.mubr.bf16.mxu0 %v5608_v0  ;;  %539 = vmatprep.mubr.bf16.mxu1 %v5608_v0 }
  0x86   :  { %869 = vmatpush1.bf16.msra.mxu0 %v5758_v44  ;;  %911 = vmatprep.subr.bf16.mxu1 %v5763_v46 }
  0x87   :  { %870 = vmatprep.subr.bf16.mxu0 %v5760_v45  ;;  %912 = vmatpush1.bf16.msra.mxu1 %v5766_v47 }
  0x88   :  { %913 = vmatprep.subr.bf16.mxu1 %v5768_v48 }
  0x8a   :  { %871 = vmatpush1.bf16.msra.mxu0 %v5773_v49 }
  0x8b   :  { %872 = vmatprep.subr.bf16.mxu0 %v5776_v50  ;;  %914 = vmatpush1.bf16.msra.mxu1 %v5780_v51 }
  0x8c   :  { %427 = vmatmul.mubr.bf16.gmra.mrb[8].mxu0 %v4733_v52  ;;  %540 = vmatmul.mubr.bf16.gmra.mrb[8].mxu1 %v4733_v52 }
  0x8d   :  { %436 = vmatprep.mubr.bf16.mxu0 %v5608_v0  ;;  %549 = vmatprep.mubr.bf16.mxu1 %v5608_v0 }
  0x8e   :  { %873 = vmatpush1.bf16.msra.mxu0 %v5783_v53  ;;  %915 = vmatprep.subr.bf16.mxu1 %v5786_v54 }
  0x8f   :  { %874 = vmatprep.subr.bf16.mxu0 %v5789_v55  ;;  %916 = vmatpush1.bf16.msra.mxu1 %v5792_v56 }
  0x90   :  { %917 = vmatprep.subr.bf16.mxu1 %v5794_v57 }
  0x92   :  { %875 = vmatpush1.bf16.msra.mxu0 %v5796_v58 }
  0x93   :  { %876 = vmatprep.subr.bf16.mxu0 %v5800_v59  ;;  %918 = vmatpush1.bf16.msra.mxu1 %v5802_v60 }
  0x94   :  { %437 = vmatmul.mubr.bf16.gmra.mrb[12].mxu0 %v4740_v61  ;;  %550 = vmatmul.mubr.bf16.gmra.mrb[12].mxu1 %v4740_v61  ;;  %v5908_v61 = vrot.slane %v144_v13, %v6914_v27 }
  0x95   :  { %446 = vmatprep.mubr.bf16.mxu0 %v5608_v0  ;;  %559 = vmatprep.mubr.bf16.mxu1 %v5608_v0 }
  0x96   :  { %877 = vmatpush1.bf16.msra.mxu0 %v5808_v62  ;;  %919 = vmatprep.subr.bf16.mxu1 %v5811_v63 }
  0x97   :  { %878 = vmatprep.subr.bf16.mxu0 %v5813_v1  ;;  %920 = vmatpush1.bf16.msra.mxu1 %v5815_v2 }
  0x98   :  { %921 = vmatprep.subr.bf16.mxu1 %v5818_v3 }
  0x9a   :  { %879 = vmatpush1.bf16.msra.mxu0 %v5822_v4 }
  0x9b   :  { %922 = vmatpush1.bf16.msra.mxu1 %v5826_v5  ;;  %1017 = vmatprep.subr.bf16.mxu0 %v5731_v33 }
  0x9c   :  { %447 = vmatmul.mubr.bf16.gmra.mrb[16].mxu0 %v4747_v6  ;;  %560 = vmatmul.mubr.bf16.gmra.mrb[16].mxu1 %v4747_v6 }
  0x9d   :  { %456 = vmatprep.mubr.bf16.mxu0 %v5608_v0  ;;  %569 = vmatprep.mubr.bf16.mxu1 %v5608_v0 }
  0x9e   :  { %1060 = vmatprep.subr.bf16.mxu1 %v5733_v34 }
  0xa4   :  { %457 = vmatmul.mubr.bf16.gmra.mrb[20].mxu0 %v4754_v7  ;;  %570 = vmatmul.mubr.bf16.gmra.mrb[20].mxu1 %v4754_v7 }
  0xa5   :  { %466 = vmatprep.mubr.bf16.mxu0 %v5608_v0  ;;  %579 = vmatprep.mubr.bf16.mxu1 %v5608_v0 }
  0xac   :  { %467 = vmatmul.mubr.bf16.gmra.mrb[24].mxu0 %v4761_v8  ;;  %580 = vmatmul.mubr.bf16.gmra.mrb[24].mxu1 %v4761_v8 }
  0xad   :  { %476 = vmatprep.mubr.bf16.mxu0 %v5608_v0  ;;  %589 = vmatprep.mubr.bf16.mxu1 %v5608_v0 }
  0xb4   :  { %477 = vmatmul.mubr.bf16.gmra.mrb[28].mxu0 %v4769_v9  ;;  %590 = vmatmul.mubr.bf16.gmra.mrb[28].mxu1 %v4769_v9 }
  0xb5   :  { %896 = vmatprep.mubr.bf16.mxu0 %v5608_v0  ;;  %939 = vmatprep.mubr.bf16.mxu1 %v5608_v0 }
  0xbc   :  { %897 = vmatmul.mubr.bf16.vlgmr.msra.gmra.mrb[0].mxu0 %v5608_v0  ;;  %940 = vmatmul.mubr.bf16.vlgmr.msra.gmra.mrb[0].mxu1 %v5608_v0 }
  0xbd   :  { %1018 = vmatpush1.bf16.msra.mxu0 %v5735_v36  ;;  %1061 = vmatpush1.bf16.msra.mxu1 %v5741_v38 }
  0xbe   :  { %1019 = vmatprep.subr.bf16.mxu0 %v5738_v37  ;;  %1062 = vmatprep.subr.bf16.mxu1 %v5743_v39 }
  0xbf   :  { %1049 = vmatprep.mubr.bf16.mxu0 %v5608_v0  ;;  %1092 = vmatprep.mubr.bf16.mxu1 %v5608_v0 }
  0xc1   :  { %1020 = vmatpush1.bf16.msra.mxu0 %v5747_v40  ;;  %1063 = vmatpush1.bf16.msra.mxu1 %v5754_v42 }
  0xc2   :  { %1021 = vmatprep.subr.bf16.mxu0 %v5751_v41  ;;  %1064 = vmatprep.subr.bf16.mxu1 %v5763_v46 }
  0xc5   :  { %1022 = vmatpush1.bf16.msra.mxu0 %v5758_v44  ;;  %1065 = vmatpush1.bf16.msra.mxu1 %v5766_v47 }
  0xc6   :  { %1023 = vmatprep.subr.bf16.mxu0 %v5760_v45  ;;  %1066 = vmatprep.subr.bf16.mxu1 %v5768_v48 }
  0xc9   :  { %1024 = vmatpush1.bf16.msra.mxu0 %v5773_v49  ;;  %1067 = vmatpush1.bf16.msra.mxu1 %v5780_v51 }
  0xca   :  { %1025 = vmatprep.subr.bf16.mxu0 %v5776_v50  ;;  %1068 = vmatprep.subr.bf16.mxu1 %v5786_v54 }
  0xcd   :  { %1026 = vmatpush1.bf16.msra.mxu0 %v5783_v53  ;;  %1069 = vmatpush1.bf16.msra.mxu1 %v5792_v56 }
  0xce   :  { %1027 = vmatprep.subr.bf16.mxu0 %v5789_v55  ;;  %1070 = vmatprep.subr.bf16.mxu1 %v5794_v57 }
  0xd1   :  { %1028 = vmatpush1.bf16.msra.mxu0 %v5796_v58  ;;  %1071 = vmatpush1.bf16.msra.mxu1 %v5802_v60 }
  0xd2   :  { %1029 = vmatprep.subr.bf16.mxu0 %v5800_v59  ;;  %1072 = vmatprep.subr.bf16.mxu1 %v5811_v63 }
  0xd5   :  { %1030 = vmatpush1.bf16.msra.mxu0 %v5808_v62  ;;  %1073 = vmatpush1.bf16.msra.mxu1 %v5815_v2 }
  0xd6   :  { %1031 = vmatprep.subr.bf16.mxu0 %v5813_v1  ;;  %1074 = vmatprep.subr.bf16.mxu1 %v5818_v3 }
  0xd9   :  { %1032 = vmatpush1.bf16.msra.mxu0 %v5822_v4  ;;  %1075 = vmatpush1.bf16.msra.mxu1 %v5826_v5 }
  0xda   :  { %1171 = vmatprep.subr.bf16.mxu0 %v5731_v33  ;;  %1214 = vmatprep.subr.bf16.mxu1 %v5733_v34 }
 0x18f   :  { %v898_v17 = vpop.f32.mrb[0].mxu0  ;;  %v941_v18 = vpop.f32.mrb[0].mxu1 }
 0x190   :  { %v4404_v20 = vadd.f32 %v898_v17, %v5890_v15  ;;  %v900_v21 = vpop.f32.mrb[1].mxu0  ;;  %v943_v22 = vpop.f32.mrb[1].mxu1  ;;  %v4436_v7 = vadd.f32 %v941_v18, %v5908_v61 }
 0x191   :  { %v4405_v23 = vadd.f32 %v900_v21, %v5894_v16  ;;  %v902_v24 = vpop.f32.mrb[2].mxu0  ;;  %v945_v25 = vpop.f32.mrb[2].mxu1  ;;  %v4437_v6 = vadd.f32 %v943_v22, %v5903_v32 }
 0x192   :  { %v4205_v26 = vmul.f32 -1.442695, %v4404_v20  ;;  %v4406_v28 = vadd.f32 %v902_v24, %v5890_v15  ;;  %v904_v29 = vpop.f32.mrb[3].mxu0  ;;  %v947_v30 = vpop.f32.mrb[3].mxu1  ;;  %v4438_v10 = vadd.f32 %v945_v25, %v5908_v61 }
 0x193   :  { %v4207_v31 = vmul.f32 -1.442695, %v4405_v23  ;;  %v4407_v35 = vadd.f32 %v904_v29, %v5894_v16  ;;  %v4209_v8 = vmul.f32 -1.442695, %v4437_v6  ;;  %v4439_v9 = vadd.f32 %v947_v30, %v5903_v32 }
 0x194   :  { %4883 = vpow2.f32 %v4205_v26  ;;  %v4206_v43 = vmul.f32 -1.442695, %v4406_v28 }
 0x195   :  { %4885 = vpow2.f32 %v4207_v31  ;;  %v4208_v52 = vmul.f32 -1.442695, %v4407_v35  ;;  %v4210_v23 = vmul.f32 -1.442695, %v4439_v9 }
 0x196   :  { %4887 = vpow2.f32 %v4206_v43 }
 0x197   :  { %4889 = vpow2.f32 %v4208_v52 }
 0x198   :  { %4891 = vtanh.f32 %v4436_v7 }
 0x199   :  { %4893 = vpow2.f32 %v4209_v8 }
 0x19a   :  { %4895 = vtanh.f32 %v4438_v10 }
 0x19e   :  { %v4884_v17 = vpop.eup %4883 }
 0x19f   :  { %v4886_v20 = vpop.eup %4885  ;;  %v964_v21 = vadd.f32 1.0, %v4884_v17 }
 0x1a0   :  { %v976_v24 = vadd.f32 1.0, %v4886_v20  ;;  %v4888_v13 = vpop.eup %4887 }
 0x1a1   :  { %4897 = vrcp.f32 %v964_v21  ;;  %v965_v22 = vadd.f32 1.0, %v4888_v13  ;;  %v4890_v26 = vpop.eup %4889 }
 0x1a2   :  { %4899 = vrcp.f32 %v976_v24  ;;  %v977_v18 = vadd.f32 1.0, %v4890_v26  ;;  %v4892_v28 = vpop.eup %4891 }
 0x1a3   :  { %4901 = vpow2.f32 %v4210_v23  ;;  %v4894_v29 = vpop.eup %4893 }
 0x1a4   :  { %4903 = vrcp.f32 %v965_v22  ;;  %v4896_v25 = vpop.eup %4895  ;;  %v990_v7 = vadd.f32 1.0, %v4894_v29 }
 0x1a5   :  { %4905 = vrcp.f32 %v977_v18 }
 0x1a6   :  { %4907 = vrcp.f32 %v990_v7 }
 0x1ab   :  { %v4898_v30 = vpop.eup %4897 }
 0x1ac   :  { %v4900_v31 = vpop.eup %4899  ;;  %v998_v35 = vmul.f32 %v4898_v30, %v4892_v28 }
 0x1ad   :  { %v4902_v43 = vpop.eup %4901  ;;  %v996_v52 = vmul.f32 0.0, %v4900_v31 }
 0x1ae   :  { %v4904_v6 = vpop.eup %4903  ;;  %v991_v17 = vadd.f32 1.0, %v4902_v43 }
 0x1af   :  { %v5914_v8 = vadd.f32 %v998_v35, %v996_v52  ;;  %v999_v9 = vmul.f32 %v4904_v6, %v4896_v25  ;;  %v4906_v10 = vpop.eup %4905 }
 0x1b0   :  { %v997_v20 = vmul.f32 0.0, %v4906_v10  ;;  %v4908_v23 = vpop.eup %4907 }
 0x1b1   :  { %4909 = vtanh.f32 %v5914_v8 }
 0x1b2   :  { %v5917_v21 = vadd.f32 %v999_v9, %v997_v20  ;;  %4911 = vrcp.f32 %v991_v17 }
 0x1b4   :  { %4913 = vtanh.f32 %v5917_v21 }
 0x1bb   :  { %v4910_v24 = vpop.eup %4909 }
 0x1bc   :  { %v4912_v13 = vpop.eup %4911  ;;  %v1004_v26 = vmul.f32 %v4910_v24, %v4908_v23 }
 0x1be   :  { %v4914_v22 = vpop.eup %4913 }
 0x1bf   :  { %v1005_v18 = vmul.f32 %v4914_v22, %v4912_v13 }
 0x1c1   :  { %v5920_v28 = vpack.c.bf16 %v1005_v18, %v1004_v26 }
 0x1c3   :  { %1050 = vmatmul.mubr.bf16.vlgmr.msra.gmra.mrb[4].mxu0 %v5920_v28  ;;  %1093 = vmatmul.mubr.bf16.vlgmr.msra.gmra.mrb[4].mxu1 %v5920_v28 }
 0x1c4   :  { %1172 = vmatpush1.bf16.msra.mxu0 %v5735_v36  ;;  %1215 = vmatpush1.bf16.msra.mxu1 %v5741_v38 }
 0x1c5   :  { %1173 = vmatprep.subr.bf16.mxu0 %v5738_v37  ;;  %1216 = vmatprep.subr.bf16.mxu1 %v5743_v39 }
 0x1c6   :  { %1203 = vmatprep.mubr.bf16.mxu0 %v5608_v0  ;;  %1246 = vmatprep.mubr.bf16.mxu1 %v5608_v0 }
 0x1c8   :  { %1174 = vmatpush1.bf16.msra.mxu0 %v5747_v40  ;;  %1217 = vmatpush1.bf16.msra.mxu1 %v5754_v42 }
 0x1c9   :  { %1175 = vmatprep.subr.bf16.mxu0 %v5751_v41  ;;  %1218 = vmatprep.subr.bf16.mxu1 %v5763_v46 }
 0x1cc   :  { %1176 = vmatpush1.bf16.msra.mxu0 %v5758_v44  ;;  %1219 = vmatpush1.bf16.msra.mxu1 %v5766_v47 }
 0x1cd   :  { %1177 = vmatprep.subr.bf16.mxu0 %v5760_v45  ;;  %1220 = vmatprep.subr.bf16.mxu1 %v5768_v48 }
 0x1d0   :  { %1178 = vmatpush1.bf16.msra.mxu0 %v5773_v49  ;;  %1221 = vmatpush1.bf16.msra.mxu1 %v5780_v51 }
 0x1d1   :  { %1179 = vmatprep.subr.bf16.mxu0 %v5776_v50  ;;  %1222 = vmatprep.subr.bf16.mxu1 %v5786_v54 }
 0x1d4   :  { %1180 = vmatpush1.bf16.msra.mxu0 %v5783_v53  ;;  %1223 = vmatpush1.bf16.msra.mxu1 %v5792_v56 }
 0x1d5   :  { %1181 = vmatprep.subr.bf16.mxu0 %v5789_v55  ;;  %1224 = vmatprep.subr.bf16.mxu1 %v5794_v57 }
 0x1d8   :  { %1182 = vmatpush1.bf16.msra.mxu0 %v5796_v58  ;;  %1225 = vmatpush1.bf16.msra.mxu1 %v5802_v60 }
 0x1d9   :  { %1183 = vmatprep.subr.bf16.mxu0 %v5800_v59  ;;  %1226 = vmatprep.subr.bf16.mxu1 %v5811_v63 }
 0x1dc   :  { %1184 = vmatpush1.bf16.msra.mxu0 %v5808_v62  ;;  %1227 = vmatpush1.bf16.msra.mxu1 %v5815_v2 }
 0x1dd   :  { %1185 = vmatprep.subr.bf16.mxu0 %v5813_v1  ;;  %1228 = vmatprep.subr.bf16.mxu1 %v5818_v3 }
 0x1e0   :  { %1186 = vmatpush1.bf16.msra.mxu0 %v5822_v4  ;;  %1229 = vmatpush1.bf16.msra.mxu1 %v5826_v5 }
 0x1e1   :  { %1325 = vmatprep.subr.bf16.mxu0 %v5731_v33  ;;  %1368 = vmatprep.subr.bf16.mxu1 %v5733_v34 }
 0x296   :  { %v1051_v29 = vpop.f32.mrb[4].mxu0  ;;  %v1094_v25 = vpop.f32.mrb[4].mxu1 }
 0x297   :  { %v4408_v30 = vadd.f32 %v1051_v29, %v5890_v15  ;;  %v1053_v31 = vpop.f32.mrb[5].mxu0  ;;  %v1096_v35 = vpop.f32.mrb[5].mxu1  ;;  %v4440_v26 = vadd.f32 %v1094_v25, %v5908_v61 }
 0x298   :  { %v4409_v43 = vadd.f32 %v1053_v31, %v5894_v16  ;;  %v1055_v52 = vpop.f32.mrb[6].mxu0  ;;  %v1098_v6 = vpop.f32.mrb[6].mxu1  ;;  %v4441_v22 = vadd.f32 %v1096_v35, %v5903_v32 }
 0x299   :  { %v4211_v7 = vmul.f32 -1.442695, %v4408_v30  ;;  %v4410_v9 = vadd.f32 %v1055_v52, %v5890_v15  ;;  %v1057_v10 = vpop.f32.mrb[7].mxu0  ;;  %v1100_v17 = vpop.f32.mrb[7].mxu1  ;;  %v4442_v30 = vadd.f32 %v1098_v6, %v5908_v61 }
 0x29a   :  { %v4213_v20 = vmul.f32 -1.442695, %v4409_v43  ;;  %v4411_v23 = vadd.f32 %v1057_v10, %v5894_v16  ;;  %v4215_v18 = vmul.f32 -1.442695, %v4441_v22  ;;  %v4443_v29 = vadd.f32 %v1100_v17, %v5903_v32 }
 0x29b   :  { %4915 = vpow2.f32 %v4211_v7  ;;  %v4212_v24 = vmul.f32 -1.442695, %v4410_v9 }
 0x29c   :  { %4917 = vpow2.f32 %v4213_v20  ;;  %v4214_v13 = vmul.f32 -1.442695, %v4411_v23  ;;  %v4216_v7 = vmul.f32 -1.442695, %v4443_v29 }
 0x29d   :  { %4919 = vpow2.f32 %v4212_v24 }
 0x29e   :  { %4921 = vpow2.f32 %v4214_v13 }
 0x29f   :  { %4923 = vtanh.f32 %v4440_v26 }
 0x2a0   :  { %4925 = vpow2.f32 %v4215_v18 }
 0x2a1   :  { %4927 = vtanh.f32 %v4442_v30 }
 0x2a5   :  { %v4916_v31 = vpop.eup %4915 }
 0x2a6   :  { %v4918_v43 = vpop.eup %4917  ;;  %v1117_v52 = vadd.f32 1.0, %v4916_v31 }
 0x2a7   :  { %v1129_v9 = vadd.f32 1.0, %v4918_v43  ;;  %v4920_v10 = vpop.eup %4919 }
 0x2a8   :  { %4929 = vrcp.f32 %v1117_v52  ;;  %v1118_v35 = vadd.f32 1.0, %v4920_v10  ;;  %v4922_v20 = vpop.eup %4921 }
 0x2a9   :  { %4931 = vrcp.f32 %v1129_v9  ;;  %v1130_v25 = vadd.f32 1.0, %v4922_v20  ;;  %v4924_v17 = vpop.eup %4923 }
 0x2aa   :  { %4933 = vpow2.f32 %v4216_v7  ;;  %v4926_v23 = vpop.eup %4925 }
 0x2ab   :  { %4935 = vrcp.f32 %v1118_v35  ;;  %v4928_v6 = vpop.eup %4927  ;;  %v1143_v30 = vadd.f32 1.0, %v4926_v23 }
 0x2ac   :  { %4937 = vrcp.f32 %v1130_v25 }
 0x2ad   :  { %4939 = vrcp.f32 %v1143_v30 }
 0x2b2   :  { %v4930_v24 = vpop.eup %4929 }
 0x2b3   :  { %v4932_v13 = vpop.eup %4931  ;;  %v1151_v22 = vmul.f32 %v4930_v24, %v4924_v17 }
 0x2b4   :  { %v4934_v26 = vpop.eup %4933  ;;  %v1149_v18 = vmul.f32 %v4932_v13, %v5914_v8 }
 0x2b5   :  { %v4936_v29 = vpop.eup %4935  ;;  %v1144_v9 = vadd.f32 1.0, %v4934_v26 }
 0x2b6   :  { %v5967_v31 = vadd.f32 %v1151_v22, %v1149_v18  ;;  %v1152_v43 = vmul.f32 %v4936_v29, %v4928_v6  ;;  %v4938_v52 = vpop.eup %4937 }
 0x2b7   :  { %v1150_v7 = vmul.f32 %v4938_v52, %v5917_v21  ;;  %v4940_v35 = vpop.eup %4939 }
 0x2b8   :  { %4941 = vtanh.f32 %v5967_v31 }
 0x2b9   :  { %v5971_v10 = vadd.f32 %v1152_v43, %v1150_v7  ;;  %4943 = vrcp.f32 %v1144_v9 }
 0x2bb   :  { %4945 = vtanh.f32 %v5971_v10 }
 0x2c2   :  { %v4942_v20 = vpop.eup %4941 }
 0x2c3   :  { %v4944_v8 = vpop.eup %4943  ;;  %v1157_v17 = vmul.f32 %v4942_v20, %v4940_v35 }
 0x2c5   :  { %v4946_v25 = vpop.eup %4945 }
 0x2c6   :  { %v1158_v23 = vmul.f32 %v4946_v25, %v4944_v8 }
 0x2c8   :  { %v5974_v24 = vpack.c.bf16 %v1158_v23, %v1157_v17 }
 0x2ca   :  { %1204 = vmatmul.mubr.bf16.vlgmr.msra.gmra.mrb[8].mxu0 %v5974_v24  ;;  %1247 = vmatmul.mubr.bf16.vlgmr.msra.gmra.mrb[8].mxu1 %v5974_v24 }
 0x2cb   :  { %1326 = vmatpush1.bf16.msra.mxu0 %v5735_v36  ;;  %1369 = vmatpush1.bf16.msra.mxu1 %v5741_v38 }
 0x2cc   :  { %1327 = vmatprep.subr.bf16.mxu0 %v5738_v37  ;;  %1370 = vmatprep.subr.bf16.mxu1 %v5743_v39 }
 0x2cd   :  { %1357 = vmatprep.mubr.bf16.mxu0 %v5608_v0  ;;  %1400 = vmatprep.mubr.bf16.mxu1 %v5608_v0 }
 0x2cf   :  { %1328 = vmatpush1.bf16.msra.mxu0 %v5747_v40  ;;  %1371 = vmatpush1.bf16.msra.mxu1 %v5754_v42 }
 0x2d0   :  { %1329 = vmatprep.subr.bf16.mxu0 %v5751_v41  ;;  %1372 = vmatprep.subr.bf16.mxu1 %v5763_v46 }
 0x2d3   :  { %1330 = vmatpush1.bf16.msra.mxu0 %v5758_v44  ;;  %1373 = vmatpush1.bf16.msra.mxu1 %v5766_v47 }
 0x2d4   :  { %1331 = vmatprep.subr.bf16.mxu0 %v5760_v45  ;;  %1374 = vmatprep.subr.bf16.mxu1 %v5768_v48 }
 0x2d7   :  { %1332 = vmatpush1.bf16.msra.mxu0 %v5773_v49  ;;  %1375 = vmatpush1.bf16.msra.mxu1 %v5780_v51 }
 0x2d8   :  { %1333 = vmatprep.subr.bf16.mxu0 %v5776_v50  ;;  %1376 = vmatprep.subr.bf16.mxu1 %v5786_v54 }
 0x2db   :  { %1334 = vmatpush1.bf16.msra.mxu0 %v5783_v53  ;;  %1377 = vmatpush1.bf16.msra.mxu1 %v5792_v56 }
 0x2dc   :  { %1335 = vmatprep.subr.bf16.mxu0 %v5789_v55  ;;  %1378 = vmatprep.subr.bf16.mxu1 %v5794_v57 }
 0x2df   :  { %1336 = vmatpush1.bf16.msra.mxu0 %v5796_v58  ;;  %1379 = vmatpush1.bf16.msra.mxu1 %v5802_v60 }
 0x2e0   :  { %1337 = vmatprep.subr.bf16.mxu0 %v5800_v59  ;;  %1380 = vmatprep.subr.bf16.mxu1 %v5811_v63 }
 0x2e3   :  { %1338 = vmatpush1.bf16.msra.mxu0 %v5808_v62  ;;  %1381 = vmatpush1.bf16.msra.mxu1 %v5815_v2 }
 0x2e4   :  { %1339 = vmatprep.subr.bf16.mxu0 %v5813_v1  ;;  %1382 = vmatprep.subr.bf16.mxu1 %v5818_v3 }
 0x2e7   :  { %1340 = vmatpush1.bf16.msra.mxu0 %v5822_v4  ;;  %1383 = vmatpush1.bf16.msra.mxu1 %v5826_v5 }
 0x2e8   :  { %1479 = vmatprep.subr.bf16.mxu0 %v5731_v33  ;;  %1522 = vmatprep.subr.bf16.mxu1 %v5733_v34 }
 0x39d   :  { %v1205_v36 = vpop.f32.mrb[8].mxu0  ;;  %v1248_v37 = vpop.f32.mrb[8].mxu1 }
 0x39e   :  { %v4412_v38 = vadd.f32 %v1205_v36, %v5890_v15  ;;  %v1207_v39 = vpop.f32.mrb[9].mxu0  ;;  %v1250_v40 = vpop.f32.mrb[9].mxu1  ;;  %v4444_v18 = vadd.f32 %v1248_v37, %v5908_v61 }
 0x39f   :  { %v4413_v41 = vadd.f32 %v1207_v39, %v5894_v16  ;;  %v1209_v42 = vpop.f32.mrb[10].mxu0  ;;  %v1252_v44 = vpop.f32.mrb[10].mxu1  ;;  %v4445_v26 = vadd.f32 %v1250_v40, %v5903_v32 }
 0x3a0   :  { %v4217_v45 = vmul.f32 -1.442695, %v4412_v38  ;;  %v4414_v46 = vadd.f32 %v1209_v42, %v5890_v15  ;;  %v1211_v21 = vpop.f32.mrb[11].mxu0  ;;  %v1254_v6 = vpop.f32.mrb[11].mxu1  ;;  %v4446_v43 = vadd.f32 %v1252_v44, %v5908_v61 }
 0x3a1   :  { %v4219_v13 = vmul.f32 -1.442695, %v4413_v41  ;;  %v4415_v33 = vadd.f32 %v1211_v21, %v5894_v16  ;;  %v4221_v29 = vmul.f32 -1.442695, %v4445_v26  ;;  %v4447_v30 = vadd.f32 %v1254_v6, %v5903_v32 }
 0x3a2   :  { %4947 = vpow2.f32 %v4217_v45  ;;  %v4218_v34 = vmul.f32 -1.442695, %v4414_v46 }
 0x3a3   :  { %4949 = vpow2.f32 %v4219_v13  ;;  %v4220_v22 = vmul.f32 -1.442695, %v4415_v33  ;;  %v4222_v35 = vmul.f32 -1.442695, %v4447_v30 }
 0x3a4   :  { %4951 = vpow2.f32 %v4218_v34 }
 0x3a5   :  { %4953 = vpow2.f32 %v4220_v22 }
 0x3a6   :  { %4955 = vtanh.f32 %v4444_v18 }
 0x3a7   :  { %4957 = vpow2.f32 %v4221_v29 }
 0x3a8   :  { %4959 = vtanh.f32 %v4446_v43 }
 0x3ac   :  { %v4948_v52 = vpop.eup %4947 }
 0x3ad   :  { %v4950_v9 = vpop.eup %4949  ;;  %v1271_v7 = vadd.f32 1.0, %v4948_v52 }
 0x3ae   :  { %v1283_v20 = vadd.f32 1.0, %v4950_v9  ;;  %v4952_v8 = vpop.eup %4951  ;;  %v6035_v9 = vld [vmem:[#allocation11 + $0x8] ss:$16 sps:$4 sm:$0xff]  }
 0x3af   :  { %4961 = vrcp.f32 %v1271_v7  ;;  %v1272_v25 = vadd.f32 1.0, %v4952_v8  ;;  %v4954_v17 = vpop.eup %4953  ;;  %v6038_v7 = vld [vmem:[#allocation11 + $0x24] ss:$16 sps:$4 sm:$0xff]   ;;  %v6049_v8 = vld [vmem:[#allocation11 + $0x28] ss:$16 sps:$4 sm:$0xff]  }
 0x3b0   :  { %4963 = vrcp.f32 %v1283_v20  ;;  %v1284_v23 = vadd.f32 1.0, %v4954_v17  ;;  %v4956_v36 = vpop.eup %4955  ;;  %v6046_v20 = vld [vmem:[#allocation11 + $0x20] ss:$16 sps:$4 sm:$0xff]   ;;  %v6055_v17 = vld [vmem:[#allocation11 + $0x4c] ss:$16 sps:$4 sm:$0xff]  }
 0x3b1   :  { %4965 = vpow2.f32 %v4222_v35  ;;  %v4958_v37 = vpop.eup %4957  ;;  %v6041_v35 = vld [vmem:[#allocation11 + $0x2c] ss:$16 sps:$4 sm:$0xff]  }
 0x3b2   :  { %4967 = vrcp.f32 %v1272_v25  ;;  %v4960_v38 = vpop.eup %4959  ;;  %v1297_v46 = vadd.f32 1.0, %v4958_v37  ;;  %v6052_v25 = vld [vmem:[#allocation11 + $0x44] ss:$16 sps:$4 sm:$0xff]  }
 0x3b3   :  { %4969 = vrcp.f32 %v1284_v23  ;;  %v6058_v23 = vld [vmem:[#allocation11 + $0x40] ss:$16 sps:$4 sm:$0xff]  }
 0x3b4   :  { %4971 = vrcp.f32 %v1297_v46 }
 0x3b9   :  { %v4962_v39 = vpop.eup %4961 }
 0x3ba   :  { %v4964_v40 = vpop.eup %4963  ;;  %v1305_v41 = vmul.f32 %v4962_v39, %v4956_v36  ;;  %v6062_v36 = vld [vmem:[#allocation11 + $0x64] ss:$16 sps:$4 sm:$0xff]  }
 0x3bb   :  { %v4966_v42 = vpop.eup %4965  ;;  %v1303_v44 = vmul.f32 %v4964_v40, %v5967_v31 }
 0x3bc   :  { %v4968_v45 = vpop.eup %4967  ;;  %v1298_v33 = vadd.f32 1.0, %v4966_v42 }
 0x3bd   :  { %v6021_v21 = vadd.f32 %v1305_v41, %v1303_v44  ;;  %v1306_v6 = vmul.f32 %v4968_v45, %v4960_v38  ;;  %v4970_v13 = vpop.eup %4969 }
 0x3be   :  { %v1304_v34 = vmul.f32 %v4970_v13, %v5971_v10  ;;  %v4972_v26 = vpop.eup %4971  ;;  %v6032_v10 = vld [vmem:[#allocation11] ss:$16 sps:$4 sm:$0xff]  }
 0x3bf   :  { %4973 = vtanh.f32 %v6021_v21 }
 0x3c0   :  { %v6025_v22 = vadd.f32 %v1306_v6, %v1304_v34  ;;  %4975 = vrcp.f32 %v1298_v33 }
 0x3c2   :  { %4977 = vtanh.f32 %v6025_v22 }
 0x3c9   :  { %v4974_v18 = vpop.eup %4973 }
 0x3ca   :  { %v4976_v31 = vpop.eup %4975  ;;  %v1311_v30 = vmul.f32 %v4974_v18, %v4972_v26 }
 0x3cc   :  { %v4978_v29 = vpop.eup %4977 }
 0x3cd   :  { %v1312_v43 = vmul.f32 %v4978_v29, %v4976_v31 }
 0x3cf   :  { %v6028_v52 = vpack.c.bf16 %v1312_v43, %v1311_v30 }
 0x3d1   :  { %1358 = vmatmul.mubr.bf16.vlgmr.msra.gmra.mrb[12].mxu0 %v6028_v52  ;;  %1401 = vmatmul.mubr.bf16.vlgmr.msra.gmra.mrb[12].mxu1 %v6028_v52 }
 0x3d2   :  { %1480 = vmatpush1.bf16.msra.mxu0 %v6032_v10  ;;  %1523 = vmatpush1.bf16.msra.mxu1 %v6035_v9 }
 0x3d3   :  { %1481 = vmatprep.subr.bf16.mxu0 %v6038_v7  ;;  %1524 = vmatprep.subr.bf16.mxu1 %v6041_v35 }
 0x3d4   :  { %1511 = vmatprep.mubr.bf16.mxu0 %v5608_v0  ;;  %1554 = vmatprep.mubr.bf16.mxu1 %v5608_v0 }
 0x3d6   :  { %1482 = vmatpush1.bf16.msra.mxu0 %v6046_v20  ;;  %1525 = vmatpush1.bf16.msra.mxu1 %v6049_v8 }
 0x3d7   :  { %1483 = vmatprep.subr.bf16.mxu0 %v6052_v25  ;;  %1526 = vmatprep.subr.bf16.mxu1 %v6055_v17 }
 0x3da   :  { %1484 = vmatpush1.bf16.msra.mxu0 %v6058_v23  ;;  %1527 = vmatpush1.bf16.msra.mxu1 %v5766_v47  ;;  %v6084_v47 = vld [vmem:[#allocation11 + $0x4] ss:$16 sps:$4 sm:$0xff]  }
 0x3db   :  { %1485 = vmatprep.subr.bf16.mxu0 %v6062_v36  ;;  %1528 = vmatprep.subr.bf16.mxu1 %v5768_v48  ;;  %v6087_v48 = vld [vmem:[#allocation11 + $0xc] ss:$16 sps:$4 sm:$0xff]  }
 0x3de   :  { %1486 = vmatpush1.bf16.msra.mxu0 %v5773_v49  ;;  %1529 = vmatpush1.bf16.msra.mxu1 %v5780_v51 }
 0x3df   :  { %1487 = vmatprep.subr.bf16.mxu0 %v5776_v50  ;;  %1530 = vmatprep.subr.bf16.mxu1 %v5786_v54 }
 0x3e2   :  { %1488 = vmatpush1.bf16.msra.mxu0 %v5783_v53  ;;  %1531 = vmatpush1.bf16.msra.mxu1 %v5792_v56 }
 0x3e3   :  { %1489 = vmatprep.subr.bf16.mxu0 %v5789_v55  ;;  %1532 = vmatprep.subr.bf16.mxu1 %v5794_v57 }
 0x3e6   :  { %1490 = vmatpush1.bf16.msra.mxu0 %v5796_v58  ;;  %1533 = vmatpush1.bf16.msra.mxu1 %v5802_v60 }
 0x3e7   :  { %1491 = vmatprep.subr.bf16.mxu0 %v5800_v59  ;;  %1534 = vmatprep.subr.bf16.mxu1 %v5811_v63 }
 0x3ea   :  { %1492 = vmatpush1.bf16.msra.mxu0 %v5808_v62  ;;  %1535 = vmatpush1.bf16.msra.mxu1 %v5815_v2 }
 0x3eb   :  { %1493 = vmatprep.subr.bf16.mxu0 %v5813_v1  ;;  %1536 = vmatprep.subr.bf16.mxu1 %v5818_v3 }
 0x3ee   :  { %1494 = vmatpush1.bf16.msra.mxu0 %v5822_v4  ;;  %1537 = vmatpush1.bf16.msra.mxu1 %v5826_v5 }
 0x3ef   :  { %1633 = vmatprep.subr.bf16.mxu0 %v6084_v47  ;;  %1676 = vmatprep.subr.bf16.mxu1 %v6087_v48 }
 0x4a4   :  { %v1359_v49 = vpop.f32.mrb[12].mxu0  ;;  %v1402_v50 = vpop.f32.mrb[12].mxu1 }
 0x4a5   :  { %v4416_v51 = vadd.f32 %v1359_v49, %v5890_v15  ;;  %v1361_v53 = vpop.f32.mrb[13].mxu0  ;;  %v1404_v54 = vpop.f32.mrb[13].mxu1  ;;  %v4448_v5 = vadd.f32 %v1402_v50, %v5908_v61 }
 0x4a6   :  { %v4417_v55 = vadd.f32 %v1361_v53, %v5894_v16  ;;  %v1363_v56 = vpop.f32.mrb[14].mxu0  ;;  %v1406_v57 = vpop.f32.mrb[14].mxu1  ;;  %v4449_v4 = vadd.f32 %v1404_v54, %v5903_v32 }
 0x4a7   :  { %v4223_v58 = vmul.f32 -1.442695, %v4416_v51  ;;  %v4418_v59 = vadd.f32 %v1363_v56, %v5890_v15  ;;  %v1365_v60 = vpop.f32.mrb[15].mxu0  ;;  %v1408_v62 = vpop.f32.mrb[15].mxu1  ;;  %v4450_v39 = vadd.f32 %v1406_v57, %v5908_v61 }
 0x4a8   :  { %v4225_v63 = vmul.f32 -1.442695, %v4417_v55  ;;  %v4419_v1 = vadd.f32 %v1365_v60, %v5894_v16  ;;  %v4227_v37 = vmul.f32 -1.442695, %v4449_v4  ;;  %v4451_v38 = vadd.f32 %v1408_v62, %v5903_v32  ;;  %v6128_v4 = vld [vmem:[#allocation11 + $0x60] ss:$16 sps:$4 sm:$0xff]  }
 0x4a9   :  { %4979 = vpow2.f32 %v4223_v58  ;;  %v4224_v2 = vmul.f32 -1.442695, %v4418_v59 }
 0x4aa   :  { %4981 = vpow2.f32 %v4225_v63  ;;  %v4226_v3 = vmul.f32 -1.442695, %v4419_v1  ;;  %v4228_v44 = vmul.f32 -1.442695, %v4451_v38  ;;  %v6137_v38 = vld [vmem:[#allocation11 + $0x8c] ss:$16 sps:$4 sm:$0xff]  }
 0x4ab   :  { %4983 = vpow2.f32 %v4224_v2 }
 0x4ac   :  { %4985 = vpow2.f32 %v4226_v3  ;;  %v6125_v3 = vld [vmem:[#allocation11 + $0x6c] ss:$16 sps:$4 sm:$0xff]  }
 0x4ad   :  { %4987 = vtanh.f32 %v4448_v5  ;;  %v6131_v5 = vld [vmem:[#allocation11 + $0x68] ss:$16 sps:$4 sm:$0xff]  }
 0x4ae   :  { %4989 = vpow2.f32 %v4227_v37  ;;  %v6134_v37 = vld [vmem:[#allocation11 + $0x84] ss:$16 sps:$4 sm:$0xff]  }
 0x4af   :  { %4991 = vtanh.f32 %v4450_v39  ;;  %v6140_v39 = vld [vmem:[#allocation11 + $0x80] ss:$16 sps:$4 sm:$0xff]  }
 0x4b3   :  { %v4980_v40 = vpop.eup %4979 }
 0x4b4   :  { %v4982_v41 = vpop.eup %4981  ;;  %v1425_v42 = vadd.f32 1.0, %v4980_v40  ;;  %v6143_v40 = vld [vmem:[#allocation11 + $0x88] ss:$16 sps:$4 sm:$0xff]  }
 0x4b5   :  { %v1437_v45 = vadd.f32 1.0, %v4982_v41  ;;  %v4984_v46 = vpop.eup %4983  ;;  %v6146_v41 = vld [vmem:[#allocation11 + $0xa4] ss:$16 sps:$4 sm:$0xff]  }
 0x4b6   :  { %4993 = vrcp.f32 %v1425_v42  ;;  %v1426_v6 = vadd.f32 1.0, %v4984_v46  ;;  %v4986_v13 = vpop.eup %4985  ;;  %v6149_v42 = vld [vmem:[#allocation11 + $0xac] ss:$16 sps:$4 sm:$0xff]   ;;  %v6158_v46 = vld [vmem:[#allocation11 + $0xc4] ss:$16 sps:$4 sm:$0xff]  }
 0x4b7   :  { %4995 = vrcp.f32 %v1437_v45  ;;  %v1438_v33 = vadd.f32 1.0, %v4986_v13  ;;  %v4988_v34 = vpop.eup %4987  ;;  %v6155_v45 = vld [vmem:[#allocation11 + $0xa8] ss:$16 sps:$4 sm:$0xff]   ;;  %v6164_v13 = vld [vmem:[#allocation11 + $0xc0] ss:$16 sps:$4 sm:$0xff]  }
 0x4b8   :  { %4997 = vpow2.f32 %v4228_v44  ;;  %v4990_v26 = vpop.eup %4989  ;;  %v6152_v44 = vld [vmem:[#allocation11 + $0xa0] ss:$16 sps:$4 sm:$0xff]  }
 0x4b9   :  { %4999 = vrcp.f32 %v1426_v6  ;;  %v4992_v18 = vpop.eup %4991  ;;  %v1451_v51 = vadd.f32 1.0, %v4990_v26  ;;  %v6161_v6 = vld [vmem:[#allocation11 + $0xcc] ss:$16 sps:$4 sm:$0xff]  }
 0x4ba   :  { %5001 = vrcp.f32 %v1438_v33  ;;  %v6167_v33 = vld [vmem:[#allocation11 + $0xc8] ss:$16 sps:$4 sm:$0xff]   ;;  %v6173_v26 = vld [vmem:[#allocation11 + $0xec] ss:$16 sps:$4 sm:$0xff]  }
 0x4bb   :  { %5003 = vrcp.f32 %v1451_v51 }
 0x4c0   :  { %v4994_v31 = vpop.eup %4993 }
 0x4c1   :  { %v4996_v29 = vpop.eup %4995  ;;  %v1459_v30 = vmul.f32 %v4994_v31, %v4988_v34  ;;  %v6170_v34 = vld [vmem:[#allocation11 + $0xe4] ss:$16 sps:$4 sm:$0xff]   ;;  %v6179_v31 = vld [vmem:[#allocation11 + $0xe8] ss:$16 sps:$4 sm:$0xff]  }
 0x4c2   :  { %v4998_v43 = vpop.eup %4997  ;;  %v1457_v49 = vmul.f32 %v4996_v29, %v6021_v21 }
 0x4c3   :  { %v5000_v50 = vpop.eup %4999  ;;  %v1452_v56 = vadd.f32 1.0, %v4998_v43 }
 0x4c4   :  { %v6099_v53 = vadd.f32 %v1459_v30, %v1457_v49  ;;  %v1460_v54 = vmul.f32 %v5000_v50, %v4992_v18  ;;  %v5002_v55 = vpop.eup %5001  ;;  %v6176_v18 = vld [vmem:[#allocation11 + $0xe0] ss:$16 sps:$4 sm:$0xff]  }
 0x4c5   :  { %v1458_v57 = vmul.f32 %v5002_v55, %v6025_v22  ;;  %v5004_v59 = vpop.eup %5003  ;;  %v6121_v22 = vld [vmem:[#allocation11 + $0x48] ss:$16 sps:$4 sm:$0xff]  }
 0x4c6   :  { %5005 = vtanh.f32 %v6099_v53 }
 0x4c7   :  { %v6103_v58 = vadd.f32 %v1460_v54, %v1458_v57  ;;  %5007 = vrcp.f32 %v1452_v56 }
 0x4c9   :  { %5009 = vtanh.f32 %v6103_v58 }
 0x4d0   :  { %v5006_v60 = vpop.eup %5005 }
 0x4d1   :  { %v5008_v21 = vpop.eup %5007  ;;  %v1465_v63 = vmul.f32 %v5006_v60, %v5004_v59 }
 0x4d3   :  { %v5010_v62 = vpop.eup %5009 }
 0x4d4   :  { %v1466_v1 = vmul.f32 %v5010_v62, %v5008_v21 }
 0x4d6   :  { %v6106_v2 = vpack.c.bf16 %v1466_v1, %v1465_v63 }
 0x4d8   :  { %1512 = vmatmul.mubr.bf16.vlgmr.msra.gmra.mrb[16].mxu0 %v6106_v2  ;;  %1555 = vmatmul.mubr.bf16.vlgmr.msra.gmra.mrb[16].mxu1 %v6106_v2 }
 0x4d9   :  { %1634 = vmatpush1.bf16.msra.mxu0 %v6032_v10  ;;  %1677 = vmatpush1.bf16.msra.mxu1 %v6035_v9 }
 0x4da   :  { %1635 = vmatprep.subr.bf16.mxu0 %v6038_v7  ;;  %1678 = vmatprep.subr.bf16.mxu1 %v6041_v35 }
 0x4db   :  { %1665 = vmatprep.mubr.bf16.mxu0 %v5608_v0  ;;  %1708 = vmatprep.mubr.bf16.mxu1 %v5608_v0 }
 0x4dd   :  { %1636 = vmatpush1.bf16.msra.mxu0 %v6046_v20  ;;  %1679 = vmatpush1.bf16.msra.mxu1 %v6049_v8 }
 0x4de   :  { %1637 = vmatprep.subr.bf16.mxu0 %v6052_v25  ;;  %1680 = vmatprep.subr.bf16.mxu1 %v6055_v17 }
 0x4e1   :  { %1638 = vmatpush1.bf16.msra.mxu0 %v6058_v23  ;;  %1681 = vmatpush1.bf16.msra.mxu1 %v6121_v22 }
 0x4e2   :  { %1639 = vmatprep.subr.bf16.mxu0 %v6062_v36  ;;  %1682 = vmatprep.subr.bf16.mxu1 %v6125_v3 }
 0x4e5   :  { %1640 = vmatpush1.bf16.msra.mxu0 %v6128_v4  ;;  %1683 = vmatpush1.bf16.msra.mxu1 %v6131_v5 }
 0x4e6   :  { %1641 = vmatprep.subr.bf16.mxu0 %v6134_v37  ;;  %1684 = vmatprep.subr.bf16.mxu1 %v6137_v38 }
 0x4e9   :  { %1642 = vmatpush1.bf16.msra.mxu0 %v6140_v39  ;;  %1685 = vmatpush1.bf16.msra.mxu1 %v6143_v40 }
 0x4ea   :  { %1643 = vmatprep.subr.bf16.mxu0 %v6146_v41  ;;  %1686 = vmatprep.subr.bf16.mxu1 %v6149_v42 }
 0x4ed   :  { %1644 = vmatpush1.bf16.msra.mxu0 %v6152_v44  ;;  %1687 = vmatpush1.bf16.msra.mxu1 %v6155_v45 }
 0x4ee   :  { %1645 = vmatprep.subr.bf16.mxu0 %v6158_v46  ;;  %1688 = vmatprep.subr.bf16.mxu1 %v6161_v6 }
 0x4f1   :  { %1646 = vmatpush1.bf16.msra.mxu0 %v6164_v13  ;;  %1689 = vmatpush1.bf16.msra.mxu1 %v6167_v33 }
 0x4f2   :  { %1647 = vmatprep.subr.bf16.mxu0 %v6170_v34  ;;  %1690 = vmatprep.subr.bf16.mxu1 %v6173_v26 }
 0x4f5   :  { %1648 = vmatpush1.bf16.msra.mxu0 %v6176_v18  ;;  %1691 = vmatpush1.bf16.msra.mxu1 %v6179_v31 }
 0x4f6   :  { %1787 = vmatprep.subr.bf16.mxu0 %v6084_v47  ;;  %1830 = vmatprep.subr.bf16.mxu1 %v6087_v48 }
 0x5ab   :  { %v1513_v29 = vpop.f32.mrb[16].mxu0  ;;  %v1556_v30 = vpop.f32.mrb[16].mxu1 }
 0x5ac   :  { %v4420_v43 = vadd.f32 %v1513_v29, %v5890_v15  ;;  %v1515_v49 = vpop.f32.mrb[17].mxu0  ;;  %v1558_v50 = vpop.f32.mrb[17].mxu1 }
 0x5ad   :  { %v4421_v51 = vadd.f32 %v1515_v49, %v5894_v16  ;;  %v1517_v54 = vpop.f32.mrb[18].mxu0  ;;  %v1560_v55 = vpop.f32.mrb[18].mxu1  ;;  %v4453_v29 = vadd.f32 %v1558_v50, %v5903_v32  ;;  %v4452_v49 = vadd.f32 %v1556_v30, %v5908_v61 }
 0x5ae   :  { %v4229_v56 = vmul.f32 -1.442695, %v4420_v43  ;;  %v4422_v57 = vadd.f32 %v1517_v54, %v5890_v15  ;;  %v1519_v59 = vpop.f32.mrb[19].mxu0  ;;  %v1562_v60 = vpop.f32.mrb[19].mxu1  ;;  %v4454_v54 = vadd.f32 %v1560_v55, %v5908_v61 }
 0x5af   :  { %v4231_v21 = vmul.f32 -1.442695, %v4421_v51  ;;  %v4423_v62 = vadd.f32 %v1519_v59, %v5894_v16  ;;  %v4233_v27 = vmul.f32 -1.442695, %v4453_v29  ;;  %v4455_v43 = vadd.f32 %v1562_v60, %v5903_v32 }
 0x5b0   :  { %5011 = vpow2.f32 %v4229_v56  ;;  %v4230_v63 = vmul.f32 -1.442695, %v4422_v57 }
 0x5b1   :  { %5013 = vpow2.f32 %v4231_v21  ;;  %v4232_v1 = vmul.f32 -1.442695, %v4423_v62  ;;  %v4234_v56 = vmul.f32 -1.442695, %v4455_v43 }
 0x5b2   :  { %5015 = vpow2.f32 %v4230_v63 }
 0x5b3   :  { %5017 = vpow2.f32 %v4232_v1 }
 0x5b4   :  { %5019 = vtanh.f32 %v4452_v49 }
 0x5b5   :  { %5021 = vpow2.f32 %v4233_v27 }
 0x5b6   :  { %5023 = vtanh.f32 %v4454_v54 }
 0x5ba   :  { %v5012_v19 = vpop.eup %5011 }
 0x5bb   :  { %v5014_v51 = vpop.eup %5013  ;;  %v1579_v14 = vadd.f32 1.0, %v5012_v19 }
 0x5bc   :  { %v1591_v57 = vadd.f32 1.0, %v5014_v51  ;;  %v5016_v59 = vpop.eup %5015 }
 0x5bd   :  { %5025 = vrcp.f32 %v1579_v14  ;;  %v1580_v50 = vadd.f32 1.0, %v5016_v59  ;;  %v5018_v21 = vpop.eup %5017 }
 0x5be   :  { %5027 = vrcp.f32 %v1591_v57  ;;  %v1592_v30 = vadd.f32 1.0, %v5018_v21  ;;  %v5020_v60 = vpop.eup %5019 }
 0x5bf   :  { %5029 = vpow2.f32 %v4234_v56  ;;  %v5022_v62 = vpop.eup %5021 }
 0x5c0   :  { %5031 = vrcp.f32 %v1580_v50  ;;  %v5024_v55 = vpop.eup %5023  ;;  %v1605_v43 = vadd.f32 1.0, %v5022_v62 }
 0x5c1   :  { %5033 = vrcp.f32 %v1592_v30 }
 0x5c2   :  { %5035 = vrcp.f32 %v1605_v43 }
 0x5c7   :  { %v5026_v63 = vpop.eup %5025 }
 0x5c8   :  { %v5028_v1 = vpop.eup %5027  ;;  %v1613_v29 = vmul.f32 %v5026_v63, %v5020_v60 }
 0x5c9   :  { %v5030_v19 = vpop.eup %5029  ;;  %v1611_v27 = vmul.f32 %v5028_v1, %v6099_v53 }
 0x5ca   :  { %v5032_v49 = vpop.eup %5031  ;;  %v1606_v57 = vadd.f32 1.0, %v5030_v19 }
 0x5cb   :  { %v6193_v54 = vadd.f32 %v1613_v29, %v1611_v27  ;;  %v1614_v14 = vmul.f32 %v5032_v49, %v5024_v55  ;;  %v5034_v51 = vpop.eup %5033 }
 0x5cc   :  { %v1612_v56 = vmul.f32 %v5034_v51, %v6103_v58  ;;  %v5036_v50 = vpop.eup %5035 }
 0x5cd   :  { %5037 = vtanh.f32 %v6193_v54 }
 0x5ce   :  { %v6197_v59 = vadd.f32 %v1614_v14, %v1612_v56  ;;  %5039 = vrcp.f32 %v1606_v57 }
 0x5d0   :  { %5041 = vtanh.f32 %v6197_v59 }
 0x5d7   :  { %v5038_v21 = vpop.eup %5037 }
 0x5d8   :  { %v5040_v53 = vpop.eup %5039  ;;  %v1619_v60 = vmul.f32 %v5038_v21, %v5036_v50 }
 0x5da   :  { %v5042_v30 = vpop.eup %5041 }
 0x5db   :  { %v1620_v62 = vmul.f32 %v5042_v30, %v5040_v53 }
 0x5dd   :  { %v6200_v63 = vpack.c.bf16 %v1620_v62, %v1619_v60 }
 0x5df   :  { %1666 = vmatmul.mubr.bf16.vlgmr.msra.gmra.mrb[20].mxu0 %v6200_v63  ;;  %1709 = vmatmul.mubr.bf16.vlgmr.msra.gmra.mrb[20].mxu1 %v6200_v63 }
 0x5e0   :  { %1788 = vmatpush1.bf16.msra.mxu0 %v6032_v10  ;;  %1831 = vmatpush1.bf16.msra.mxu1 %v6035_v9 }
 0x5e1   :  { %1789 = vmatprep.subr.bf16.mxu0 %v6038_v7  ;;  %1832 = vmatprep.subr.bf16.mxu1 %v6041_v35 }
 0x5e2   :  { %1819 = vmatprep.mubr.bf16.mxu0 %v5608_v0  ;;  %1862 = vmatprep.mubr.bf16.mxu1 %v5608_v0 }
 0x5e4   :  { %1790 = vmatpush1.bf16.msra.mxu0 %v6046_v20  ;;  %1833 = vmatpush1.bf16.msra.mxu1 %v6049_v8 }
 0x5e5   :  { %1791 = vmatprep.subr.bf16.mxu0 %v6052_v25  ;;  %1834 = vmatprep.subr.bf16.mxu1 %v6055_v17 }
 0x5e8   :  { %1792 = vmatpush1.bf16.msra.mxu0 %v6058_v23  ;;  %1835 = vmatpush1.bf16.msra.mxu1 %v6121_v22 }
 0x5e9   :  { %1793 = vmatprep.subr.bf16.mxu0 %v6062_v36  ;;  %1836 = vmatprep.subr.bf16.mxu1 %v6125_v3 }
 0x5ec   :  { %1794 = vmatpush1.bf16.msra.mxu0 %v6128_v4  ;;  %1837 = vmatpush1.bf16.msra.mxu1 %v6131_v5 }
 0x5ed   :  { %1795 = vmatprep.subr.bf16.mxu0 %v6134_v37  ;;  %1838 = vmatprep.subr.bf16.mxu1 %v6137_v38 }
 0x5f0   :  { %1796 = vmatpush1.bf16.msra.mxu0 %v6140_v39  ;;  %1839 = vmatpush1.bf16.msra.mxu1 %v6143_v40 }
 0x5f1   :  { %1797 = vmatprep.subr.bf16.mxu0 %v6146_v41  ;;  %1840 = vmatprep.subr.bf16.mxu1 %v6149_v42 }
 0x5f4   :  { %1798 = vmatpush1.bf16.msra.mxu0 %v6152_v44  ;;  %1841 = vmatpush1.bf16.msra.mxu1 %v6155_v45 }
 0x5f5   :  { %1799 = vmatprep.subr.bf16.mxu0 %v6158_v46  ;;  %1842 = vmatprep.subr.bf16.mxu1 %v6161_v6 }
 0x5f8   :  { %1800 = vmatpush1.bf16.msra.mxu0 %v6164_v13  ;;  %1843 = vmatpush1.bf16.msra.mxu1 %v6167_v33 }
 0x5f9   :  { %1801 = vmatprep.subr.bf16.mxu0 %v6170_v34  ;;  %1844 = vmatprep.subr.bf16.mxu1 %v6173_v26 }
 0x5fc   :  { %1802 = vmatpush1.bf16.msra.mxu0 %v6176_v18  ;;  %1845 = vmatpush1.bf16.msra.mxu1 %v6179_v31 }
 0x5fd   :  { %1941 = vmatprep.subr.bf16.mxu0 %v6084_v47  ;;  %1984 = vmatprep.subr.bf16.mxu1 %v6087_v48 }
 0x6b2   :  { %v1667_v58 = vpop.f32.mrb[20].mxu0  ;;  %v1710_v55 = vpop.f32.mrb[20].mxu1 }
 0x6b3   :  { %v4424_v1 = vadd.f32 %v1667_v58, %v5890_v15  ;;  %v1669_v29 = vpop.f32.mrb[21].mxu0  ;;  %v1712_v19 = vpop.f32.mrb[21].mxu1  ;;  %v4456_v30 = vadd.f32 %v1710_v55, %v5908_v61 }
 0x6b4   :  { %v4425_v27 = vadd.f32 %v1669_v29, %v5894_v16  ;;  %v1671_v49 = vpop.f32.mrb[22].mxu0  ;;  %v1714_v43 = vpop.f32.mrb[22].mxu1  ;;  %v4457_v53 = vadd.f32 %v1712_v19, %v5903_v32 }
 0x6b5   :  { %v4235_v14 = vmul.f32 -1.442695, %v4424_v1  ;;  %v4426_v51 = vadd.f32 %v1671_v49, %v5890_v15  ;;  %v1673_v57 = vpop.f32.mrb[23].mxu0  ;;  %v1716_v56 = vpop.f32.mrb[23].mxu1  ;;  %v4458_v58 = vadd.f32 %v1714_v43, %v5908_v61 }
 0x6b6   :  { %v4237_v50 = vmul.f32 -1.442695, %v4425_v27  ;;  %v4427_v47 = vadd.f32 %v1673_v57, %v5894_v16  ;;  %v4239_v60 = vmul.f32 -1.442695, %v4457_v53  ;;  %v4459_v62 = vadd.f32 %v1716_v56, %v5903_v32 }
 0x6b7   :  { %5043 = vpow2.f32 %v4235_v14  ;;  %v4236_v48 = vmul.f32 -1.442695, %v4426_v51 }
 0x6b8   :  { %5045 = vpow2.f32 %v4237_v50  ;;  %v4238_v21 = vmul.f32 -1.442695, %v4427_v47  ;;  %v4240_v49 = vmul.f32 -1.442695, %v4459_v62 }
 0x6b9   :  { %5047 = vpow2.f32 %v4236_v48 }
 0x6ba   :  { %5049 = vpow2.f32 %v4238_v21 }
 0x6bb   :  { %5051 = vtanh.f32 %v4456_v30 }
 0x6bc   :  { %5053 = vpow2.f32 %v4239_v60 }
 0x6bd   :  { %5055 = vtanh.f32 %v4458_v58 }
 0x6c1   :  { %v5044_v1 = vpop.eup %5043 }
 0x6c2   :  { %v5046_v29 = vpop.eup %5045  ;;  %v1733_v27 = vadd.f32 1.0, %v5044_v1 }
 0x6c3   :  { %v1745_v14 = vadd.f32 1.0, %v5046_v29  ;;  %v5048_v51 = vpop.eup %5047 }
 0x6c4   :  { %5057 = vrcp.f32 %v1733_v27  ;;  %v1734_v19 = vadd.f32 1.0, %v5048_v51  ;;  %v5050_v57 = vpop.eup %5049 }
 0x6c5   :  { %5059 = vrcp.f32 %v1745_v14  ;;  %v1746_v55 = vadd.f32 1.0, %v5050_v57  ;;  %v5052_v56 = vpop.eup %5051 }
 0x6c6   :  { %5061 = vpow2.f32 %v4240_v49  ;;  %v5054_v50 = vpop.eup %5053 }
 0x6c7   :  { %5063 = vrcp.f32 %v1734_v19  ;;  %v5056_v43 = vpop.eup %5055  ;;  %v1759_v62 = vadd.f32 1.0, %v5054_v50 }
 0x6c8   :  { %5065 = vrcp.f32 %v1746_v55 }
 0x6c9   :  { %5067 = vrcp.f32 %v1759_v62 }
 0x6ce   :  { %v5058_v47 = vpop.eup %5057 }
 0x6cf   :  { %v5060_v48 = vpop.eup %5059  ;;  %v1767_v21 = vmul.f32 %v5058_v47, %v5052_v56 }
 0x6d0   :  { %v5062_v53 = vpop.eup %5061  ;;  %v1765_v30 = vmul.f32 %v5060_v48, %v6193_v54 }
 0x6d1   :  { %v5064_v60 = vpop.eup %5063  ;;  %v1760_v27 = vadd.f32 1.0, %v5062_v53 }
 0x6d2   :  { %v6247_v58 = vadd.f32 %v1767_v21, %v1765_v30  ;;  %v1768_v1 = vmul.f32 %v5064_v60, %v5056_v43  ;;  %v5066_v29 = vpop.eup %5065 }
 0x6d3   :  { %v1766_v49 = vmul.f32 %v5066_v29, %v6197_v59  ;;  %v5068_v51 = vpop.eup %5067 }
 0x6d4   :  { %5069 = vtanh.f32 %v6247_v58 }
 0x6d5   :  { %v6251_v14 = vadd.f32 %v1768_v1, %v1766_v49  ;;  %5071 = vrcp.f32 %v1760_v27 }
 0x6d7   :  { %5073 = vtanh.f32 %v6251_v14 }
 0x6de   :  { %v5070_v19 = vpop.eup %5069 }
 0x6df   :  { %v5072_v54 = vpop.eup %5071  ;;  %v1773_v55 = vmul.f32 %v5070_v19, %v5068_v51 }
 0x6e1   :  { %v5074_v57 = vpop.eup %5073 }
 0x6e2   :  { %v1774_v56 = vmul.f32 %v5074_v57, %v5072_v54 }
 0x6e4   :  { %v6254_v50 = vpack.c.bf16 %v1774_v56, %v1773_v55 }
 0x6e6   :  { %1820 = vmatmul.mubr.bf16.vlgmr.msra.gmra.mrb[24].mxu0 %v6254_v50  ;;  %1863 = vmatmul.mubr.bf16.vlgmr.msra.gmra.mrb[24].mxu1 %v6254_v50 }
 0x6e7   :  { %1942 = vmatpush1.bf16.msra.mxu0 %v6032_v10  ;;  %1985 = vmatpush1.bf16.msra.mxu1 %v6035_v9  ;;  %v4781_v10 = vld [vmem:[#allocation10 + $0x4] ss:$16 sps:$4 sm:$0xff]   ;;  %v4784_v9 = vld [vmem:[#allocation10 + $0xc] ss:$16 sps:$4 sm:$0xff]  }
 0x6e8   :  { %1943 = vmatprep.subr.bf16.mxu0 %v6038_v7  ;;  %1986 = vmatprep.subr.bf16.mxu1 %v6041_v35 }
 0x6e9   :  { %1973 = vmatprep.mubr.bf16.mxu0 %v5608_v0  ;;  %2016 = vmatprep.mubr.bf16.mxu1 %v5608_v0 }
 0x6eb   :  { %1944 = vmatpush1.bf16.msra.mxu0 %v6046_v20  ;;  %1987 = vmatpush1.bf16.msra.mxu1 %v6049_v8 }
 0x6ec   :  { %1945 = vmatprep.subr.bf16.mxu0 %v6052_v25  ;;  %1988 = vmatprep.subr.bf16.mxu1 %v6055_v17 }
 0x6ef   :  { %1946 = vmatpush1.bf16.msra.mxu0 %v6058_v23  ;;  %1989 = vmatpush1.bf16.msra.mxu1 %v6121_v22 }
 0x6f0   :  { %1947 = vmatprep.subr.bf16.mxu0 %v6062_v36  ;;  %1990 = vmatprep.subr.bf16.mxu1 %v6125_v3 }
 0x6f3   :  { %1948 = vmatpush1.bf16.msra.mxu0 %v6128_v4  ;;  %1991 = vmatpush1.bf16.msra.mxu1 %v6131_v5 }
 0x6f4   :  { %1949 = vmatprep.subr.bf16.mxu0 %v6134_v37  ;;  %1992 = vmatprep.subr.bf16.mxu1 %v6137_v38 }
 0x6f7   :  { %1950 = vmatpush1.bf16.msra.mxu0 %v6140_v39  ;;  %1993 = vmatpush1.bf16.msra.mxu1 %v6143_v40 }
 0x6f8   :  { %1951 = vmatprep.subr.bf16.mxu0 %v6146_v41  ;;  %1994 = vmatprep.subr.bf16.mxu1 %v6149_v42 }
 0x6fb   :  { %1952 = vmatpush1.bf16.msra.mxu0 %v6152_v44  ;;  %1995 = vmatpush1.bf16.msra.mxu1 %v6155_v45 }
 0x6fc   :  { %1953 = vmatprep.subr.bf16.mxu0 %v6158_v46  ;;  %1996 = vmatprep.subr.bf16.mxu1 %v6161_v6 }
 0x6ff   :  { %1954 = vmatpush1.bf16.msra.mxu0 %v6164_v13  ;;  %1997 = vmatpush1.bf16.msra.mxu1 %v6167_v33 }
 0x700   :  { %1955 = vmatprep.subr.bf16.mxu0 %v6170_v34  ;;  %1998 = vmatprep.subr.bf16.mxu1 %v6173_v26 }
 0x703   :  { %1956 = vmatpush1.bf16.msra.mxu0 %v6176_v18  ;;  %1999 = vmatpush1.bf16.msra.mxu1 %v6179_v31 }
 0x704   :  { %2309 = vmatprep.subr.bf16.mxu0 %v4781_v10  ;;  %2422 = vmatprep.subr.bf16.mxu1 %v4784_v9 }
 0x7b9   :  { %v1821_v7 = vpop.f32.mrb[24].mxu0  ;;  %v1864_v35 = vpop.f32.mrb[24].mxu1 }
 0x7ba   :  { %v4428_v20 = vadd.f32 %v1821_v7, %v5890_v15  ;;  %v1823_v8 = vpop.f32.mrb[25].mxu0  ;;  %v1866_v25 = vpop.f32.mrb[25].mxu1  ;;  %v4460_v42 = vadd.f32 %v1864_v35, %v5908_v61 }
 0x7bb   :  { %v4429_v17 = vadd.f32 %v1823_v8, %v5894_v16  ;;  %v1825_v23 = vpop.f32.mrb[26].mxu0  ;;  %v1868_v36 = vpop.f32.mrb[26].mxu1  ;;  %v4461_v41 = vadd.f32 %v1866_v25, %v5903_v32  ;;  %v4782_v8 = vld [vmem:[#allocation10 + $0x8] ss:$16 sps:$4 sm:$0xff]  }
 0x7bc   :  { %v4241_v22 = vmul.f32 -1.442695, %v4428_v20  ;;  %v4430_v3 = vadd.f32 %v1825_v23, %v5890_v15  ;;  %v1827_v4 = vpop.f32.mrb[27].mxu0  ;;  %v1870_v5 = vpop.f32.mrb[27].mxu1  ;;  %v4462_v46 = vadd.f32 %v1868_v36, %v5908_v61  ;;  %v4779_v20 = vld [vmem:[#allocation10] ss:$16 sps:$4 sm:$0xff]  }
 0x7bd   :  { %v4243_v37 = vmul.f32 -1.442695, %v4429_v17  ;;  %v4431_v38 = vadd.f32 %v1827_v4, %v5894_v16  ;;  %v4245_v44 = vmul.f32 -1.442695, %v4461_v41  ;;  %v4463_v45 = vadd.f32 %v1870_v5, %v5903_v32  ;;  %v4787_v17 = vld [vmem:[#allocation10 + $0x24] ss:$16 sps:$4 sm:$0xff]  }
 0x7be   :  { %5075 = vpow2.f32 %v4241_v22  ;;  %v4242_v39 = vmul.f32 -1.442695, %v4430_v3  ;;  %v4785_v23 = vld [vmem:[#allocation10 + $0x20] ss:$16 sps:$4 sm:$0xff]   ;;  %v4788_v36 = vld [vmem:[#allocation10 + $0x28] ss:$16 sps:$4 sm:$0xff]  }
 0x7bf   :  { %5077 = vpow2.f32 %v4243_v37  ;;  %v4244_v40 = vmul.f32 -1.442695, %v4431_v38  ;;  %v4246_v34 = vmul.f32 -1.442695, %v4463_v45  ;;  %v4793_v22 = vld [vmem:[#allocation10 + $0x44] ss:$16 sps:$4 sm:$0xff]  }
 0x7c0   :  { %5079 = vpow2.f32 %v4242_v39  ;;  %v4796_v3 = vld [vmem:[#allocation10 + $0x4c] ss:$16 sps:$4 sm:$0xff]   ;;  %v4791_v4 = vld [vmem:[#allocation10 + $0x40] ss:$16 sps:$4 sm:$0xff]   ;;  %v4794_v5 = vld [vmem:[#allocation10 + $0x48] ss:$16 sps:$4 sm:$0xff]  }
 0x7c1   :  { %5081 = vpow2.f32 %v4244_v40  ;;  %v4799_v37 = vld [vmem:[#allocation10 + $0x64] ss:$16 sps:$4 sm:$0xff]   ;;  %v4802_v38 = vld [vmem:[#allocation10 + $0x6c] ss:$16 sps:$4 sm:$0xff]   ;;  %v4797_v39 = vld [vmem:[#allocation10 + $0x60] ss:$16 sps:$4 sm:$0xff]  }
 0x7c2   :  { %5083 = vtanh.f32 %v4460_v42  ;;  %v4800_v40 = vld [vmem:[#allocation10 + $0x68] ss:$16 sps:$4 sm:$0xff]   ;;  %v4805_v41 = vld [vmem:[#allocation10 + $0x84] ss:$16 sps:$4 sm:$0xff]   ;;  %v4808_v42 = vld [vmem:[#allocation10 + $0x8c] ss:$16 sps:$4 sm:$0xff]  }
 0x7c3   :  { %5085 = vpow2.f32 %v4245_v44  ;;  %v4803_v44 = vld [vmem:[#allocation10 + $0x80] ss:$16 sps:$4 sm:$0xff]   ;;  %v4806_v45 = vld [vmem:[#allocation10 + $0x88] ss:$16 sps:$4 sm:$0xff]  }
 0x7c4   :  { %5087 = vtanh.f32 %v4462_v46  ;;  %v4811_v46 = vld [vmem:[#allocation10 + $0xa4] ss:$16 sps:$4 sm:$0xff]  }
 0x7c8   :  { %v5076_v6 = vpop.eup %5075 }
 0x7c9   :  { %v5078_v13 = vpop.eup %5077  ;;  %v1887_v33 = vadd.f32 1.0, %v5076_v6  ;;  %v4814_v6 = vld [vmem:[#allocation10 + $0xac] ss:$16 sps:$4 sm:$0xff]  }
 0x7ca   :  { %v1899_v26 = vadd.f32 1.0, %v5078_v13  ;;  %v5080_v18 = vpop.eup %5079  ;;  %v4809_v13 = vld [vmem:[#allocation10 + $0xa0] ss:$16 sps:$4 sm:$0xff]  }
 0x7cb   :  { %5089 = vrcp.f32 %v1887_v33  ;;  %v1888_v31 = vadd.f32 1.0, %v5080_v18  ;;  %v5082_v59 = vpop.eup %5081  ;;  %v4812_v33 = vld [vmem:[#allocation10 + $0xa8] ss:$16 sps:$4 sm:$0xff]   ;;  %v4815_v18 = vld [vmem:[#allocation10 + $0xc0] ss:$16 sps:$4 sm:$0xff]  }
 0x7cc   :  { %5091 = vrcp.f32 %v1899_v26  ;;  %v1900_v43 = vadd.f32 1.0, %v5082_v59  ;;  %v5084_v47 = vpop.eup %5083  ;;  %v4820_v26 = vld [vmem:[#allocation10 + $0xcc] ss:$16 sps:$4 sm:$0xff]   ;;  %v4823_v59 = vld [vmem:[#allocation10 + $0xe4] ss:$16 sps:$4 sm:$0xff]  }
 0x7cd   :  { %5093 = vpow2.f32 %v4246_v34  ;;  %v5086_v48 = vpop.eup %5085  ;;  %v4817_v34 = vld [vmem:[#allocation10 + $0xc4] ss:$16 sps:$4 sm:$0xff]  }
 0x7ce   :  { %5095 = vrcp.f32 %v1888_v31  ;;  %v5088_v21 = vpop.eup %5087  ;;  %v1913_v27 = vadd.f32 1.0, %v5086_v48  ;;  %v4818_v31 = vld [vmem:[#allocation10 + $0xc8] ss:$16 sps:$4 sm:$0xff]  }
 0x7cf   :  { %5097 = vrcp.f32 %v1900_v43  ;;  %v4826_v43 = vld [vmem:[#allocation10 + $0xec] ss:$16 sps:$4 sm:$0xff]   ;;  %v4824_v48 = vld [vmem:[#allocation10 + $0xe8] ss:$16 sps:$4 sm:$0xff]  }
 0x7d0   :  { %5099 = vrcp.f32 %v1913_v27  ;;  %v6376_v27 = vld [vmem:[#allocation11 + $0x16c] ss:$16 sps:$4 sm:$0xff]  }
 0x7d5   :  { %v5090_v53 = vpop.eup %5089 }
 0x7d6   :  { %v5092_v30 = vpop.eup %5091  ;;  %v1921_v60 = vmul.f32 %v5090_v53, %v5084_v47  ;;  %v4821_v47 = vld [vmem:[#allocation10 + $0xe0] ss:$16 sps:$4 sm:$0xff]  }
 0x7d7   :  { %v5094_v62 = vpop.eup %5093  ;;  %v1919_v1 = vmul.f32 %v5092_v30, %v6247_v58  ;;  %v6315_v53 = vld [vmem:[#allocation11 + $0x100] ss:$16 sps:$4 sm:$0xff]   ;;  %v6362_v30 = vld [vmem:[#allocation11 + $0x128] ss:$16 sps:$4 sm:$0xff]  }
 0x7d8   :  { %v5096_v29 = vpop.eup %5095  ;;  %v1914_v54 = vadd.f32 1.0, %v5094_v62  ;;  %v6367_v62 = vld [vmem:[#allocation11 + $0x14c] ss:$16 sps:$4 sm:$0xff]  }
 0x7d9   :  { %v6299_v49 = vadd.f32 %v1921_v60, %v1919_v1  ;;  %v1922_v51 = vmul.f32 %v5096_v29, %v5088_v21  ;;  %v5098_v19 = vpop.eup %5097  ;;  %v6312_v21 = vld [vmem:[#allocation11 + $0x104] ss:$16 sps:$4 sm:$0xff]   ;;  %v6365_v60 = vld [vmem:[#allocation11 + $0x140] ss:$16 sps:$4 sm:$0xff]   ;;  %v6373_v29 = vld [vmem:[#allocation11 + $0x148] ss:$16 sps:$4 sm:$0xff]  }
 0x7da   :  { %v1920_v57 = vmul.f32 %v5098_v19, %v6251_v14  ;;  %v5100_v56 = vpop.eup %5099  ;;  %v4790_v14 = vld [vmem:[#allocation10 + $0x2c] ss:$16 sps:$4 sm:$0xff]   ;;  %v6370_v1 = vld [vmem:[#allocation11 + $0x164] ss:$16 sps:$4 sm:$0xff]  }
 0x7db   :  { %5101 = vtanh.f32 %v6299_v49  ;;  %v6382_v19 = vld [vmem:[#allocation11 + $0x184] ss:$16 sps:$4 sm:$0xff]  }
 0x7dc   :  { %v6303_v55 = vadd.f32 %v1922_v51, %v1920_v57  ;;  %5103 = vrcp.f32 %v1914_v54  ;;  %v6379_v51 = vld [vmem:[#allocation11 + $0x160] ss:$16 sps:$4 sm:$0xff]   ;;  %v6385_v54 = vld [vmem:[#allocation11 + $0x168] ss:$16 sps:$4 sm:$0xff]   ;;  %v6388_v57 = vld [vmem:[#allocation11 + $0x18c] ss:$16 sps:$4 sm:$0xff]  }
 0x7de   :  { %5105 = vtanh.f32 %v6303_v55 }
 0x7e5   :  { %v5102_v10 = vpop.eup %5101 }
 0x7e6   :  { %v5104_v58 = vpop.eup %5103  ;;  %v1927_v7 = vmul.f32 %v5102_v10, %v5100_v56  ;;  %v6391_v56 = vld [vmem:[#allocation11 + $0x180] ss:$16 sps:$4 sm:$0xff]   ;;  %v6394_v10 = vld [vmem:[#allocation11 + $0x1a4] ss:$16 sps:$4 sm:$0xff]  }
 0x7e8   :  { %v5106_v9 = vpop.eup %5105 }
 0x7e9   :  { %v1928_v35 = vmul.f32 %v5106_v9, %v5104_v58  ;;  %v6397_v58 = vld [vmem:[#allocation11 + $0x188] ss:$16 sps:$4 sm:$0xff]   ;;  %v6400_v9 = vld [vmem:[#allocation11 + $0x1ac] ss:$16 sps:$4 sm:$0xff]  }
 0x7eb   :  { %v6306_v25 = vpack.c.bf16 %v1928_v35, %v1927_v7  ;;  %v6403_v7 = vld [vmem:[#allocation11 + $0x1a0] ss:$16 sps:$4 sm:$0xff]   ;;  %v6406_v35 = vld [vmem:[#allocation11 + $0x1c4] ss:$16 sps:$4 sm:$0xff]  }
 0x7ed   :  { %1974 = vmatmul.mubr.bf16.vlgmr.msra.gmra.mrb[28].mxu0 %v6306_v25  ;;  %2017 = vmatmul.mubr.bf16.vlgmr.msra.gmra.mrb[28].mxu1 %v6306_v25 }
 0x7ee   :  { %2310 = vmatpush1.bf16.msra.mxu0 %v4779_v20  ;;  %2423 = vmatpush1.bf16.msra.mxu1 %v4782_v8  ;;  %v6409_v20 = vld [vmem:[#allocation11 + $0x1a8] ss:$16 sps:$4 sm:$0xff]   ;;  %v6413_v8 = vld [vmem:[#allocation11 + $0x1c0] ss:$16 sps:$4 sm:$0xff]  }
 0x7ef   :  { %2311 = vmatprep.subr.bf16.mxu0 %v4787_v17  ;;  %2424 = vmatprep.subr.bf16.mxu1 %v4790_v14  ;;  %v6419_v17 = vld [vmem:[#allocation11 + $0x1cc] ss:$16 sps:$4 sm:$0xff]   ;;  %v6421_v14 = vld [vmem:[#allocation11 + $0x1c8] ss:$16 sps:$4 sm:$0xff]  }
 0x7f0   :  { %2341 = vmatprep.mubr.bf16.mxu0 %v5608_v0  ;;  %2454 = vmatprep.mubr.bf16.mxu1 %v5608_v0 }
 0x7f2   :  { %2312 = vmatpush1.bf16.msra.mxu0 %v4785_v23  ;;  %2425 = vmatpush1.bf16.msra.mxu1 %v4788_v36  ;;  %v6423_v23 = vld [vmem:[#allocation11 + $0x1ec] ss:$16 sps:$4 sm:$0xff]   ;;  %v6427_v36 = vld [vmem:[#allocation11 + $0x1e0] ss:$16 sps:$4 sm:$0xff]  }
 0x7f3   :  { %2313 = vmatprep.subr.bf16.mxu0 %v4793_v22  ;;  %2426 = vmatprep.subr.bf16.mxu1 %v4796_v3  ;;  %v6431_v22 = vld [vmem:[#allocation11 + $0x1e8] ss:$16 sps:$4 sm:$0xff]  }
 0x7f6   :  { %2314 = vmatpush1.bf16.msra.mxu0 %v4791_v4  ;;  %2427 = vmatpush1.bf16.msra.mxu1 %v4794_v5 }
 0x7f7   :  { %2315 = vmatprep.subr.bf16.mxu0 %v4799_v37  ;;  %2428 = vmatprep.subr.bf16.mxu1 %v4802_v38 }
 0x7fa   :  { %2316 = vmatpush1.bf16.msra.mxu0 %v4797_v39  ;;  %2429 = vmatpush1.bf16.msra.mxu1 %v4800_v40 }
 0x7fb   :  { %2317 = vmatprep.subr.bf16.mxu0 %v4805_v41  ;;  %2430 = vmatprep.subr.bf16.mxu1 %v4808_v42 }
 0x7fe   :  { %2318 = vmatpush1.bf16.msra.mxu0 %v4803_v44  ;;  %2431 = vmatpush1.bf16.msra.mxu1 %v4806_v45 }
 0x7ff   :  { %2319 = vmatprep.subr.bf16.mxu0 %v4811_v46  ;;  %2432 = vmatprep.subr.bf16.mxu1 %v4814_v6 }
 0x802   :  { %2320 = vmatpush1.bf16.msra.mxu0 %v4809_v13  ;;  %2433 = vmatpush1.bf16.msra.mxu1 %v4812_v33 }
 0x803   :  { %2321 = vmatprep.subr.bf16.mxu0 %v4817_v34  ;;  %2434 = vmatprep.subr.bf16.mxu1 %v4820_v26 }
 0x806   :  { %2322 = vmatpush1.bf16.msra.mxu0 %v4815_v18  ;;  %2435 = vmatpush1.bf16.msra.mxu1 %v4818_v31 }
 0x807   :  { %2323 = vmatprep.subr.bf16.mxu0 %v4823_v59  ;;  %2436 = vmatprep.subr.bf16.mxu1 %v4826_v43 }
 0x80a   :  { %2324 = vmatpush1.bf16.msra.mxu0 %v4821_v47  ;;  %2437 = vmatpush1.bf16.msra.mxu1 %v4824_v48 }
 0x80b   :  { %2800 = vmatprep.subr.bf16.mxu0 %v6312_v21 }
 0x80d   :  { %2342 = vmatmul.mubr.bf16.vlgmr.msra.gmra.mrb[32].mxu0 %v5920_v28  ;;  %2455 = vmatmul.mubr.bf16.vlgmr.msra.gmra.mrb[32].mxu1 %v5920_v28  ;;  %v6346_v28 = vld [vmem:[#allocation11 + $0x10c] ss:$16 sps:$4 sm:$0xff]  }
 0x80e   :  { %2351 = vmatprep.mubr.bf16.mxu0 %v5608_v0  ;;  %2464 = vmatprep.mubr.bf16.mxu1 %v5608_v0 }
 0x80f   :  { %2801 = vmatpush1.bf16.msra.mxu0 %v6315_v53  ;;  %2843 = vmatprep.subr.bf16.mxu1 %v6346_v28 }
 0x815   :  { %2352 = vmatmul.mubr.bf16.gmra.mrb[36].mxu0 %v5974_v24  ;;  %2465 = vmatmul.mubr.bf16.gmra.mrb[36].mxu1 %v5974_v24  ;;  %v6348_v24 = vld [vmem:[#allocation11 + $0x108] ss:$16 sps:$4 sm:$0xff]  }
 0x816   :  { %2361 = vmatprep.mubr.bf16.mxu0 %v5608_v0  ;;  %2474 = vmatprep.mubr.bf16.mxu1 %v5608_v0 }
 0x817   :  { %2844 = vmatpush1.bf16.msra.mxu1 %v6348_v24 }
 0x81d   :  { %2362 = vmatmul.mubr.bf16.gmra.mrb[40].mxu0 %v6028_v52  ;;  %2475 = vmatmul.mubr.bf16.gmra.mrb[40].mxu1 %v6028_v52  ;;  %v6352_v52 = vld [vmem:[#allocation11 + $0x124] ss:$16 sps:$4 sm:$0xff]  }
 0x81e   :  { %2371 = vmatprep.mubr.bf16.mxu0 %v5608_v0  ;;  %2484 = vmatprep.mubr.bf16.mxu1 %v5608_v0 }
 0x81f   :  { %2802 = vmatprep.subr.bf16.mxu0 %v6352_v52 }
 0x825   :  { %2372 = vmatmul.mubr.bf16.gmra.mrb[44].mxu0 %v6106_v2  ;;  %2485 = vmatmul.mubr.bf16.gmra.mrb[44].mxu1 %v6106_v2  ;;  %v6354_v2 = vld [vmem:[#allocation11 + $0x12c] ss:$16 sps:$4 sm:$0xff]  }
 0x826   :  { %2381 = vmatprep.mubr.bf16.mxu0 %v5608_v0  ;;  %2494 = vmatprep.mubr.bf16.mxu1 %v5608_v0 }
 0x827   :  { %2845 = vmatprep.subr.bf16.mxu1 %v6354_v2 }
 0x828   :  { %2846 = vmatpush1.bf16.msra.mxu1 %v6362_v30 }
 0x829   :  { %2847 = vmatprep.subr.bf16.mxu1 %v6367_v62 }
 0x82c   :  { %2848 = vmatpush1.bf16.msra.mxu1 %v6373_v29 }
 0x82d   :  { %2382 = vmatmul.mubr.bf16.gmra.mrb[48].mxu0 %v6200_v63  ;;  %2495 = vmatmul.mubr.bf16.gmra.mrb[48].mxu1 %v6200_v63  ;;  %v6356_v63 = vld [vmem:[#allocation11 + $0x120] ss:$16 sps:$4 sm:$0xff]  }
 0x82e   :  { %2391 = vmatprep.mubr.bf16.mxu0 %v5608_v0  ;;  %2504 = vmatprep.mubr.bf16.mxu1 %v5608_v0 }
 0x82f   :  { %2803 = vmatpush1.bf16.msra.mxu0 %v6356_v63  ;;  %2849 = vmatprep.subr.bf16.mxu1 %v6376_v27 }
 0x830   :  { %2850 = vmatpush1.bf16.msra.mxu1 %v6385_v54 }
 0x831   :  { %2851 = vmatprep.subr.bf16.mxu1 %v6388_v57 }
 0x834   :  { %2852 = vmatpush1.bf16.msra.mxu1 %v6397_v58 }
 0x835   :  { %2392 = vmatmul.mubr.bf16.gmra.mrb[52].mxu0 %v6254_v50  ;;  %2505 = vmatmul.mubr.bf16.gmra.mrb[52].mxu1 %v6254_v50  ;;  %v6358_v50 = vld [vmem:[#allocation11 + $0x144] ss:$16 sps:$4 sm:$0xff]  }
 0x836   :  { %2401 = vmatprep.mubr.bf16.mxu0 %v5608_v0  ;;  %2514 = vmatprep.mubr.bf16.mxu1 %v5608_v0 }
 0x837   :  { %2804 = vmatprep.subr.bf16.mxu0 %v6358_v50  ;;  %2853 = vmatprep.subr.bf16.mxu1 %v6400_v9 }
 0x838   :  { %2805 = vmatpush1.bf16.msra.mxu0 %v6365_v60  ;;  %2854 = vmatpush1.bf16.msra.mxu1 %v6409_v20 }
 0x839   :  { %2806 = vmatprep.subr.bf16.mxu0 %v6370_v1  ;;  %2855 = vmatprep.subr.bf16.mxu1 %v6419_v17 }
 0x83c   :  { %2807 = vmatpush1.bf16.msra.mxu0 %v6379_v51  ;;  %2856 = vmatpush1.bf16.msra.mxu1 %v6421_v14 }
 0x83d   :  { %2402 = vmatmul.mubr.bf16.gmra.mrb[56].mxu0 %v6306_v25  ;;  %2515 = vmatmul.mubr.bf16.gmra.mrb[56].mxu1 %v6306_v25  ;;  %v6417_v25 = vld [vmem:[#allocation11 + $0x1e4] ss:$16 sps:$4 sm:$0xff]  }
 0x83e   :  { %2411 = vmatprep.mubr.bf16.mxu0 %v5608_v0  ;;  %2524 = vmatprep.mubr.bf16.mxu1 %v5608_v0 }
 0x83f   :  { %2808 = vmatprep.subr.bf16.mxu0 %v6382_v19  ;;  %2857 = vmatprep.subr.bf16.mxu1 %v6423_v23 }
 0x840   :  { %2809 = vmatpush1.bf16.msra.mxu0 %v6391_v56  ;;  %2858 = vmatpush1.bf16.msra.mxu1 %v6431_v22 }
 0x841   :  { %2810 = vmatprep.subr.bf16.mxu0 %v6394_v10  ;;  %2994 = vmatprep.subr.bf16.mxu1 %v6346_v28 }
 0x844   :  { %2811 = vmatpush1.bf16.msra.mxu0 %v6403_v7 }
 0x845   :  { %2812 = vmatprep.subr.bf16.mxu0 %v6406_v35 }
 0x848   :  { %2813 = vmatpush1.bf16.msra.mxu0 %v6413_v8 }
 0x849   :  { %2814 = vmatprep.subr.bf16.mxu0 %v6417_v25 }
 0x84c   :  { %2815 = vmatpush1.bf16.msra.mxu0 %v6427_v36 }
 0x84d   :  { %2951 = vmatprep.subr.bf16.mxu0 %v6312_v21 }
 0x8c0   :  { %v1975_v3 = vpop.f32.mrb[28].mxu0  ;;  %v2018_v4 = vpop.f32.mrb[28].mxu1 }
 0x8c1   :  { %v4432_v5 = vadd.f32 %v1975_v3, %v5890_v15  ;;  %v1977_v37 = vpop.f32.mrb[29].mxu0  ;;  %v2020_v38 = vpop.f32.mrb[29].mxu1  ;;  %v4464_v18 = vadd.f32 %v2018_v4, %v5908_v61 }
 0x8c2   :  { %v4433_v39 = vadd.f32 %v1977_v37, %v5894_v16  ;;  %v1979_v40 = vpop.f32.mrb[30].mxu0  ;;  %v2022_v41 = vpop.f32.mrb[30].mxu1  ;;  %v4465_v26 = vadd.f32 %v2020_v38, %v5903_v32 }
 0x8c3   :  { %v4247_v42 = vmul.f32 -1.442695, %v4432_v5  ;;  %v4434_v44 = vadd.f32 %v1979_v40, %v5890_v15  ;;  %v1981_v45 = vpop.f32.mrb[31].mxu0  ;;  %v2024_v46 = vpop.f32.mrb[31].mxu1  ;;  %v4466_v15 = vadd.f32 %v2022_v41, %v5908_v61 }
 0x8c4   :  { %v4249_v6 = vmul.f32 -1.442695, %v4433_v39  ;;  %v4435_v13 = vadd.f32 %v1981_v45, %v5894_v16  ;;  %v4251_v31 = vmul.f32 -1.442695, %v4465_v26  ;;  %v4467_v59 = vadd.f32 %v2024_v46, %v5903_v32 }
 0x8c5   :  { %5107 = vpow2.f32 %v4247_v42  ;;  %v4248_v33 = vmul.f32 -1.442695, %v4434_v44 }
 0x8c6   :  { %5109 = vpow2.f32 %v4249_v6  ;;  %v4250_v34 = vmul.f32 -1.442695, %v4435_v13  ;;  %v4252_v16 = vmul.f32 -1.442695, %v4467_v59 }
 0x8c7   :  { %5111 = vpow2.f32 %v4248_v33 }
 0x8c8   :  { %5113 = vpow2.f32 %v4250_v34 }
 0x8c9   :  { %5115 = vtanh.f32 %v4464_v18 }
 0x8ca   :  { %5117 = vpow2.f32 %v4251_v31 }
 0x8cb   :  { %5119 = vtanh.f32 %v4466_v15 }
 0x8cf   :  { %v5108_v43 = vpop.eup %5107 }
 0x8d0   :  { %v5110_v47 = vpop.eup %5109  ;;  %v2041_v48 = vadd.f32 1.0, %v5108_v43 }
 0x8d1   :  { %v2053_v3 = vadd.f32 1.0, %v5110_v47  ;;  %v5112_v5 = vpop.eup %5111 }
 0x8d2   :  { %5121 = vrcp.f32 %v2041_v48  ;;  %v2042_v37 = vadd.f32 1.0, %v5112_v5  ;;  %v5114_v38 = vpop.eup %5113  ;;  %v6917_v5 = vsub.s32 1, %v5881_v11 }
 0x8d3   :  { %5123 = vrcp.f32 %v2053_v3  ;;  %v2054_v4 = vadd.f32 1.0, %v5114_v38  ;;  %v5116_v32 = vpop.eup %5115 }
 0x8d4   :  { %5125 = vpow2.f32 %v4252_v16  ;;  %v5118_v39 = vpop.eup %5117 }
 0x8d5   :  { %5127 = vrcp.f32 %v2042_v37  ;;  %v5120_v61 = vpop.eup %5119  ;;  %v2067_v44 = vadd.f32 1.0, %v5118_v39 }
 0x8d6   :  { %5129 = vrcp.f32 %v2054_v4 }
 0x8d7   :  { %5131 = vrcp.f32 %v2067_v44 }
 0x8dc   :  { %v5122_v40 = vpop.eup %5121 }
 0x8dd   :  { %v5124_v41 = vpop.eup %5123  ;;  %v2075_v42 = vmul.f32 %v5122_v40, %v5116_v32 }
 0x8de   :  { %v5126_v45 = vpop.eup %5125  ;;  %v2073_v46 = vmul.f32 %v5124_v41, %v6299_v49  ;;  %v4253_v49 = vld [vmem:[%s6910_s4 + $0x4] sm:$0xf] }
 0x8df   :  { %v5128_v6 = vpop.eup %5127  ;;  %v2068_v26 = vadd.f32 1.0, %v5126_v45  ;;  %v6495_v37 = vrot.slane %v4253_v49, %v6917_v5 }
 0x8e0   :  { %v2076_v13 = vmul.f32 %v5128_v6, %v5120_v61  ;;  %v2077_v33 = vadd.f32 %v2075_v42, %v2073_v46  ;;  %v5130_v34 = vpop.eup %5129 }
 0x8e1   :  { %v2074_v18 = vmul.f32 %v5130_v34, %v6303_v55  ;;  %v5132_v59 = vpop.eup %5131  ;;  %v6491_v55 = vrot.slane %v4253_v49, %v148_v12 }
 0x8e2   :  { %5133 = vtanh.f32 %v2077_v33 }
 0x8e3   :  { %v2078_v31 = vadd.f32 %v2076_v13, %v2074_v18  ;;  %5135 = vrcp.f32 %v2068_v26  ;;  %v6918_v13 = vsub.s32 3, %v5881_v11 }
 0x8e5   :  { %5137 = vtanh.f32 %v2078_v31  ;;  %v6502_v33 = vrot.slane %v4253_v49, %v6918_v13  ;;  %v6919_v31 = vsub.s32 2, %v5881_v11 }
 0x8ec   :  { %v5134_v15 = vpop.eup %5133 }
 0x8ed   :  { %v2081_v43 = vmul.f32 %v5134_v15, %v5132_v59  ;;  %v5136_v47 = vpop.eup %5135  ;;  %v6507_v59 = vrot.slane %v4253_v49, %v6919_v31 }
 0x8ef   :  { %v5138_v48 = vpop.eup %5137 }
 0x8f0   :  { %v2082_v16 = vmul.f32 %v5138_v48, %v5136_v47 }
 0x8f2   :  { %v2083_v3 = vpack.c.bf16 %v2082_v16, %v2081_v43 }
 0x8f4   :  { %2412 = vmatmul.mubr.bf16.gmra.mrb[60].mxu0 %v2083_v3  ;;  %2525 = vmatmul.mubr.bf16.gmra.mrb[60].mxu1 %v2083_v3 }
 0x8f5   :  { %2832 = vmatprep.mubr.bf16.mxu0 %v5608_v0  ;;  %2875 = vmatprep.mubr.bf16.mxu1 %v5608_v0 }
 0x8fc   :  { %2833 = vmatmul.mubr.bf16.vlgmr.msra.gmra.mrb[32].mxu0 %v5608_v0  ;;  %2876 = vmatmul.mubr.bf16.vlgmr.msra.gmra.mrb[32].mxu1 %v5608_v0 }
 0x8fd   :  { %2952 = vmatpush1.bf16.msra.mxu0 %v6315_v53  ;;  %2995 = vmatpush1.bf16.msra.mxu1 %v6348_v24 }
 0x8fe   :  { %2953 = vmatprep.subr.bf16.mxu0 %v6352_v52  ;;  %2996 = vmatprep.subr.bf16.mxu1 %v6354_v2 }
 0x8ff   :  { %2983 = vmatprep.mubr.bf16.mxu0 %v5608_v0  ;;  %3026 = vmatprep.mubr.bf16.mxu1 %v5608_v0 }
 0x901   :  { %2954 = vmatpush1.bf16.msra.mxu0 %v6356_v63  ;;  %2997 = vmatpush1.bf16.msra.mxu1 %v6362_v30 }
 0x902   :  { %2955 = vmatprep.subr.bf16.mxu0 %v6358_v50  ;;  %2998 = vmatprep.subr.bf16.mxu1 %v6367_v62 }
 0x905   :  { %2956 = vmatpush1.bf16.msra.mxu0 %v6365_v60  ;;  %2999 = vmatpush1.bf16.msra.mxu1 %v6373_v29 }
 0x906   :  { %2957 = vmatprep.subr.bf16.mxu0 %v6370_v1  ;;  %3000 = vmatprep.subr.bf16.mxu1 %v6376_v27 }
 0x909   :  { %2958 = vmatpush1.bf16.msra.mxu0 %v6379_v51  ;;  %3001 = vmatpush1.bf16.msra.mxu1 %v6385_v54 }
 0x90a   :  { %2959 = vmatprep.subr.bf16.mxu0 %v6382_v19  ;;  %3002 = vmatprep.subr.bf16.mxu1 %v6388_v57 }
 0x90d   :  { %2960 = vmatpush1.bf16.msra.mxu0 %v6391_v56  ;;  %3003 = vmatpush1.bf16.msra.mxu1 %v6397_v58 }
 0x90e   :  { %2961 = vmatprep.subr.bf16.mxu0 %v6394_v10  ;;  %3004 = vmatprep.subr.bf16.mxu1 %v6400_v9 }
 0x911   :  { %2962 = vmatpush1.bf16.msra.mxu0 %v6403_v7  ;;  %3005 = vmatpush1.bf16.msra.mxu1 %v6409_v20 }
 0x912   :  { %2963 = vmatprep.subr.bf16.mxu0 %v6406_v35  ;;  %3006 = vmatprep.subr.bf16.mxu1 %v6419_v17 }
 0x915   :  { %2964 = vmatpush1.bf16.msra.mxu0 %v6413_v8  ;;  %3007 = vmatpush1.bf16.msra.mxu1 %v6421_v14 }
 0x916   :  { %2965 = vmatprep.subr.bf16.mxu0 %v6417_v25  ;;  %3008 = vmatprep.subr.bf16.mxu1 %v6423_v23 }
 0x919   :  { %2966 = vmatpush1.bf16.msra.mxu0 %v6427_v36  ;;  %3009 = vmatpush1.bf16.msra.mxu1 %v6431_v22 }
 0x91a   :  { %3102 = vmatprep.subr.bf16.mxu0 %v6312_v21  ;;  %3145 = vmatprep.subr.bf16.mxu1 %v6346_v28 }
 0x9cf   :  { %v2834_v38 = vpop.f32.mrb[32].mxu0  ;;  %v2877_v4 = vpop.f32.mrb[32].mxu1 }
 0x9d0   :  { %v4468_v32 = vadd.f32 %v2834_v38, %v6491_v55  ;;  %v2836_v39 = vpop.f32.mrb[33].mxu0  ;;  %v2879_v61 = vpop.f32.mrb[33].mxu1  ;;  %v4500_v43 = vadd.f32 %v2877_v4, %v6507_v59 }
 0x9d1   :  { %v4469_v40 = vadd.f32 %v2836_v39, %v6495_v37  ;;  %v2838_v41 = vpop.f32.mrb[34].mxu0  ;;  %v2881_v42 = vpop.f32.mrb[34].mxu1  ;;  %v4501_v15 = vadd.f32 %v2879_v61, %v6502_v33 }
 0x9d2   :  { %v4318_v44 = vmul.f32 -1.442695, %v4468_v32  ;;  %v4470_v45 = vadd.f32 %v2838_v41, %v6491_v55  ;;  %v2840_v46 = vpop.f32.mrb[35].mxu0  ;;  %v2883_v12 = vpop.f32.mrb[35].mxu1  ;;  %v4502_v16 = vadd.f32 %v2881_v42, %v6507_v59 }
 0x9d3   :  { %v4320_v6 = vmul.f32 -1.442695, %v4469_v40  ;;  %v4471_v34 = vadd.f32 %v2840_v46, %v6495_v37  ;;  %v4322_v47 = vmul.f32 -1.442695, %v4501_v15  ;;  %v4503_v48 = vadd.f32 %v2883_v12, %v6502_v33 }
 0x9d4   :  { %5139 = vpow2.f32 %v4318_v44  ;;  %v4319_v26 = vmul.f32 -1.442695, %v4470_v45 }
 0x9d5   :  { %5141 = vpow2.f32 %v4320_v6  ;;  %v4321_v18 = vmul.f32 -1.442695, %v4471_v34  ;;  %v4323_v32 = vmul.f32 -1.442695, %v4503_v48 }
 0x9d6   :  { %5143 = vpow2.f32 %v4319_v26 }
 0x9d7   :  { %5145 = vpow2.f32 %v4321_v18 }
 0x9d8   :  { %5147 = vtanh.f32 %v4500_v43 }
 0x9d9   :  { %5149 = vpow2.f32 %v4322_v47 }
 0x9da   :  { %5151 = vtanh.f32 %v4502_v16 }
 0x9de   :  { %v5140_v3 = vpop.eup %5139 }
 0x9df   :  { %v5142_v5 = vpop.eup %5141  ;;  %v2900_v38 = vadd.f32 1.0, %v5140_v3 }
 0x9e0   :  { %v2912_v11 = vadd.f32 1.0, %v5142_v5  ;;  %v5144_v49 = vpop.eup %5143 }
 0x9e1   :  { %5153 = vrcp.f32 %v2900_v38  ;;  %v2901_v39 = vadd.f32 1.0, %v5144_v49  ;;  %v5146_v61 = vpop.eup %5145 }
 0x9e2   :  { %5155 = vrcp.f32 %v2912_v11  ;;  %v2913_v4 = vadd.f32 1.0, %v5146_v61  ;;  %v5148_v40 = vpop.eup %5147 }
 0x9e3   :  { %5157 = vpow2.f32 %v4323_v32  ;;  %v5150_v41 = vpop.eup %5149 }
 0x9e4   :  { %5159 = vrcp.f32 %v2901_v39  ;;  %v5152_v42 = vpop.eup %5151  ;;  %v2926_v34 = vadd.f32 1.0, %v5150_v41 }
 0x9e5   :  { %5161 = vrcp.f32 %v2913_v4 }
 0x9e6   :  { %5163 = vrcp.f32 %v2926_v34 }
 0x9eb   :  { %v5154_v44 = vpop.eup %5153 }
 0x9ec   :  { %v5156_v45 = vpop.eup %5155  ;;  %v2934_v46 = vmul.f32 %v5154_v44, %v5148_v40 }
 0x9ed   :  { %v5158_v12 = vpop.eup %5157  ;;  %v2932_v6 = vmul.f32 0.0, %v5156_v45 }
 0x9ee   :  { %v5160_v13 = vpop.eup %5159  ;;  %v2927_v15 = vadd.f32 1.0, %v5158_v12 }
 0x9ef   :  { %v6513_v26 = vadd.f32 %v2934_v46, %v2932_v6  ;;  %v2935_v18 = vmul.f32 %v5160_v13, %v5152_v42  ;;  %v5162_v31 = vpop.eup %5161 }
 0x9f0   :  { %v2933_v43 = vmul.f32 0.0, %v5162_v31  ;;  %v5164_v48 = vpop.eup %5163 }
 0x9f1   :  { %5165 = vtanh.f32 %v6513_v26 }
 0x9f2   :  { %v6516_v47 = vadd.f32 %v2935_v18, %v2933_v43  ;;  %5167 = vrcp.f32 %v2927_v15 }
 0x9f4   :  { %5169 = vtanh.f32 %v6516_v47 }
 0x9fb   :  { %v5166_v16 = vpop.eup %5165 }
 0x9fc   :  { %v5168_v3 = vpop.eup %5167  ;;  %v2940_v38 = vmul.f32 %v5166_v16, %v5164_v48 }
 0x9fe   :  { %v5170_v5 = vpop.eup %5169 }
 0x9ff   :  { %v2941_v32 = vmul.f32 %v5170_v5, %v5168_v3 }
 0xa01   :  { %v2950_v11 = vpack.c.bf16 %v2941_v32, %v2940_v38 }
 0xa03   :  { %2984 = vmatmul.mubr.bf16.vlgmr.msra.gmra.mrb[36].mxu0 %v2950_v11  ;;  %3027 = vmatmul.mubr.bf16.vlgmr.msra.gmra.mrb[36].mxu1 %v2950_v11 }
 0xa04   :  { %3103 = vmatpush1.bf16.msra.mxu0 %v6315_v53  ;;  %3146 = vmatpush1.bf16.msra.mxu1 %v6348_v24 }
 0xa05   :  { %3104 = vmatprep.subr.bf16.mxu0 %v6352_v52  ;;  %3147 = vmatprep.subr.bf16.mxu1 %v6354_v2 }
 0xa06   :  { %3134 = vmatprep.mubr.bf16.mxu0 %v5608_v0  ;;  %3177 = vmatprep.mubr.bf16.mxu1 %v5608_v0 }
 0xa08   :  { %3105 = vmatpush1.bf16.msra.mxu0 %v6356_v63  ;;  %3148 = vmatpush1.bf16.msra.mxu1 %v6362_v30 }
 0xa09   :  { %3106 = vmatprep.subr.bf16.mxu0 %v6358_v50  ;;  %3149 = vmatprep.subr.bf16.mxu1 %v6367_v62 }
 0xa0c   :  { %3107 = vmatpush1.bf16.msra.mxu0 %v6365_v60  ;;  %3150 = vmatpush1.bf16.msra.mxu1 %v6373_v29 }
 0xa0d   :  { %3108 = vmatprep.subr.bf16.mxu0 %v6370_v1  ;;  %3151 = vmatprep.subr.bf16.mxu1 %v6376_v27 }
 0xa10   :  { %3109 = vmatpush1.bf16.msra.mxu0 %v6379_v51  ;;  %3152 = vmatpush1.bf16.msra.mxu1 %v6385_v54 }
 0xa11   :  { %3110 = vmatprep.subr.bf16.mxu0 %v6382_v19  ;;  %3153 = vmatprep.subr.bf16.mxu1 %v6388_v57 }
 0xa14   :  { %3111 = vmatpush1.bf16.msra.mxu0 %v6391_v56  ;;  %3154 = vmatpush1.bf16.msra.mxu1 %v6397_v58 }
 0xa15   :  { %3112 = vmatprep.subr.bf16.mxu0 %v6394_v10  ;;  %3155 = vmatprep.subr.bf16.mxu1 %v6400_v9 }
 0xa18   :  { %3113 = vmatpush1.bf16.msra.mxu0 %v6403_v7  ;;  %3156 = vmatpush1.bf16.msra.mxu1 %v6409_v20 }
 0xa19   :  { %3114 = vmatprep.subr.bf16.mxu0 %v6406_v35  ;;  %3157 = vmatprep.subr.bf16.mxu1 %v6419_v17 }
 0xa1c   :  { %3115 = vmatpush1.bf16.msra.mxu0 %v6413_v8  ;;  %3158 = vmatpush1.bf16.msra.mxu1 %v6421_v14 }
 0xa1d   :  { %3116 = vmatprep.subr.bf16.mxu0 %v6417_v25  ;;  %3159 = vmatprep.subr.bf16.mxu1 %v6423_v23 }
 0xa20   :  { %3117 = vmatpush1.bf16.msra.mxu0 %v6427_v36  ;;  %3160 = vmatpush1.bf16.msra.mxu1 %v6431_v22 }
 0xa21   :  { %3253 = vmatprep.subr.bf16.mxu0 %v6312_v21  ;;  %3296 = vmatprep.subr.bf16.mxu1 %v6346_v28 }
 0xad6   :  { %v2985_v49 = vpop.f32.mrb[36].mxu0  ;;  %v3028_v39 = vpop.f32.mrb[36].mxu1 }
 0xad7   :  { %v4472_v61 = vadd.f32 %v2985_v49, %v6491_v55  ;;  %v2987_v4 = vpop.f32.mrb[37].mxu0  ;;  %v3030_v40 = vpop.f32.mrb[37].mxu1  ;;  %v4504_v43 = vadd.f32 %v3028_v39, %v6507_v59 }
 0xad8   :  { %v4473_v41 = vadd.f32 %v2987_v4, %v6495_v37  ;;  %v2989_v42 = vpop.f32.mrb[38].mxu0  ;;  %v3032_v44 = vpop.f32.mrb[38].mxu1  ;;  %v4505_v15 = vadd.f32 %v3030_v40, %v6502_v33 }
 0xad9   :  { %v4324_v45 = vmul.f32 -1.442695, %v4472_v61  ;;  %v4474_v46 = vadd.f32 %v2989_v42, %v6491_v55  ;;  %v2991_v12 = vpop.f32.mrb[39].mxu0  ;;  %v3034_v6 = vpop.f32.mrb[39].mxu1  ;;  %v4506_v3 = vadd.f32 %v3032_v44, %v6507_v59 }
 0xada   :  { %v4326_v13 = vmul.f32 -1.442695, %v4473_v41  ;;  %v4475_v34 = vadd.f32 %v2991_v12, %v6495_v37  ;;  %v4328_v48 = vmul.f32 -1.442695, %v4505_v15  ;;  %v4507_v16 = vadd.f32 %v3034_v6, %v6502_v33 }
 0xadb   :  { %5171 = vpow2.f32 %v4324_v45  ;;  %v4325_v18 = vmul.f32 -1.442695, %v4474_v46 }
 0xadc   :  { %5173 = vpow2.f32 %v4326_v13  ;;  %v4327_v31 = vmul.f32 -1.442695, %v4475_v34  ;;  %v4329_v11 = vmul.f32 -1.442695, %v4507_v16 }
 0xadd   :  { %5175 = vpow2.f32 %v4325_v18 }
 0xade   :  { %5177 = vpow2.f32 %v4327_v31 }
 0xadf   :  { %5179 = vtanh.f32 %v4504_v43 }
 0xae0   :  { %5181 = vpow2.f32 %v4328_v48 }
 0xae1   :  { %5183 = vtanh.f32 %v4506_v3 }
 0xae5   :  { %v5172_v5 = vpop.eup %5171 }
 0xae6   :  { %v5174_v38 = vpop.eup %5173  ;;  %v3051_v32 = vadd.f32 1.0, %v5172_v5 }
 0xae7   :  { %v3063_v49 = vadd.f32 1.0, %v5174_v38  ;;  %v5176_v61 = vpop.eup %5175 }
 0xae8   :  { %5185 = vrcp.f32 %v3051_v32  ;;  %v3052_v4 = vadd.f32 1.0, %v5176_v61  ;;  %v5178_v40 = vpop.eup %5177 }
 0xae9   :  { %5187 = vrcp.f32 %v3063_v49  ;;  %v3064_v39 = vadd.f32 1.0, %v5178_v40  ;;  %v5180_v41 = vpop.eup %5179 }
 0xaea   :  { %5189 = vpow2.f32 %v4329_v11  ;;  %v5182_v42 = vpop.eup %5181 }
 0xaeb   :  { %5191 = vrcp.f32 %v3052_v4  ;;  %v5184_v44 = vpop.eup %5183  ;;  %v3077_v18 = vadd.f32 1.0, %v5182_v42 }
 0xaec   :  { %5193 = vrcp.f32 %v3064_v39 }
 0xaed   :  { %5195 = vrcp.f32 %v3077_v18 }
 0xaf2   :  { %v5186_v45 = vpop.eup %5185 }
 0xaf3   :  { %v5188_v46 = vpop.eup %5187  ;;  %v3085_v12 = vmul.f32 %v5186_v45, %v5180_v41 }
 0xaf4   :  { %v5190_v6 = vpop.eup %5189  ;;  %v3083_v13 = vmul.f32 %v5188_v46, %v6513_v26 }
 0xaf5   :  { %v5192_v34 = vpop.eup %5191  ;;  %v3078_v48 = vadd.f32 1.0, %v5190_v6 }
 0xaf6   :  { %v6562_v31 = vadd.f32 %v3085_v12, %v3083_v13  ;;  %v3086_v15 = vmul.f32 %v5192_v34, %v5184_v44  ;;  %v5194_v43 = vpop.eup %5193 }
 0xaf7   :  { %v3084_v16 = vmul.f32 %v5194_v43, %v6516_v47  ;;  %v5196_v5 = vpop.eup %5195 }
 0xaf8   :  { %5197 = vtanh.f32 %v6562_v31 }
 0xaf9   :  { %v6566_v3 = vadd.f32 %v3086_v15, %v3084_v16  ;;  %5199 = vrcp.f32 %v3078_v48 }
 0xafb   :  { %5201 = vtanh.f32 %v6566_v3 }
 0xb02   :  { %v5198_v38 = vpop.eup %5197 }
 0xb03   :  { %v5200_v26 = vpop.eup %5199  ;;  %v3091_v11 = vmul.f32 %v5198_v38, %v5196_v5 }
 0xb05   :  { %v5202_v32 = vpop.eup %5201 }
 0xb06   :  { %v3092_v49 = vmul.f32 %v5202_v32, %v5200_v26 }
 0xb08   :  { %v3101_v61 = vpack.c.bf16 %v3092_v49, %v3091_v11 }
 0xb0a   :  { %3135 = vmatmul.mubr.bf16.vlgmr.msra.gmra.mrb[40].mxu0 %v3101_v61  ;;  %3178 = vmatmul.mubr.bf16.vlgmr.msra.gmra.mrb[40].mxu1 %v3101_v61 }
 0xb0b   :  { %3254 = vmatpush1.bf16.msra.mxu0 %v6315_v53  ;;  %3297 = vmatpush1.bf16.msra.mxu1 %v6348_v24 }
 0xb0c   :  { %3255 = vmatprep.subr.bf16.mxu0 %v6352_v52  ;;  %3298 = vmatprep.subr.bf16.mxu1 %v6354_v2 }
 0xb0d   :  { %3285 = vmatprep.mubr.bf16.mxu0 %v5608_v0  ;;  %3328 = vmatprep.mubr.bf16.mxu1 %v5608_v0 }
 0xb0f   :  { %3256 = vmatpush1.bf16.msra.mxu0 %v6356_v63  ;;  %3299 = vmatpush1.bf16.msra.mxu1 %v6362_v30 }
 0xb10   :  { %3257 = vmatprep.subr.bf16.mxu0 %v6358_v50  ;;  %3300 = vmatprep.subr.bf16.mxu1 %v6367_v62 }
 0xb13   :  { %3258 = vmatpush1.bf16.msra.mxu0 %v6365_v60  ;;  %3301 = vmatpush1.bf16.msra.mxu1 %v6373_v29 }
 0xb14   :  { %3259 = vmatprep.subr.bf16.mxu0 %v6370_v1  ;;  %3302 = vmatprep.subr.bf16.mxu1 %v6376_v27 }
 0xb17   :  { %3260 = vmatpush1.bf16.msra.mxu0 %v6379_v51  ;;  %3303 = vmatpush1.bf16.msra.mxu1 %v6385_v54 }
 0xb18   :  { %3261 = vmatprep.subr.bf16.mxu0 %v6382_v19  ;;  %3304 = vmatprep.subr.bf16.mxu1 %v6388_v57 }
 0xb1b   :  { %3262 = vmatpush1.bf16.msra.mxu0 %v6391_v56  ;;  %3305 = vmatpush1.bf16.msra.mxu1 %v6397_v58 }
 0xb1c   :  { %3263 = vmatprep.subr.bf16.mxu0 %v6394_v10  ;;  %3306 = vmatprep.subr.bf16.mxu1 %v6400_v9 }
 0xb1f   :  { %3264 = vmatpush1.bf16.msra.mxu0 %v6403_v7  ;;  %3307 = vmatpush1.bf16.msra.mxu1 %v6409_v20 }
 0xb20   :  { %3265 = vmatprep.subr.bf16.mxu0 %v6406_v35  ;;  %3308 = vmatprep.subr.bf16.mxu1 %v6419_v17 }
 0xb23   :  { %3266 = vmatpush1.bf16.msra.mxu0 %v6413_v8  ;;  %3309 = vmatpush1.bf16.msra.mxu1 %v6421_v14 }
 0xb24   :  { %3267 = vmatprep.subr.bf16.mxu0 %v6417_v25  ;;  %3310 = vmatprep.subr.bf16.mxu1 %v6423_v23 }
 0xb27   :  { %3268 = vmatpush1.bf16.msra.mxu0 %v6427_v36  ;;  %3311 = vmatpush1.bf16.msra.mxu1 %v6431_v22 }
 0xb28   :  { %3404 = vmatprep.subr.bf16.mxu0 %v6312_v21  ;;  %3447 = vmatprep.subr.bf16.mxu1 %v6346_v28 }
 0xbdd   :  { %v3136_v47 = vpop.f32.mrb[40].mxu0  ;;  %v3179_v4 = vpop.f32.mrb[40].mxu1 }
 0xbde   :  { %v4476_v40 = vadd.f32 %v3136_v47, %v6491_v55  ;;  %v3138_v39 = vpop.f32.mrb[41].mxu0  ;;  %v3181_v41 = vpop.f32.mrb[41].mxu1  ;;  %v4508_v48 = vadd.f32 %v3179_v4, %v6507_v59 }
 0xbdf   :  { %v4477_v42 = vadd.f32 %v3138_v39, %v6495_v37  ;;  %v3140_v44 = vpop.f32.mrb[42].mxu0  ;;  %v3183_v45 = vpop.f32.mrb[42].mxu1  ;;  %v4509_v43 = vadd.f32 %v3181_v41, %v6502_v33 }
 0xbe0   :  { %v4330_v46 = vmul.f32 -1.442695, %v4476_v40  ;;  %v4478_v12 = vadd.f32 %v3140_v44, %v6491_v55  ;;  %v3142_v6 = vpop.f32.mrb[43].mxu0  ;;  %v3185_v13 = vpop.f32.mrb[43].mxu1  ;;  %v4510_v38 = vadd.f32 %v3183_v45, %v6507_v59 }
 0xbe1   :  { %v4332_v34 = vmul.f32 -1.442695, %v4477_v42  ;;  %v4479_v21 = vadd.f32 %v3142_v6, %v6495_v37  ;;  %v4334_v16 = vmul.f32 -1.442695, %v4509_v43  ;;  %v4511_v5 = vadd.f32 %v3185_v13, %v6502_v33 }
 0xbe2   :  { %5203 = vpow2.f32 %v4330_v46  ;;  %v4331_v18 = vmul.f32 -1.442695, %v4478_v12 }
 0xbe3   :  { %5205 = vpow2.f32 %v4332_v34  ;;  %v4333_v15 = vmul.f32 -1.442695, %v4479_v21  ;;  %v4335_v49 = vmul.f32 -1.442695, %v4511_v5 }
 0xbe4   :  { %5207 = vpow2.f32 %v4331_v18 }
 0xbe5   :  { %5209 = vpow2.f32 %v4333_v15 }
 0xbe6   :  { %5211 = vtanh.f32 %v4508_v48 }
 0xbe7   :  { %5213 = vpow2.f32 %v4334_v16 }
 0xbe8   :  { %5215 = vtanh.f32 %v4510_v38 }
 0xbec   :  { %v5204_v26 = vpop.eup %5203 }
 0xbed   :  { %v5206_v32 = vpop.eup %5205  ;;  %v3202_v11 = vadd.f32 1.0, %v5204_v26 }
 0xbee   :  { %v3214_v61 = vadd.f32 1.0, %v5206_v32  ;;  %v5208_v47 = vpop.eup %5207 }
 0xbef   :  { %5217 = vrcp.f32 %v3202_v11  ;;  %v3203_v40 = vadd.f32 1.0, %v5208_v47  ;;  %v5210_v39 = vpop.eup %5209 }
 0xbf0   :  { %5219 = vrcp.f32 %v3214_v61  ;;  %v3215_v4 = vadd.f32 1.0, %v5210_v39  ;;  %v5212_v41 = vpop.eup %5211 }
 0xbf1   :  { %5221 = vpow2.f32 %v4335_v49  ;;  %v5214_v42 = vpop.eup %5213 }
 0xbf2   :  { %5223 = vrcp.f32 %v3203_v40  ;;  %v5216_v44 = vpop.eup %5215  ;;  %v3228_v21 = vadd.f32 1.0, %v5214_v42 }
 0xbf3   :  { %5225 = vrcp.f32 %v3215_v4 }
 0xbf4   :  { %5227 = vrcp.f32 %v3228_v21 }
 0xbf9   :  { %v5218_v45 = vpop.eup %5217 }
 0xbfa   :  { %v5220_v46 = vpop.eup %5219  ;;  %v3236_v12 = vmul.f32 %v5218_v45, %v5212_v41 }
 0xbfb   :  { %v5222_v6 = vpop.eup %5221  ;;  %v3234_v13 = vmul.f32 %v5220_v46, %v6562_v31 }
 0xbfc   :  { %v5224_v34 = vpop.eup %5223  ;;  %v3229_v48 = vadd.f32 1.0, %v5222_v6 }
 0xbfd   :  { %v6612_v18 = vadd.f32 %v3236_v12, %v3234_v13  ;;  %v3237_v15 = vmul.f32 %v5224_v34, %v5216_v44  ;;  %v5226_v43 = vpop.eup %5225 }
 0xbfe   :  { %v3235_v16 = vmul.f32 %v5226_v43, %v6566_v3  ;;  %v5228_v38 = vpop.eup %5227 }
 0xbff   :  { %5229 = vtanh.f32 %v6612_v18 }
 0xc00   :  { %v6616_v5 = vadd.f32 %v3237_v15, %v3235_v16  ;;  %5231 = vrcp.f32 %v3229_v48 }
 0xc02   :  { %5233 = vtanh.f32 %v6616_v5 }
 0xc09   :  { %v5230_v26 = vpop.eup %5229 }
 0xc0a   :  { %v5232_v31 = vpop.eup %5231  ;;  %v3242_v11 = vmul.f32 %v5230_v26, %v5228_v38 }
 0xc0c   :  { %v5234_v32 = vpop.eup %5233 }
 0xc0d   :  { %v3243_v49 = vmul.f32 %v5234_v32, %v5232_v31  ;;  %v6671_v32 = vld [vmem:[#allocation11 + $0x100] ss:$16 sps:$4 sm:$0xff]  }
 0xc0f   :  { %v3252_v61 = vpack.c.bf16 %v3243_v49, %v3242_v11  ;;  %v6677_v11 = vld [vmem:[#allocation11 + $0x124] ss:$16 sps:$4 sm:$0xff]   ;;  %v6680_v49 = vld [vmem:[#allocation11 + $0x12c] ss:$16 sps:$4 sm:$0xff]  }
 0xc11   :  { %3286 = vmatmul.mubr.bf16.vlgmr.msra.gmra.mrb[44].mxu0 %v3252_v61  ;;  %3329 = vmatmul.mubr.bf16.vlgmr.msra.gmra.mrb[44].mxu1 %v3252_v61  ;;  %v6685_v61 = vld [vmem:[#allocation11 + $0x120] ss:$16 sps:$4 sm:$0xff]  }
 0xc12   :  { %3405 = vmatpush1.bf16.msra.mxu0 %v6315_v53  ;;  %3448 = vmatpush1.bf16.msra.mxu1 %v6348_v24  ;;  %v6651_v53 = vld [vmem:[#allocation11 + $0x104] ss:$16 sps:$4 sm:$0xff]  }
 0xc13   :  { %3406 = vmatprep.subr.bf16.mxu0 %v6352_v52  ;;  %3449 = vmatprep.subr.bf16.mxu1 %v6354_v2 }
 0xc14   :  { %3436 = vmatprep.mubr.bf16.mxu0 %v5608_v0  ;;  %3479 = vmatprep.mubr.bf16.mxu1 %v5608_v0 }
 0xc16   :  { %3407 = vmatpush1.bf16.msra.mxu0 %v6356_v63  ;;  %3450 = vmatpush1.bf16.msra.mxu1 %v6362_v30 }
 0xc17   :  { %3408 = vmatprep.subr.bf16.mxu0 %v6358_v50  ;;  %3451 = vmatprep.subr.bf16.mxu1 %v6367_v62 }
 0xc1a   :  { %3409 = vmatpush1.bf16.msra.mxu0 %v6365_v60  ;;  %3452 = vmatpush1.bf16.msra.mxu1 %v6373_v29 }
 0xc1b   :  { %3410 = vmatprep.subr.bf16.mxu0 %v6370_v1  ;;  %3453 = vmatprep.subr.bf16.mxu1 %v6376_v27 }
 0xc1e   :  { %3411 = vmatpush1.bf16.msra.mxu0 %v6379_v51  ;;  %3454 = vmatpush1.bf16.msra.mxu1 %v6385_v54 }
 0xc1f   :  { %3412 = vmatprep.subr.bf16.mxu0 %v6382_v19  ;;  %3455 = vmatprep.subr.bf16.mxu1 %v6388_v57 }
 0xc22   :  { %3413 = vmatpush1.bf16.msra.mxu0 %v6391_v56  ;;  %3456 = vmatpush1.bf16.msra.mxu1 %v6397_v58 }
 0xc23   :  { %3414 = vmatprep.subr.bf16.mxu0 %v6394_v10  ;;  %3457 = vmatprep.subr.bf16.mxu1 %v6400_v9 }
 0xc26   :  { %3415 = vmatpush1.bf16.msra.mxu0 %v6403_v7  ;;  %3458 = vmatpush1.bf16.msra.mxu1 %v6409_v20 }
 0xc27   :  { %3416 = vmatprep.subr.bf16.mxu0 %v6406_v35  ;;  %3459 = vmatprep.subr.bf16.mxu1 %v6419_v17 }
 0xc2a   :  { %3417 = vmatpush1.bf16.msra.mxu0 %v6413_v8  ;;  %3460 = vmatpush1.bf16.msra.mxu1 %v6421_v14 }
 0xc2b   :  { %3418 = vmatprep.subr.bf16.mxu0 %v6417_v25  ;;  %3461 = vmatprep.subr.bf16.mxu1 %v6423_v23 }
 0xc2e   :  { %3419 = vmatpush1.bf16.msra.mxu0 %v6427_v36  ;;  %3462 = vmatpush1.bf16.msra.mxu1 %v6431_v22 }
 0xc2f   :  { %3555 = vmatprep.subr.bf16.mxu0 %v6651_v53  ;;  %3598 = vmatprep.subr.bf16.mxu1 %v6346_v28 }
 0xce4   :  { %v3287_v24 = vpop.f32.mrb[44].mxu0  ;;  %v3330_v52 = vpop.f32.mrb[44].mxu1 }
 0xce5   :  { %v4480_v2 = vadd.f32 %v3287_v24, %v6491_v55  ;;  %v3289_v63 = vpop.f32.mrb[45].mxu0  ;;  %v3332_v50 = vpop.f32.mrb[45].mxu1  ;;  %v4512_v10 = vadd.f32 %v3330_v52, %v6507_v59  ;;  %v6688_v24 = vld [vmem:[#allocation11 + $0x128] ss:$16 sps:$4 sm:$0xff]   ;;  %v6691_v52 = vld [vmem:[#allocation11 + $0x144] ss:$16 sps:$4 sm:$0xff]  }
 0xce6   :  { %v4481_v30 = vadd.f32 %v3289_v63, %v6495_v37  ;;  %v3291_v60 = vpop.f32.mrb[46].mxu0  ;;  %v3334_v62 = vpop.f32.mrb[46].mxu1  ;;  %v4513_v56 = vadd.f32 %v3332_v50, %v6502_v33  ;;  %v6697_v63 = vld [vmem:[#allocation11 + $0x140] ss:$16 sps:$4 sm:$0xff]   ;;  %v6700_v50 = vld [vmem:[#allocation11 + $0x148] ss:$16 sps:$4 sm:$0xff]  }
 0xce7   :  { %v4336_v1 = vmul.f32 -1.442695, %v4480_v2  ;;  %v4482_v29 = vadd.f32 %v3291_v60, %v6491_v55  ;;  %v3293_v27 = vpop.f32.mrb[47].mxu0  ;;  %v3336_v51 = vpop.f32.mrb[47].mxu1  ;;  %v4514_v7 = vadd.f32 %v3334_v62, %v6507_v59  ;;  %v6694_v2 = vld [vmem:[#allocation11 + $0x14c] ss:$16 sps:$4 sm:$0xff]  }
 0xce8   :  { %v4338_v19 = vmul.f32 -1.442695, %v4481_v30  ;;  %v4483_v54 = vadd.f32 %v3293_v27, %v6495_v37  ;;  %v4340_v58 = vmul.f32 -1.442695, %v4513_v56  ;;  %v4515_v9 = vadd.f32 %v3336_v51, %v6502_v33  ;;  %v6703_v30 = vld [vmem:[#allocation11 + $0x164] ss:$16 sps:$4 sm:$0xff]  }
 0xce9   :  { %5235 = vpow2.f32 %v4336_v1  ;;  %v4337_v28 = vmul.f32 -1.442695, %v4482_v29  ;;  %v6706_v60 = vld [vmem:[#allocation11 + $0x16c] ss:$16 sps:$4 sm:$0xff]   ;;  %v6709_v62 = vld [vmem:[#allocation11 + $0x160] ss:$16 sps:$4 sm:$0xff]  }
 0xcea   :  { %5237 = vpow2.f32 %v4338_v19  ;;  %v4339_v57 = vmul.f32 -1.442695, %v4483_v54  ;;  %v4341_v25 = vmul.f32 -1.442695, %v4515_v9  ;;  %v6712_v1 = vld [vmem:[#allocation11 + $0x168] ss:$16 sps:$4 sm:$0xff]  }
 0xceb   :  { %5239 = vpow2.f32 %v4337_v28  ;;  %v6715_v29 = vld [vmem:[#allocation11 + $0x184] ss:$16 sps:$4 sm:$0xff]   ;;  %v6718_v27 = vld [vmem:[#allocation11 + $0x18c] ss:$16 sps:$4 sm:$0xff]   ;;  %v6721_v51 = vld [vmem:[#allocation11 + $0x180] ss:$16 sps:$4 sm:$0xff]  }
 0xcec   :  { %5241 = vpow2.f32 %v4339_v57  ;;  %v6724_v19 = vld [vmem:[#allocation11 + $0x188] ss:$16 sps:$4 sm:$0xff]   ;;  %v6727_v54 = vld [vmem:[#allocation11 + $0x1a4] ss:$16 sps:$4 sm:$0xff]   ;;  %v6730_v28 = vld [vmem:[#allocation11 + $0x1ac] ss:$16 sps:$4 sm:$0xff]  }
 0xced   :  { %5243 = vtanh.f32 %v4512_v10  ;;  %v6733_v57 = vld [vmem:[#allocation11 + $0x1a0] ss:$16 sps:$4 sm:$0xff]   ;;  %v6736_v56 = vld [vmem:[#allocation11 + $0x1a8] ss:$16 sps:$4 sm:$0xff]   ;;  %v6739_v10 = vld [vmem:[#allocation11 + $0x1c4] ss:$16 sps:$4 sm:$0xff]  }
 0xcee   :  { %5245 = vpow2.f32 %v4340_v58  ;;  %v6742_v58 = vld [vmem:[#allocation11 + $0x1cc] ss:$16 sps:$4 sm:$0xff]   ;;  %v6745_v9 = vld [vmem:[#allocation11 + $0x1c0] ss:$16 sps:$4 sm:$0xff]  }
 0xcef   :  { %5247 = vtanh.f32 %v4514_v7  ;;  %v6748_v7 = vld [vmem:[#allocation11 + $0x1c8] ss:$16 sps:$4 sm:$0xff]  }
 0xcf3   :  { %v5236_v35 = vpop.eup %5235 }
 0xcf4   :  { %v5238_v20 = vpop.eup %5237  ;;  %v3353_v8 = vadd.f32 1.0, %v5236_v35  ;;  %v6751_v35 = vld [vmem:[#allocation11 + $0x1e4] ss:$16 sps:$4 sm:$0xff]  }
 0xcf5   :  { %v3365_v17 = vadd.f32 1.0, %v5238_v20  ;;  %v5240_v14 = vpop.eup %5239  ;;  %v6754_v20 = vld [vmem:[#allocation11 + $0x1ec] ss:$16 sps:$4 sm:$0xff]  }
 0xcf6   :  { %5249 = vrcp.f32 %v3353_v8  ;;  %v3354_v23 = vadd.f32 1.0, %v5240_v14  ;;  %v5242_v36 = vpop.eup %5241  ;;  %v6757_v8 = vld [vmem:[#allocation11 + $0x1e0] ss:$16 sps:$4 sm:$0xff]  }
 0xcf7   :  { %5251 = vrcp.f32 %v3365_v17  ;;  %v3366_v22 = vadd.f32 1.0, %v5242_v36  ;;  %v5244_v3 = vpop.eup %5243  ;;  %v6764_v17 = vld [vmem:[#allocation11 + $0x10c] ss:$16 sps:$4 sm:$0xff]  }
 0xcf8   :  { %5253 = vpow2.f32 %v4341_v25  ;;  %v5246_v47 = vpop.eup %5245  ;;  %v6760_v25 = vld [vmem:[#allocation11 + $0x1e8] ss:$16 sps:$4 sm:$0xff]  }
 0xcf9   :  { %5255 = vrcp.f32 %v3354_v23  ;;  %v5248_v40 = vpop.eup %5247  ;;  %v3379_v46 = vadd.f32 1.0, %v5246_v47 }
 0xcfa   :  { %5257 = vrcp.f32 %v3366_v22 }
 0xcfb   :  { %5259 = vrcp.f32 %v3379_v46 }
 0xd00   :  { %v5250_v39 = vpop.eup %5249 }
 0xd01   :  { %v5252_v4 = vpop.eup %5251  ;;  %v3387_v41 = vmul.f32 %v5250_v39, %v5244_v3 }
 0xd02   :  { %v5254_v42 = vpop.eup %5253  ;;  %v3385_v44 = vmul.f32 %v5252_v4, %v6612_v18 }
 0xd03   :  { %v5256_v45 = vpop.eup %5255  ;;  %v3380_v34 = vadd.f32 1.0, %v5254_v42 }
 0xd04   :  { %v6664_v12 = vadd.f32 %v3387_v41, %v3385_v44  ;;  %v3388_v6 = vmul.f32 %v5256_v45, %v5248_v40  ;;  %v5258_v13 = vpop.eup %5257 }
 0xd05   :  { %v3386_v21 = vmul.f32 %v5258_v13, %v6616_v5  ;;  %v5260_v43 = vpop.eup %5259  ;;  %v6674_v5 = vld [vmem:[#allocation11 + $0x108] ss:$16 sps:$4 sm:$0xff]  }
 0xd06   :  { %5261 = vtanh.f32 %v6664_v12 }
 0xd07   :  { %v6668_v15 = vadd.f32 %v3388_v6, %v3386_v21  ;;  %5263 = vrcp.f32 %v3380_v34 }
 0xd09   :  { %5265 = vtanh.f32 %v6668_v15 }
 0xd10   :  { %v5262_v48 = vpop.eup %5261 }
 0xd11   :  { %v5264_v18 = vpop.eup %5263  ;;  %v3393_v38 = vmul.f32 %v5262_v48, %v5260_v43 }
 0xd13   :  { %v5266_v16 = vpop.eup %5265 }
 0xd14   :  { %v3394_v26 = vmul.f32 %v5266_v16, %v5264_v18 }
 0xd16   :  { %v3403_v31 = vpack.c.bf16 %v3394_v26, %v3393_v38 }
 0xd18   :  { %3437 = vmatmul.mubr.bf16.vlgmr.msra.gmra.mrb[48].mxu0 %v3403_v31  ;;  %3480 = vmatmul.mubr.bf16.vlgmr.msra.gmra.mrb[48].mxu1 %v3403_v31 }
 0xd19   :  { %3556 = vmatpush1.bf16.msra.mxu0 %v6671_v32  ;;  %3599 = vmatpush1.bf16.msra.mxu1 %v6674_v5 }
 0xd1a   :  { %3557 = vmatprep.subr.bf16.mxu0 %v6677_v11  ;;  %3600 = vmatprep.subr.bf16.mxu1 %v6680_v49 }
 0xd1b   :  { %3587 = vmatprep.mubr.bf16.mxu0 %v5608_v0  ;;  %3630 = vmatprep.mubr.bf16.mxu1 %v5608_v0 }
 0xd1d   :  { %3558 = vmatpush1.bf16.msra.mxu0 %v6685_v61  ;;  %3601 = vmatpush1.bf16.msra.mxu1 %v6688_v24 }
 0xd1e   :  { %3559 = vmatprep.subr.bf16.mxu0 %v6691_v52  ;;  %3602 = vmatprep.subr.bf16.mxu1 %v6694_v2 }
 0xd21   :  { %3560 = vmatpush1.bf16.msra.mxu0 %v6697_v63  ;;  %3603 = vmatpush1.bf16.msra.mxu1 %v6700_v50 }
 0xd22   :  { %3561 = vmatprep.subr.bf16.mxu0 %v6703_v30  ;;  %3604 = vmatprep.subr.bf16.mxu1 %v6706_v60 }
 0xd25   :  { %3562 = vmatpush1.bf16.msra.mxu0 %v6709_v62  ;;  %3605 = vmatpush1.bf16.msra.mxu1 %v6712_v1 }
 0xd26   :  { %3563 = vmatprep.subr.bf16.mxu0 %v6715_v29  ;;  %3606 = vmatprep.subr.bf16.mxu1 %v6718_v27 }
 0xd29   :  { %3564 = vmatpush1.bf16.msra.mxu0 %v6721_v51  ;;  %3607 = vmatpush1.bf16.msra.mxu1 %v6724_v19 }
 0xd2a   :  { %3565 = vmatprep.subr.bf16.mxu0 %v6727_v54  ;;  %3608 = vmatprep.subr.bf16.mxu1 %v6730_v28 }
 0xd2d   :  { %3566 = vmatpush1.bf16.msra.mxu0 %v6733_v57  ;;  %3609 = vmatpush1.bf16.msra.mxu1 %v6736_v56 }
 0xd2e   :  { %3567 = vmatprep.subr.bf16.mxu0 %v6739_v10  ;;  %3610 = vmatprep.subr.bf16.mxu1 %v6742_v58 }
 0xd31   :  { %3568 = vmatpush1.bf16.msra.mxu0 %v6745_v9  ;;  %3611 = vmatpush1.bf16.msra.mxu1 %v6748_v7 }
 0xd32   :  { %3569 = vmatprep.subr.bf16.mxu0 %v6751_v35  ;;  %3612 = vmatprep.subr.bf16.mxu1 %v6754_v20 }
 0xd35   :  { %3570 = vmatpush1.bf16.msra.mxu0 %v6757_v8  ;;  %3613 = vmatpush1.bf16.msra.mxu1 %v6760_v25 }
 0xd36   :  { %3706 = vmatprep.subr.bf16.mxu0 %v6651_v53  ;;  %3749 = vmatprep.subr.bf16.mxu1 %v6764_v17 }
 0xdeb   :  { %v3438_v14 = vpop.f32.mrb[48].mxu0  ;;  %v3481_v23 = vpop.f32.mrb[48].mxu1 }
 0xdec   :  { %v4484_v36 = vadd.f32 %v3438_v14, %v6491_v55  ;;  %v3440_v22 = vpop.f32.mrb[49].mxu0  ;;  %v3483_v3 = vpop.f32.mrb[49].mxu1  ;;  %v4516_v21 = vadd.f32 %v3481_v23, %v6507_v59 }
 0xded   :  { %v4485_v47 = vadd.f32 %v3440_v22, %v6495_v37  ;;  %v3442_v40 = vpop.f32.mrb[50].mxu0  ;;  %v3485_v39 = vpop.f32.mrb[50].mxu1  ;;  %v4517_v34 = vadd.f32 %v3483_v3, %v6502_v33 }
 0xdee   :  { %v4342_v4 = vmul.f32 -1.442695, %v4484_v36  ;;  %v4486_v41 = vadd.f32 %v3442_v40, %v6491_v55  ;;  %v3444_v42 = vpop.f32.mrb[51].mxu0  ;;  %v3487_v44 = vpop.f32.mrb[51].mxu1  ;;  %v4518_v18 = vadd.f32 %v3485_v39, %v6507_v59 }
 0xdef   :  { %v4344_v45 = vmul.f32 -1.442695, %v4485_v47  ;;  %v4487_v46 = vadd.f32 %v3444_v42, %v6495_v37  ;;  %v4346_v43 = vmul.f32 -1.442695, %v4517_v34  ;;  %v4519_v48 = vadd.f32 %v3487_v44, %v6502_v33 }
 0xdf0   :  { %5267 = vpow2.f32 %v4342_v4  ;;  %v4343_v6 = vmul.f32 -1.442695, %v4486_v41 }
 0xdf1   :  { %5269 = vpow2.f32 %v4344_v45  ;;  %v4345_v13 = vmul.f32 -1.442695, %v4487_v46  ;;  %v4347_v31 = vmul.f32 -1.442695, %v4519_v48 }
 0xdf2   :  { %5271 = vpow2.f32 %v4343_v6 }
 0xdf3   :  { %5273 = vpow2.f32 %v4345_v13 }
 0xdf4   :  { %5275 = vtanh.f32 %v4516_v21 }
 0xdf5   :  { %5277 = vpow2.f32 %v4346_v43 }
 0xdf6   :  { %5279 = vtanh.f32 %v4518_v18 }
 0xdfa   :  { %v5268_v16 = vpop.eup %5267 }
 0xdfb   :  { %v5270_v38 = vpop.eup %5269  ;;  %v3504_v26 = vadd.f32 1.0, %v5268_v16 }
 0xdfc   :  { %v3516_v14 = vadd.f32 1.0, %v5270_v38  ;;  %v5272_v36 = vpop.eup %5271 }
 0xdfd   :  { %5281 = vrcp.f32 %v3504_v26  ;;  %v3505_v22 = vadd.f32 1.0, %v5272_v36  ;;  %v5274_v3 = vpop.eup %5273 }
 0xdfe   :  { %5283 = vrcp.f32 %v3516_v14  ;;  %v3517_v23 = vadd.f32 1.0, %v5274_v3  ;;  %v5276_v47 = vpop.eup %5275 }
 0xdff   :  { %5285 = vpow2.f32 %v4347_v31  ;;  %v5278_v40 = vpop.eup %5277 }
 0xe00   :  { %5287 = vrcp.f32 %v3505_v22  ;;  %v5280_v39 = vpop.eup %5279  ;;  %v3530_v6 = vadd.f32 1.0, %v5278_v40 }
 0xe01   :  { %5289 = vrcp.f32 %v3517_v23 }
 0xe02   :  { %5291 = vrcp.f32 %v3530_v6 }
 0xe07   :  { %v5282_v4 = vpop.eup %5281 }
 0xe08   :  { %v5284_v41 = vpop.eup %5283  ;;  %v3538_v42 = vmul.f32 %v5282_v4, %v5276_v47 }
 0xe09   :  { %v5286_v44 = vpop.eup %5285  ;;  %v3536_v45 = vmul.f32 %v5284_v41, %v6664_v12 }
 0xe0a   :  { %v5288_v46 = vpop.eup %5287  ;;  %v3531_v43 = vadd.f32 1.0, %v5286_v44 }
 0xe0b   :  { %v6776_v13 = vadd.f32 %v3538_v42, %v3536_v45  ;;  %v3539_v34 = vmul.f32 %v5288_v46, %v5280_v39  ;;  %v5290_v21 = vpop.eup %5289 }
 0xe0c   :  { %v3537_v48 = vmul.f32 %v5290_v21, %v6668_v15  ;;  %v5292_v16 = vpop.eup %5291 }
 0xe0d   :  { %5293 = vtanh.f32 %v6776_v13 }
 0xe0e   :  { %v6780_v18 = vadd.f32 %v3539_v34, %v3537_v48  ;;  %5295 = vrcp.f32 %v3531_v43 }
 0xe10   :  { %5297 = vtanh.f32 %v6780_v18 }
 0xe17   :  { %v5294_v38 = vpop.eup %5293 }
 0xe18   :  { %v5296_v12 = vpop.eup %5295  ;;  %v3544_v31 = vmul.f32 %v5294_v38, %v5292_v16 }
 0xe1a   :  { %v5298_v26 = vpop.eup %5297 }
 0xe1b   :  { %v3545_v14 = vmul.f32 %v5298_v26, %v5296_v12 }
 0xe1d   :  { %v3554_v36 = vpack.c.bf16 %v3545_v14, %v3544_v31 }
 0xe1f   :  { %3588 = vmatmul.mubr.bf16.vlgmr.msra.gmra.mrb[52].mxu0 %v3554_v36  ;;  %3631 = vmatmul.mubr.bf16.vlgmr.msra.gmra.mrb[52].mxu1 %v3554_v36 }
 0xe20   :  { %3707 = vmatpush1.bf16.msra.mxu0 %v6671_v32  ;;  %3750 = vmatpush1.bf16.msra.mxu1 %v6674_v5 }
 0xe21   :  { %3708 = vmatprep.subr.bf16.mxu0 %v6677_v11  ;;  %3751 = vmatprep.subr.bf16.mxu1 %v6680_v49 }
 0xe22   :  { %3738 = vmatprep.mubr.bf16.mxu0 %v5608_v0  ;;  %3781 = vmatprep.mubr.bf16.mxu1 %v5608_v0 }
 0xe24   :  { %3709 = vmatpush1.bf16.msra.mxu0 %v6685_v61  ;;  %3752 = vmatpush1.bf16.msra.mxu1 %v6688_v24 }
 0xe25   :  { %3710 = vmatprep.subr.bf16.mxu0 %v6691_v52  ;;  %3753 = vmatprep.subr.bf16.mxu1 %v6694_v2 }
 0xe28   :  { %3711 = vmatpush1.bf16.msra.mxu0 %v6697_v63  ;;  %3754 = vmatpush1.bf16.msra.mxu1 %v6700_v50 }
 0xe29   :  { %3712 = vmatprep.subr.bf16.mxu0 %v6703_v30  ;;  %3755 = vmatprep.subr.bf16.mxu1 %v6706_v60 }
 0xe2c   :  { %3713 = vmatpush1.bf16.msra.mxu0 %v6709_v62  ;;  %3756 = vmatpush1.bf16.msra.mxu1 %v6712_v1 }
 0xe2d   :  { %3714 = vmatprep.subr.bf16.mxu0 %v6715_v29  ;;  %3757 = vmatprep.subr.bf16.mxu1 %v6718_v27 }
 0xe30   :  { %3715 = vmatpush1.bf16.msra.mxu0 %v6721_v51  ;;  %3758 = vmatpush1.bf16.msra.mxu1 %v6724_v19 }
 0xe31   :  { %3716 = vmatprep.subr.bf16.mxu0 %v6727_v54  ;;  %3759 = vmatprep.subr.bf16.mxu1 %v6730_v28 }
 0xe34   :  { %3717 = vmatpush1.bf16.msra.mxu0 %v6733_v57  ;;  %3760 = vmatpush1.bf16.msra.mxu1 %v6736_v56 }
 0xe35   :  { %3718 = vmatprep.subr.bf16.mxu0 %v6739_v10  ;;  %3761 = vmatprep.subr.bf16.mxu1 %v6742_v58 }
 0xe38   :  { %3719 = vmatpush1.bf16.msra.mxu0 %v6745_v9  ;;  %3762 = vmatpush1.bf16.msra.mxu1 %v6748_v7 }
 0xe39   :  { %3720 = vmatprep.subr.bf16.mxu0 %v6751_v35  ;;  %3763 = vmatprep.subr.bf16.mxu1 %v6754_v20 }
 0xe3c   :  { %3721 = vmatpush1.bf16.msra.mxu0 %v6757_v8  ;;  %3764 = vmatpush1.bf16.msra.mxu1 %v6760_v25 }
 0xe3d   :  { %3857 = vmatprep.subr.bf16.mxu0 %v6651_v53  ;;  %3900 = vmatprep.subr.bf16.mxu1 %v6764_v17 }
 0xef2   :  { %v3589_v15 = vpop.f32.mrb[52].mxu0  ;;  %v3632_v22 = vpop.f32.mrb[52].mxu1 }
 0xef3   :  { %v4488_v3 = vadd.f32 %v3589_v15, %v6491_v55  ;;  %v3591_v23 = vpop.f32.mrb[53].mxu0  ;;  %v3634_v47 = vpop.f32.mrb[53].mxu1  ;;  %v4520_v21 = vadd.f32 %v3632_v22, %v6507_v59 }
 0xef4   :  { %v4489_v40 = vadd.f32 %v3591_v23, %v6495_v37  ;;  %v3593_v39 = vpop.f32.mrb[54].mxu0  ;;  %v3636_v4 = vpop.f32.mrb[54].mxu1  ;;  %v4521_v34 = vadd.f32 %v3634_v47, %v6502_v33 }
 0xef5   :  { %v4348_v41 = vmul.f32 -1.442695, %v4488_v3  ;;  %v4490_v42 = vadd.f32 %v3593_v39, %v6491_v55  ;;  %v3595_v44 = vpop.f32.mrb[55].mxu0  ;;  %v3638_v45 = vpop.f32.mrb[55].mxu1  ;;  %v4522_v16 = vadd.f32 %v3636_v4, %v6507_v59 }
 0xef6   :  { %v4350_v46 = vmul.f32 -1.442695, %v4489_v40  ;;  %v4491_v53 = vadd.f32 %v3595_v44, %v6495_v37  ;;  %v4352_v43 = vmul.f32 -1.442695, %v4521_v34  ;;  %v4523_v48 = vadd.f32 %v3638_v45, %v6502_v33 }
 0xef7   :  { %5299 = vpow2.f32 %v4348_v41  ;;  %v4349_v17 = vmul.f32 -1.442695, %v4490_v42 }
 0xef8   :  { %5301 = vpow2.f32 %v4350_v46  ;;  %v4351_v6 = vmul.f32 -1.442695, %v4491_v53  ;;  %v4353_v31 = vmul.f32 -1.442695, %v4523_v48 }
 0xef9   :  { %5303 = vpow2.f32 %v4349_v17 }
 0xefa   :  { %5305 = vpow2.f32 %v4351_v6 }
 0xefb   :  { %5307 = vtanh.f32 %v4520_v21 }
 0xefc   :  { %5309 = vpow2.f32 %v4352_v43 }
 0xefd   :  { %5311 = vtanh.f32 %v4522_v16 }
 0xf01   :  { %v5300_v38 = vpop.eup %5299 }
 0xf02   :  { %v5302_v12 = vpop.eup %5301  ;;  %v3655_v26 = vadd.f32 1.0, %v5300_v38 }
 0xf03   :  { %v3667_v14 = vadd.f32 1.0, %v5302_v12  ;;  %v5304_v36 = vpop.eup %5303 }
 0xf04   :  { %5313 = vrcp.f32 %v3655_v26  ;;  %v3656_v15 = vadd.f32 1.0, %v5304_v36  ;;  %v5306_v3 = vpop.eup %5305 }
 0xf05   :  { %5315 = vrcp.f32 %v3667_v14  ;;  %v3668_v22 = vadd.f32 1.0, %v5306_v3  ;;  %v5308_v23 = vpop.eup %5307 }
 0xf06   :  { %5317 = vpow2.f32 %v4353_v31  ;;  %v5310_v47 = vpop.eup %5309 }
 0xf07   :  { %5319 = vrcp.f32 %v3656_v15  ;;  %v5312_v40 = vpop.eup %5311  ;;  %v3681_v46 = vadd.f32 1.0, %v5310_v47 }
 0xf08   :  { %5321 = vrcp.f32 %v3668_v22 }
 0xf09   :  { %5323 = vrcp.f32 %v3681_v46 }
 0xf0e   :  { %v5314_v39 = vpop.eup %5313 }
 0xf0f   :  { %v5316_v4 = vpop.eup %5315  ;;  %v3689_v41 = vmul.f32 %v5314_v39, %v5308_v23 }
 0xf10   :  { %v5318_v42 = vpop.eup %5317  ;;  %v3687_v44 = vmul.f32 %v5316_v4, %v6776_v13 }
 0xf11   :  { %v5320_v45 = vpop.eup %5319  ;;  %v3682_v34 = vadd.f32 1.0, %v5318_v42 }
 0xf12   :  { %v6826_v53 = vadd.f32 %v3689_v41, %v3687_v44  ;;  %v3690_v17 = vmul.f32 %v5320_v45, %v5312_v40  ;;  %v5322_v6 = vpop.eup %5321 }
 0xf13   :  { %v3688_v21 = vmul.f32 %v5322_v6, %v6780_v18  ;;  %v5324_v48 = vpop.eup %5323 }
 0xf14   :  { %5325 = vtanh.f32 %v6826_v53 }
 0xf15   :  { %v6830_v43 = vadd.f32 %v3690_v17, %v3688_v21  ;;  %5327 = vrcp.f32 %v3682_v34 }
 0xf17   :  { %5329 = vtanh.f32 %v6830_v43 }
 0xf1e   :  { %v5326_v16 = vpop.eup %5325 }
 0xf1f   :  { %v5328_v13 = vpop.eup %5327  ;;  %v3695_v12 = vmul.f32 %v5326_v16, %v5324_v48  ;;  %v4875_v16 = vld [vmem:[#allocation13] sm:$0xff]  }
 0xf21   :  { %v5330_v38 = vpop.eup %5329 }
 0xf22   :  { %v3696_v26 = vmul.f32 %v5330_v38, %v5328_v13  ;;  %v5609_v13 = vmov 0.0   ;;  %v4877_v38 = vld [vmem:[#allocation13 + $0x10] sm:$0xff]  }
 0xf24   :  { %v3705_v31 = vpack.c.bf16 %v3696_v26, %v3695_v12  ;;  %v4878_v12 = vld [vmem:[#allocation13 + $0x18] sm:$0xff]   ;;  %v4879_v26 = vld [vmem:[#allocation13 + $0x20] sm:$0xff]  }
 0xf26   :  { %3739 = vmatmul.mubr.bf16.vlgmr.msra.gmra.mrb[56].mxu0 %v3705_v31  ;;  %3782 = vmatmul.mubr.bf16.vlgmr.msra.gmra.mrb[56].mxu1 %v3705_v31  ;;  %v4880_v31 = vld [vmem:[#allocation13 + $0x28] sm:$0xff]  }
 0xf27   :  { %3858 = vmatpush1.bf16.msra.mxu0 %v6671_v32  ;;  %3901 = vmatpush1.bf16.msra.mxu1 %v6674_v5 }
 0xf28   :  { %3859 = vmatprep.subr.bf16.mxu0 %v6677_v11  ;;  %3902 = vmatprep.subr.bf16.mxu1 %v6680_v49 }
 0xf29   :  { %3889 = vmatprep.mubr.bf16.mxu0 %v5608_v0  ;;  %3932 = vmatprep.mubr.bf16.mxu1 %v5608_v0 }
 0xf2b   :  { %3860 = vmatpush1.bf16.msra.mxu0 %v6685_v61  ;;  %3903 = vmatpush1.bf16.msra.mxu1 %v6688_v24 }
 0xf2c   :  { %3861 = vmatprep.subr.bf16.mxu0 %v6691_v52  ;;  %3904 = vmatprep.subr.bf16.mxu1 %v6694_v2 }
 0xf2f   :  { %3862 = vmatpush1.bf16.msra.mxu0 %v6697_v63  ;;  %3905 = vmatpush1.bf16.msra.mxu1 %v6700_v50 }
 0xf30   :  { %3863 = vmatprep.subr.bf16.mxu0 %v6703_v30  ;;  %3906 = vmatprep.subr.bf16.mxu1 %v6706_v60 }
 0xf33   :  { %3864 = vmatpush1.bf16.msra.mxu0 %v6709_v62  ;;  %3907 = vmatpush1.bf16.msra.mxu1 %v6712_v1 }
 0xf34   :  { %3865 = vmatprep.subr.bf16.mxu0 %v6715_v29  ;;  %3908 = vmatprep.subr.bf16.mxu1 %v6718_v27 }
 0xf37   :  { %3866 = vmatpush1.bf16.msra.mxu0 %v6721_v51  ;;  %3909 = vmatpush1.bf16.msra.mxu1 %v6724_v19 }
 0xf38   :  { %3867 = vmatprep.subr.bf16.mxu0 %v6727_v54  ;;  %3910 = vmatprep.subr.bf16.mxu1 %v6730_v28 }
 0xf3b   :  { %3868 = vmatpush1.bf16.msra.mxu0 %v6733_v57  ;;  %3911 = vmatpush1.bf16.msra.mxu1 %v6736_v56 }
 0xf3c   :  { %3869 = vmatprep.subr.bf16.mxu0 %v6739_v10  ;;  %3912 = vmatprep.subr.bf16.mxu1 %v6742_v58 }
 0xf3f   :  { %3870 = vmatpush1.bf16.msra.mxu0 %v6745_v9  ;;  %3913 = vmatpush1.bf16.msra.mxu1 %v6748_v7 }
 0xf40   :  { %3871 = vmatprep.subr.bf16.mxu0 %v6751_v35  ;;  %3914 = vmatprep.subr.bf16.mxu1 %v6754_v20 }
 0xf43   :  { %3872 = vmatpush1.bf16.msra.mxu0 %v6757_v8  ;;  %3915 = vmatpush1.bf16.msra.mxu1 %v6760_v25 }
 0xf44   :  { %4384 = vmatprep.subr.bf16.mxu0 %v5609_v13 }
 0xff9   :  { %v3740_v0 = vpop.f32.mrb[56].mxu0  ;;  %v3783_v32 = vpop.f32.mrb[56].mxu1 }
 0xffa   :  { %v4492_v5 = vadd.f32 %v3740_v0, %v6491_v55  ;;  %v3742_v11 = vpop.f32.mrb[57].mxu0  ;;  %v3785_v49 = vpop.f32.mrb[57].mxu1  ;;  %v4524_v51 = vadd.f32 %v3783_v32, %v6507_v59  ;;  %v4881_v0 = vld [vmem:[#allocation13 + $0x30] sm:$0xff]   ;;  %v4882_v32 = vld [vmem:[#allocation13 + $0x38] sm:$0xff]  }
 0xffb   :  { %v4493_v61 = vadd.f32 %v3742_v11, %v6495_v37  ;;  %v3744_v24 = vpop.f32.mrb[58].mxu0  ;;  %v3787_v52 = vpop.f32.mrb[58].mxu1  ;;  %v4525_v27 = vadd.f32 %v3785_v49, %v6502_v33 }
 0xffc   :  { %v4354_v2 = vmul.f32 -1.442695, %v4492_v5  ;;  %v4494_v63 = vadd.f32 %v3744_v24, %v6491_v55  ;;  %v3746_v50 = vpop.f32.mrb[59].mxu0  ;;  %v3789_v30 = vpop.f32.mrb[59].mxu1  ;;  %v4526_v28 = vadd.f32 %v3787_v52, %v6507_v59 }
 0xffd   :  { %v4356_v60 = vmul.f32 -1.442695, %v4493_v61  ;;  %v4495_v62 = vadd.f32 %v3746_v50, %v6495_v37  ;;  %v4358_v19 = vmul.f32 -1.442695, %v4525_v27  ;;  %v4527_v54 = vadd.f32 %v3789_v30, %v6502_v33 }
 0xffe   :  { %5331 = vpow2.f32 %v4354_v2  ;;  %v4355_v1 = vmul.f32 -1.442695, %v4494_v63 }
 0xfff   :  { %5333 = vpow2.f32 %v4356_v60  ;;  %v4357_v29 = vmul.f32 -1.442695, %v4495_v62  ;;  %v4359_v58 = vmul.f32 -1.442695, %v4527_v54 }
0x1000   :  { %5335 = vpow2.f32 %v4355_v1 }
0x1001   :  { %5337 = vpow2.f32 %v4357_v29 }
0x1002   :  { %5339 = vtanh.f32 %v4524_v51 }
0x1003   :  { %5341 = vpow2.f32 %v4358_v19 }
0x1004   :  { %5343 = vtanh.f32 %v4526_v28 }
0x1008   :  { %v5332_v57 = vpop.eup %5331 }
0x1009   :  { %v5334_v56 = vpop.eup %5333  ;;  %v3806_v10 = vadd.f32 1.0, %v5332_v57 }
0x100a   :  { %v3818_v9 = vadd.f32 1.0, %v5334_v56  ;;  %v5336_v7 = vpop.eup %5335 }
0x100b   :  { %5345 = vrcp.f32 %v3806_v10  ;;  %v3807_v35 = vadd.f32 1.0, %v5336_v7  ;;  %v5338_v20 = vpop.eup %5337 }
0x100c   :  { %5347 = vrcp.f32 %v3818_v9  ;;  %v3819_v8 = vadd.f32 1.0, %v5338_v20  ;;  %v5340_v25 = vpop.eup %5339 }
0x100d   :  { %5349 = vpow2.f32 %v4359_v58  ;;  %v5342_v18 = vpop.eup %5341 }
0x100e   :  { %5351 = vrcp.f32 %v3807_v35  ;;  %v5344_v14 = vpop.eup %5343  ;;  %v3832_v40 = vadd.f32 1.0, %v5342_v18 }
0x100f   :  { %5353 = vrcp.f32 %v3819_v8 }
0x1010   :  { %5355 = vrcp.f32 %v3832_v40 }
0x1015   :  { %v5346_v36 = vpop.eup %5345 }
0x1016   :  { %v5348_v15 = vpop.eup %5347  ;;  %v3840_v3 = vmul.f32 %v5346_v36, %v5340_v25 }
0x1017   :  { %v5350_v22 = vpop.eup %5349  ;;  %v3838_v23 = vmul.f32 %v5348_v15, %v6826_v53 }
0x1018   :  { %v5352_v47 = vpop.eup %5351  ;;  %v3833_v42 = vadd.f32 1.0, %v5350_v22 }
0x1019   :  { %v6874_v39 = vadd.f32 %v3840_v3, %v3838_v23  ;;  %v3841_v4 = vmul.f32 %v5352_v47, %v5344_v14  ;;  %v5354_v41 = vpop.eup %5353 }
0x101a   :  { %v3839_v44 = vmul.f32 %v5354_v41, %v6830_v43  ;;  %v5356_v46 = vpop.eup %5355  ;;  %v4876_v43 = vld [vmem:[#allocation13 + $0x8] sm:$0xff]  }
0x101b   :  { %5357 = vtanh.f32 %v6874_v39 }
0x101c   :  { %v6878_v45 = vadd.f32 %v3841_v4, %v3839_v44  ;;  %5359 = vrcp.f32 %v3833_v42 }
0x101e   :  { %5361 = vtanh.f32 %v6878_v45 }
0x1025   :  { %v5358_v17 = vpop.eup %5357 }
0x1026   :  { %v5360_v53 = vpop.eup %5359  ;;  %v3846_v34 = vmul.f32 %v5358_v17, %v5356_v46 }
0x1028   :  { %v5362_v6 = vpop.eup %5361 }
0x1029   :  { %v3847_v21 = vmul.f32 %v5362_v6, %v5360_v53 }
0x102b   :  { %v3856_v48 = vpack.c.bf16 %v3847_v21, %v3846_v34 }
0x102d   :  { %3890 = vmatmul.mubr.bf16.vlgmr.msra.gmra.mrb[60].mxu0 %v3856_v48  ;;  %3933 = vmatmul.mubr.bf16.vlgmr.msra.gmra.mrb[60].mxu1 %v3856_v48 }
0x102e   :  { %4385 = vmatpush3.bf16.msra.mxu0 %v4875_v16  ;;  %4400 = vmatprep.mubr.msk.bf16.mxu0 %vm5610_vm0, %v5609_v13 }
0x102f   :  { %4386 = vmatprep.subr.bf16.mxu0 %v5609_v13 }
0x1032   :  { %4387 = vmatpush3.bf16.msra.mxu0 %v4876_v43 }
0x1033   :  { %4388 = vmatprep.subr.bf16.mxu0 %v5609_v13 }
0x1036   :  { %4389 = vmatpush3.bf16.msra.mxu0 %v4877_v38 }
0x1037   :  { %4390 = vmatprep.subr.bf16.mxu0 %v5609_v13 }
0x103a   :  { %4391 = vmatpush3.bf16.msra.mxu0 %v4878_v12 }
0x103b   :  { %4392 = vmatprep.subr.bf16.mxu0 %v5609_v13 }
0x103e   :  { %4393 = vmatpush3.bf16.msra.mxu0 %v4879_v26 }
0x103f   :  { %4394 = vmatprep.subr.bf16.mxu0 %v5609_v13 }
0x1042   :  { %4395 = vmatpush3.bf16.msra.mxu0 %v4880_v31 }
0x1043   :  { %4396 = vmatprep.subr.bf16.mxu0 %v5609_v13 }
0x1046   :  { %4397 = vmatpush3.bf16.msra.mxu0 %v4881_v0 }
0x1047   :  { %4398 = vmatprep.subr.bf16.mxu0 %v5609_v13 }
0x104a   :  { %4399 = vmatpush3.bf16.msra.mxu0 %v4882_v32 }
0x1100   :  { %v3891_v5 = vpop.f32.mrb[60].mxu0  ;;  %v3934_v11 = vpop.f32.mrb[60].mxu1 }
0x1101   :  { %v4496_v49 = vadd.f32 %v3891_v5, %v6491_v55  ;;  %v3893_v61 = vpop.f32.mrb[61].mxu0  ;;  %v3936_v24 = vpop.f32.mrb[61].mxu1  ;;  %v4528_v54 = vadd.f32 %v3934_v11, %v6507_v59 }
0x1102   :  { %v4497_v52 = vadd.f32 %v3893_v61, %v6495_v37  ;;  %v3895_v2 = vpop.f32.mrb[62].mxu0  ;;  %v3938_v63 = vpop.f32.mrb[62].mxu1  ;;  %v4529_v19 = vadd.f32 %v3936_v24, %v6502_v33 }
0x1103   :  { %v4360_v50 = vmul.f32 -1.442695, %v4496_v49  ;;  %v4498_v30 = vadd.f32 %v3895_v2, %v6491_v55  ;;  %v3897_v60 = vpop.f32.mrb[63].mxu0  ;;  %v3940_v62 = vpop.f32.mrb[63].mxu1  ;;  %v4530_v55 = vadd.f32 %v3938_v63, %v6507_v59 }
0x1104   :  { %v4362_v1 = vmul.f32 -1.442695, %v4497_v52  ;;  %v4499_v29 = vadd.f32 %v3897_v60, %v6495_v37  ;;  %v4364_v28 = vmul.f32 -1.442695, %v4529_v19  ;;  %v4531_v57 = vadd.f32 %v3940_v62, %v6502_v33 }
0x1105   :  { %5363 = vpow2.f32 %v4360_v50  ;;  %v4361_v27 = vmul.f32 -1.442695, %v4498_v30 }
0x1106   :  { %5365 = vpow2.f32 %v4362_v1  ;;  %v4363_v51 = vmul.f32 -1.442695, %v4499_v29  ;;  %v4365_v37 = vmul.f32 -1.442695, %v4531_v57 }
0x1107   :  { %5367 = vpow2.f32 %v4361_v27 }
0x1108   :  { %5369 = vpow2.f32 %v4363_v51 }
0x1109   :  { %5371 = vtanh.f32 %v4528_v54 }
0x110a   :  { %5373 = vpow2.f32 %v4364_v28 }
0x110b   :  { %5375 = vtanh.f32 %v4530_v55 }
0x110f   :  { %v5364_v56 = vpop.eup %5363 }
0x1110   :  { %v5366_v10 = vpop.eup %5365  ;;  %v3957_v58 = vadd.f32 1.0, %v5364_v56 }
0x1111   :  { %v3969_v9 = vadd.f32 1.0, %v5366_v10  ;;  %v5368_v7 = vpop.eup %5367 }
0x1112   :  { %5377 = vrcp.f32 %v3957_v58  ;;  %v3958_v35 = vadd.f32 1.0, %v5368_v7  ;;  %v5370_v20 = vpop.eup %5369 }
0x1113   :  { %5379 = vrcp.f32 %v3969_v9  ;;  %v3970_v8 = vadd.f32 1.0, %v5370_v20  ;;  %v5372_v33 = vpop.eup %5371 }
0x1114   :  { %5381 = vpow2.f32 %v4365_v37  ;;  %v5374_v25 = vpop.eup %5373 }
0x1115   :  { %5383 = vrcp.f32 %v3958_v35  ;;  %v5376_v59 = vpop.eup %5375  ;;  %v3983_v15 = vadd.f32 1.0, %v5374_v25 }
0x1116   :  { %5385 = vrcp.f32 %v3970_v8 }
0x1117   :  { %5387 = vrcp.f32 %v3983_v15 }
0x111c   :  { %v5378_v18 = vpop.eup %5377 }
0x111d   :  { %v5380_v14 = vpop.eup %5379  ;;  %v3991_v36 = vmul.f32 %v5378_v18, %v5372_v33 }
0x111e   :  { %v5382_v3 = vpop.eup %5381  ;;  %v3989_v22 = vmul.f32 %v5380_v14, %v6874_v39  ;;  %v4366_v39 = vld [vmem:[%s6912_s6] ss:$0 sm:$0xff] }
0x111f   :  { %v5384_v23 = vpop.eup %5383  ;;  %v3984_v41 = vadd.f32 1.0, %v5382_v3 }
0x1120   :  { %v3993_v47 = vadd.f32 %v3991_v36, %v3989_v22  ;;  %v3992_v40 = vmul.f32 %v5384_v23, %v5376_v59  ;;  %v5386_v4 = vpop.eup %5385 }
0x1121   :  { %v3990_v42 = vmul.f32 %v5386_v4, %v6878_v45  ;;  %v5388_v46 = vpop.eup %5387 }
0x1122   :  { %5389 = vtanh.f32 %v3993_v47 }
0x1123   :  { %v3994_v44 = vadd.f32 %v3992_v40, %v3990_v42  ;;  %5391 = vrcp.f32 %v3984_v41 }
0x1125   :  { %5393 = vtanh.f32 %v3994_v44 }
0x112c   :  { %v5390_v17 = vpop.eup %5389 }
0x112d   :  { %v3997_v53 = vmul.f32 %v5390_v17, %v5388_v46  ;;  %v5392_v6 = vpop.eup %5391 }
0x112f   :  { %v5394_v34 = vpop.eup %5393 }
0x1130   :  { %v3998_v21 = vmul.f32 %v5394_v34, %v5392_v6 }
0x1132   :  { %v3999_v48 = vpack.c.bf16 %v3998_v21, %v3997_v53 }
0x1134   :  { %4401 = vmatmul.mubr.bf16.vlgmr.msra.gmra.mrb[64].mxu0 %v3999_v48 }
0x1207   :  { %v4105_v16 = vpop.f32.mrb[64].mxu0 }
0x1208   :  { %v4106_v13 = vadd.f32 %v4366_v39, %v4105_v16  ;;  %v4402_v45 = vpop.f32.mrb[65].mxu0 }
0x1209   :  { %v4108_v43 = vpop.f32.mrb[66].mxu0 }
0x120a   :  { %4112 = vst [vmem:[#allocation14] sm:$0xff] %v4106_v13  ;;  %v4109_v38 = vadd.f32 %v4366_v39, %v4108_v43  ;;  %v4403_v12 = vpop.f32.mrb[67].mxu0 }
0x120c   :  { %4113 = vst [vmem:[#allocation14 + $0x8] sm:$0xff] %v4109_v38 }
0x120d   :  { %5580 = shalt.err (!%p5577_p2)
}
0x120e   :  { %s5581_s24 = scalar_lea.hbm %s6913_s7, 256 }
0x120f   :  { %p5582_p3 = scmp.ne.s32.totalorder %s6913_s7, %s5581_s24  ;;  %p5585_p4 = scmp.lt.u32.totalorder %s5581_s24, %s6913_s7 }
0x1211   :  { %p5587_p5 = pnand %p5585_p4, %p5582_p3 }
0x1213   :  { %5590 = shalt.err (!%p5587_p5)
}
0x1214   :  { %s5612_s28 = smov 128   ;;  %s5613_s0 = smov 8  }
0x1215   :  { %4125 = dma.vmem_to_hbm [thread:$0]  %s4120_s21, 256, %s6913_s7, [#allocation7], %s5612_s28, %s5612_s28, %s5613_s0  }
0x1216   :  { %5597 = dma.done.wait [#allocation7], 256  }
0x1217   :  { %5598 = vsyncadd [#allocation7], 4294967040 }
0x1218   :  { %4129 = vsyncpa [#allocation6], 1 }
0x1219   :  { %4130 = vsyncpa [#allocation9], 1 }
0x121a   :  { %4131 = vsyncpa [#allocation12], 1 }
0x121b   :  { %4132 = vsyncpa [#allocation7], 1 }

</bundles_post_ra>
